<compile_context>
chip_gen: v7x
topology: tpu7x:2x2x1
jax: 0.10.0
libtpu: 0.0.40
codegen_flags: <defaults>
</compile_context>

<pallas_src>
import math
import functools

import jax
import jax.numpy as jnp
from jax.experimental import pallas as pl
from jax.experimental.pallas import tpu as pltpu

MIN_NORM = 1e-5
BALL_EPS = 1e-3


# ---------------- hyperbolic helpers (pure jnp; used in kernel + reference) ----------------
def _tanh(x):
    return jnp.tanh(jnp.clip(x, -15.0, 15.0))


def _artanh(x):
    x = jnp.clip(x, -1.0 + 1e-5, 1.0 - 1e-5)
    return 0.5 * (jnp.log(1.0 + x) - jnp.log(1.0 - x))


def _norm(x, axes):
    return jnp.maximum(jnp.sqrt(jnp.sum(x * x, axis=axes, keepdims=True)), MIN_NORM)


def _logmap0(y, c, axes):
    sqrt_c = c ** 0.5
    yn = _norm(y, axes)
    return y / yn / sqrt_c * _artanh(sqrt_c * yn)


def _expmap0(u, c, axes):
    sqrt_c = c ** 0.5
    un = _norm(u, axes)
    return _tanh(sqrt_c * un) * u / (sqrt_c * un)


def _project(x, c, axes):
    norm = _norm(x, axes)
    maxnorm = (1.0 - BALL_EPS) / (c ** 0.5)
    return jnp.where(norm > maxnorm, x / norm * maxnorm, x)


def _mobius_add(x, y, c, axes):
    x2 = jnp.sum(x * x, axis=axes, keepdims=True)
    y2 = jnp.sum(y * y, axis=axes, keepdims=True)
    xy = jnp.sum(x * y, axis=axes, keepdims=True)
    num = (1.0 + 2.0 * c * xy + c * y2) * x + (1.0 - c * x2) * y
    denom = 1.0 + 2.0 * c * xy + c * c * x2 * y2
    return num / (denom + 1e-5)


# ---------------- Pallas kernel ------------------------------------------------------------
def _hypconv_kernel(x_ref, w_ref, eb_ref, o_ref, x2_ref, *, c, k, H, W, TC, has_bias):
    # x_ref : (bb, TC, M1, M2)  padded input channels for this (batch block, channel chunk)
    # w_ref : (TC, c_out, k*k)  kernel slices for this channel chunk
    # eb_ref: (c_out, 1)        expmap0(bias), precomputed in the wrapper
    # o_ref : (bb, c_out, H*W)  output block; also the Mobius accumulator (resident over jc)
    # x2_ref: (bb, c_out, 1)    carried squared norm of the accumulator rows
    jc = pl.program_id(1)
    nchunks = pl.num_programs(1)
    sqrt_c = c ** 0.5
    maxnorm = (1.0 - BALL_EPS) / sqrt_c
    HW = H * W

    xblk = x_ref[...]                      # (bb, TC, M1, M2)
    wblk = w_ref[...]                      # (TC, c_out, kk)
    bb = xblk.shape[0]
    c_out = wblk.shape[1]
    kk = k * k

    def mobius_project_into(tvec, t2):
        # acc <- project(mobius_add(acc, tvec)); accumulator norm updated analytically
        # (x2 / y2 are never recomputed with a full-tensor reduction).
        acc = o_ref[...]                   # (bb, c_out, HW)
        x2 = x2_ref[...]                   # (bb, c_out, 1)
        xy = jnp.sum(acc * tvec, axis=2, keepdims=True)
        y2 = t2
        A = 1.0 + 2.0 * c * xy + c * y2
        B = 1.0 - c * x2
        inv_d = 1.0 / (1.0 + 2.0 * c * xy + (c * c) * x2 * y2 + 1e-5)   # tiny tensor divide
        m2 = jnp.maximum((A * A * x2 + 2.0 * A * B * xy + B * B * y2) * (inv_d * inv_d), 0.0)
        mn = jnp.maximum(jnp.sqrt(m2), MIN_NORM)
        pscale = jnp.where(mn > maxnorm, maxnorm / mn, 1.0)
        o_ref[...] = (A * acc + B * tvec) * (inv_d * pscale)            # one fused full-size scale
        x2_ref[...] = m2 * (pscale * pscale)

    # TC is chosen small enough (VMEM-budgeted) that a static unrolled loop is fine here.
    for t in range(TC):
        xch = xblk[:, t]                   # (bb, M1, M2)
        wj = wblk[t]                       # (c_out, kk)

        # logmap0 over the flattened padded channel == per-batch scalar (conv is linear).
        chan_sq = jnp.sum(xch * xch, axis=(1, 2), keepdims=True)        # (bb, 1, 1)
        xn = jnp.maximum(jnp.sqrt(chan_sq), MIN_NORM)
        alpha = _artanh(sqrt_c * xn) / (sqrt_c * xn)                    # (bb, 1, 1)

        # im2col patch matrix (bb, kk, HW) contracted on the MXU against the c_out kernels.
        cols = [xch[:, di:di + H, dj:dj + W] for di in range(k) for dj in range(k)]
        patches = jnp.stack(cols, axis=1).reshape(bb, kk, HW)           # (bb, kk, HW)
        wb = jnp.broadcast_to(wj[None], (bb, c_out, kk))
        conv = jnp.einsum('boq,bqp->bop', wb, patches,
                          preferred_element_type=jnp.float32)           # (bb, c_out, HW)

        # expmap0 + project of (alpha * conv), folded into one per-row scale.
        conv_n = jnp.sqrt(jnp.sum(conv * conv, axis=2, keepdims=True))  # (bb, c_out, 1)
        un_true = alpha * conv_n
        un = jnp.maximum(un_true, MIN_NORM)
        s_exp = _tanh(sqrt_c * un) / (sqrt_c * un)
        en_true = s_exp * un_true
        en = jnp.maximum(en_true, MIN_NORM)
        s_proj = jnp.where(en > maxnorm, maxnorm / en, 1.0)
        tvec = conv * (alpha * s_exp * s_proj)                          # single full-size multiply
        t2 = (en_true * s_proj) ** 2                                    # (bb, c_out, 1)

        if t == 0:
            @pl.when(jc == 0)
            def _init(tvec=tvec, t2=t2):
                o_ref[...] = tvec
                x2_ref[...] = t2

            @pl.when(jc > 0)
            def _acc(tvec=tvec, t2=t2):
                mobius_project_into(tvec, t2)
        else:
            mobius_project_into(tvec, t2)

    if has_bias:
        @pl.when(jc == nchunks - 1)
        def _bias():
            # mobius_add with the per-row constant expmap0(bias)[o]; no full broadcast built.
            acc = o_ref[...]
            x2 = x2_ref[...]
            ebv = eb_ref[...]                                           # (c_out, 1)
            xy = ebv * jnp.sum(acc, axis=2, keepdims=True)              # (bb, c_out, 1)
            y2 = float(HW) * ebv * ebv
            A = 1.0 + 2.0 * c * xy + c * y2
            B = 1.0 - c * x2
            inv_d = 1.0 / (1.0 + 2.0 * c * xy + (c * c) * x2 * y2 + 1e-5)
            m2 = jnp.maximum((A * A * x2 + 2.0 * A * B * xy + B * B * y2) * (inv_d * inv_d), 0.0)
            mn = jnp.maximum(jnp.sqrt(m2), MIN_NORM)
            pscale = jnp.where(mn > maxnorm, maxnorm / mn, 1.0)
            o_ref[...] = (A * acc + B * ebv) * (inv_d * pscale)


def _largest_divisor_at_most(n, cap):
    cap = max(1, min(n, cap))
    for d in range(cap, 0, -1):
        if n % d == 0:
            return d
    return 1


def hyp_conv3(x, weight, bias, c, padding=0, batch_block=None, channel_block=None):
    """Pallas implementation of HypConv3.forward."""
    x = x.astype(jnp.float32)
    weight = weight.astype(jnp.float32)

    bs, c_in, m1, m2 = x.shape
    c_out, _, k, _ = weight.shape
    M1, M2 = m1 + 2 * padding, m2 + 2 * padding
    H, W = M1 - k + 1, M2 - k + 1
    HW = H * W

    xpad = jnp.pad(x, ((0, 0), (0, 0), (padding, padding), (padding, padding)))

    # Weight is a tiny parameter: reorder to (c_in, c_out, k*k) so the channel-chunk axis
    # is a leading block dim (last two block dims stay full, satisfying the (8,128) rule).
    # x itself is NOT transposed — its channel axis is indexed by the BlockSpec index_map.
    w_r = jnp.transpose(weight.reshape(c_out, c_in, k * k), (1, 0, 2))

    has_bias = bias is not None
    if has_bias:
        eb = _expmap0(bias.astype(jnp.float32).reshape(1, c_out), c, axes=(1,)).reshape(c_out, 1)
    else:
        eb = jnp.zeros((c_out, 1), jnp.float32)

    # ---- block sizing ---------------------------------------------------------------------
    if batch_block is None:
        # >=2 parallel batch blocks when possible so both v7x TensorCores get work.
        batch_block = _largest_divisor_at_most(bs, (bs + 1) // 2) if bs > 1 else 1
    nb = bs // batch_block

    if channel_block is None:
        # Keep the double-buffered input chunk well under the scoped-VMEM default
        # (conservative so it also fits v7x's 64 MiB part).
        per_ch_bytes = batch_block * M1 * M2 * 4
        cap = max(1, (8 << 20) // max(1, 2 * per_ch_bytes))
        channel_block = _largest_divisor_at_most(c_in, cap)
    TC = channel_block
    nc = c_in // TC

    kernel = functools.partial(_hypconv_kernel, c=float(c), k=k, H=H, W=W,
                               TC=TC, has_bias=has_bias)

    out = pl.pallas_call(
        kernel,
        out_shape=jax.ShapeDtypeStruct((bs, c_out, HW), jnp.float32),
        grid_spec=pltpu.PrefetchScalarGridSpec(
            num_scalar_prefetch=0,
            grid=(nb, nc),
            in_specs=[
                pl.BlockSpec((batch_block, TC, M1, M2), lambda b, j: (b, j, 0, 0)),
                pl.BlockSpec((TC, c_out, k * k), lambda b, j: (j, 0, 0)),
                pl.BlockSpec((c_out, 1), lambda b, j: (0, 0)),
            ],
            out_specs=pl.BlockSpec((batch_block, c_out, HW), lambda b, j: (b, 0, 0)),
            scratch_shapes=[pltpu.VMEM((batch_block, c_out, 1), jnp.float32)],
        ),
        compiler_params=pltpu.CompilerParams(
            dimension_semantics=("parallel", "arbitrary")),
    )(xpad, w_r, eb)

    return out.reshape(bs, c_out, H, W)


# ---------------- pure-JAX reference (mirrors the PyTorch code) ----------------------------
def ref_forward(x, weight, bias, c, padding=0):
    bs, c_in, m1, m2 = x.shape
    c_out, _, k, _ = weight.shape
    xpad = jnp.pad(x, ((0, 0), (0, 0), (padding, padding), (padding, padding)))
    M1, M2 = m1 + 2 * padding, m2 + 2 * padding
    H, W = M1 - k + 1, M2 - k + 1

    out = None
    for j in range(c_in):
        ch = xpad[:, j]                                           # (bs, M1, M2)
        lm = _logmap0(ch.reshape(bs, -1), c, axes=(1,)).reshape(bs, M1, M2)
        conv = jnp.zeros((bs, c_out, H, W), jnp.float32)
        for di in range(k):
            for dj in range(k):
                conv = conv + lm[:, None, di:di + H, dj:dj + W] * \
                    weight[None, :, j, di, dj][..., None, None]
        t = conv.reshape(bs * c_out, -1)
        t = _project(_expmap0(t, c, axes=(1,)), c, axes=(1,))
        if j == 0:
            out = t
        else:
            out = _project(_mobius_add(out, t, c, axes=(1,)), c, axes=(1,))

    eb = _expmap0(bias.reshape(1, -1), c, axes=(1,)).reshape(-1)  # (c_out,)
    ebb = jnp.broadcast_to(eb[None, :, None, None], (bs, c_out, H, W)).reshape(bs * c_out, -1)
    res = _mobius_add(out, ebb, c, axes=(1,))
    res = _project(res, c, axes=(1,))
    return res.reshape(bs, c_out, H, W)


# ---------------- main ----------------------------------------------------------------------
if __name__ == "__main__":
    bs, c_in, c_out, m, k = 2, 4, 4, 16, 3
    curvature = 1.0
    padding = 0

    key = jax.random.PRNGKey(0)
    kw, kb, kx = jax.random.split(key, 3)

    # kaiming_uniform_(a=sqrt(5)) => uniform(-1/sqrt(fan_in), 1/sqrt(fan_in)); same bound for bias
    fan_in = c_in * k * k
    bound = 1.0 / math.sqrt(fan_in)
    weight = jax.random.uniform(kw, (c_out, c_in, k, k), jnp.float32, -bound, bound)
    bias = jax.random.uniform(kb, (c_out,), jnp.float32, -bound, bound)

    # small-magnitude input so each flattened channel lies inside the Poincare ball
    x = jax.random.uniform(kx, (bs, c_in, m, m), jnp.float32, -0.03, 0.03)

    out = hyp_conv3(x, weight, bias, curvature, padding=padding)
    out = jax.block_until_ready(out)

    ref = jax.block_until_ready(ref_forward(x, weight, bias, curvature, padding=padding))
    assert out.shape == (bs, c_out, m - k + 1 + 2 * padding, m - k + 1 + 2 * padding)
    if not jnp.allclose(out, ref, atol=1e-4, rtol=1e-3):
        raise AssertionError("Pallas kernel does not match reference")

    print("KERNEL_OK")
</pallas_src>

<mosaic_0001>
module attributes {stable_mosaic.version = 11 : i64} {
  func.func @_hypconv_kernel(%arg0: i32, %arg1: i32, %arg2: memref<1x4x16x16xf32, #tpu.memory_space<vmem>>, %arg3: memref<4x4x9xf32, #tpu.memory_space<vmem>>, %arg4: memref<4x1xf32, #tpu.memory_space<vmem>>, %arg5: memref<1x4x196xf32, #tpu.memory_space<vmem>>, %arg6: memref<1x4x1xf32, #tpu.memory_space<vmem>>) attributes {dimension_semantics = [#tpu.dimension_semantics<parallel>, #tpu.dimension_semantics<arbitrary>], iteration_bounds = array<i64: 2, 1>, scalar_prefetch = 0 : i64, scratch_operands = 1 : i64, tpu.core_type = #tpu.core_type<tc>, window_params = [{transform_indices = @transform_0, window_bounds = array<i64: 1, 4, 16, 16>}, {transform_indices = @transform_1, window_bounds = array<i64: 4, 4, 9>}, {pipeline_mode = #tpu.pipeline_mode<synchronous>, transform_indices = @transform_2, window_bounds = array<i64: 4, 1>}, {transform_indices = @transform_3, window_bounds = array<i64: 1, 4, 196>}]} {
    %c0 = arith.constant 0 : index
    %c0_0 = arith.constant 0 : index
    %c0_1 = arith.constant 0 : index
    %c0_2 = arith.constant 0 : index
    %0 = vector.load %arg2[%c0, %c0_0, %c0_1, %c0_2] : memref<1x4x16x16xf32, #tpu.memory_space<vmem>>, vector<1x4x16x16xf32>
    %c0_3 = arith.constant 0 : index
    %c0_4 = arith.constant 0 : index
    %c0_5 = arith.constant 0 : index
    %1 = vector.load %arg3[%c0_3, %c0_4, %c0_5] : memref<4x4x9xf32, #tpu.memory_space<vmem>>, vector<4x4x9xf32>
    %2 = vector.extract_strided_slice %0 {offsets = [0, 0, 0, 0], sizes = [1, 1, 16, 16], strides = [1, 1, 1, 1]} : vector<1x4x16x16xf32> to vector<1x1x16x16xf32>
    %3 = vector.shape_cast %2 : vector<1x1x16x16xf32> to vector<1x16x16xf32>
    %4 = vector.extract_strided_slice %1 {offsets = [0, 0, 0], sizes = [1, 4, 9], strides = [1, 1, 1]} : vector<4x4x9xf32> to vector<1x4x9xf32>
    %5 = vector.shape_cast %4 : vector<1x4x9xf32> to vector<4x9xf32>
    %6 = arith.mulf %3, %3 : vector<1x16x16xf32>
    %cst = arith.constant dense<0.000000e+00> : vector<1xf32>
    %7 = vector.multi_reduction <add>, %6, %cst [1, 2] : vector<1x16x16xf32> to vector<1xf32>
    %8 = vector.shape_cast %7 : vector<1xf32> to vector<1x1x1xf32>
    %9 = math.sqrt %8 : vector<1x1x1xf32>
    %cst_6 = arith.constant 9.99999974E-6 : f32
    %10 = vector.broadcast %cst_6 : f32 to vector<1x1x1xf32>
    %11 = arith.maximumf %9, %10 : vector<1x1x1xf32>
    %cst_7 = arith.constant 1.000000e+00 : f32
    %12 = vector.broadcast %cst_7 : f32 to vector<1x1x1xf32>
    %13 = arith.mulf %12, %11 : vector<1x1x1xf32>
    %cst_8 = arith.constant -0.999989986 : f32
    %cst_9 = arith.constant 0.999989986 : f32
    %14 = vector.broadcast %cst_8 : f32 to vector<1x1x1xf32>
    %15 = arith.maximumf %14, %13 : vector<1x1x1xf32>
    %16 = vector.broadcast %cst_9 : f32 to vector<1x1x1xf32>
    %17 = arith.minimumf %16, %15 : vector<1x1x1xf32>
    %cst_10 = arith.constant 1.000000e+00 : f32
    %18 = vector.broadcast %cst_10 : f32 to vector<1x1x1xf32>
    %19 = arith.addf %18, %17 : vector<1x1x1xf32>
    %20 = math.log %19 : vector<1x1x1xf32>
    %cst_11 = arith.constant 1.000000e+00 : f32
    %21 = vector.broadcast %cst_11 : f32 to vector<1x1x1xf32>
    %22 = arith.subf %21, %17 : vector<1x1x1xf32>
    %23 = math.log %22 : vector<1x1x1xf32>
    %24 = arith.subf %20, %23 : vector<1x1x1xf32>
    %cst_12 = arith.constant 5.000000e-01 : f32
    %25 = vector.broadcast %cst_12 : f32 to vector<1x1x1xf32>
    %26 = arith.mulf %25, %24 : vector<1x1x1xf32>
    %cst_13 = arith.constant 1.000000e+00 : f32
    %27 = vector.broadcast %cst_13 : f32 to vector<1x1x1xf32>
    %28 = arith.mulf %27, %11 : vector<1x1x1xf32>
    %29 = arith.divf %26, %28 : vector<1x1x1xf32>
    %30 = vector.extract_strided_slice %3 {offsets = [0, 0, 0], sizes = [1, 14, 14], strides = [1, 1, 1]} : vector<1x16x16xf32> to vector<1x14x14xf32>
    %31 = vector.extract_strided_slice %3 {offsets = [0, 0, 1], sizes = [1, 14, 14], strides = [1, 1, 1]} : vector<1x16x16xf32> to vector<1x14x14xf32>
    %32 = vector.extract_strided_slice %3 {offsets = [0, 0, 2], sizes = [1, 14, 14], strides = [1, 1, 1]} : vector<1x16x16xf32> to vector<1x14x14xf32>
    %33 = vector.extract_strided_slice %3 {offsets = [0, 1, 0], sizes = [1, 14, 14], strides = [1, 1, 1]} : vector<1x16x16xf32> to vector<1x14x14xf32>
    %34 = vector.extract_strided_slice %3 {offsets = [0, 1, 1], sizes = [1, 14, 14], strides = [1, 1, 1]} : vector<1x16x16xf32> to vector<1x14x14xf32>
    %35 = vector.extract_strided_slice %3 {offsets = [0, 1, 2], sizes = [1, 14, 14], strides = [1, 1, 1]} : vector<1x16x16xf32> to vector<1x14x14xf32>
    %36 = vector.extract_strided_slice %3 {offsets = [0, 2, 0], sizes = [1, 14, 14], strides = [1, 1, 1]} : vector<1x16x16xf32> to vector<1x14x14xf32>
    %37 = vector.extract_strided_slice %3 {offsets = [0, 2, 1], sizes = [1, 14, 14], strides = [1, 1, 1]} : vector<1x16x16xf32> to vector<1x14x14xf32>
    %38 = vector.extract_strided_slice %3 {offsets = [0, 2, 2], sizes = [1, 14, 14], strides = [1, 1, 1]} : vector<1x16x16xf32> to vector<1x14x14xf32>
    %39 = vector.shape_cast %30 : vector<1x14x14xf32> to vector<1x1x14x14xf32>
    %40 = vector.shape_cast %31 : vector<1x14x14xf32> to vector<1x1x14x14xf32>
    %41 = vector.shape_cast %32 : vector<1x14x14xf32> to vector<1x1x14x14xf32>
    %42 = vector.shape_cast %33 : vector<1x14x14xf32> to vector<1x1x14x14xf32>
    %43 = vector.shape_cast %34 : vector<1x14x14xf32> to vector<1x1x14x14xf32>
    %44 = vector.shape_cast %35 : vector<1x14x14xf32> to vector<1x1x14x14xf32>
    %45 = vector.shape_cast %36 : vector<1x14x14xf32> to vector<1x1x14x14xf32>
    %46 = vector.shape_cast %37 : vector<1x14x14xf32> to vector<1x1x14x14xf32>
    %47 = vector.shape_cast %38 : vector<1x14x14xf32> to vector<1x1x14x14xf32>
    %48 = tpu.concatenate %39, %40, %41, %42, %43, %44, %45, %46, %47 in 1 : vector<1x1x14x14xf32>, vector<1x1x14x14xf32>, vector<1x1x14x14xf32>, vector<1x1x14x14xf32>, vector<1x1x14x14xf32>, vector<1x1x14x14xf32>, vector<1x1x14x14xf32>, vector<1x1x14x14xf32>, vector<1x1x14x14xf32> -> vector<1x9x14x14xf32>
    %49 = vector.shape_cast %48 : vector<1x9x14x14xf32> to vector<1x9x196xf32>
    %50 = vector.shape_cast %5 : vector<4x9xf32> to vector<1x4x9xf32>
    "tpu.trace_start"() <{level = 10 : i32, message = "boq,bqp->bop"}> : () -> ()
    %cst_14 = arith.constant dense<0.000000e+00> : vector<1x4x196xf32>
    %51 = tpu.matmul %50, %49, %cst_14 {dimension_numbers = #tpu.dot_dimension_numbers<[2], [1], [1], [2], [0, 0, 0, 1, 1, 2], [0], [0]>} : vector<1x4x9xf32>, vector<1x9x196xf32>, vector<1x4x196xf32> -> vector<1x4x196xf32>
    "tpu.trace_stop"() : () -> ()
    %52 = arith.mulf %51, %51 : vector<1x4x196xf32>
    %cst_15 = arith.constant dense<0.000000e+00> : vector<1x4xf32>
    %53 = vector.multi_reduction <add>, %52, %cst_15 [2] : vector<1x4x196xf32> to vector<1x4xf32>
    %54 = vector.shape_cast %53 : vector<1x4xf32> to vector<1x4x1xf32>
    %55 = math.sqrt %54 : vector<1x4x1xf32>
    %56 = vector.broadcast %29 : vector<1x1x1xf32> to vector<1x4x1xf32>
    %57 = arith.mulf %56, %55 : vector<1x4x1xf32>
    %cst_16 = arith.constant 9.99999974E-6 : f32
    %58 = vector.broadcast %cst_16 : f32 to vector<1x4x1xf32>
    %59 = arith.maximumf %57, %58 : vector<1x4x1xf32>
    %cst_17 = arith.constant 1.000000e+00 : f32
    %60 = vector.broadcast %cst_17 : f32 to vector<1x4x1xf32>
    %61 = arith.mulf %60, %59 : vector<1x4x1xf32>
    %cst_18 = arith.constant -1.500000e+01 : f32
    %cst_19 = arith.constant 1.500000e+01 : f32
    %62 = vector.broadcast %cst_18 : f32 to vector<1x4x1xf32>
    %63 = arith.maximumf %62, %61 : vector<1x4x1xf32>
    %64 = vector.broadcast %cst_19 : f32 to vector<1x4x1xf32>
    %65 = arith.minimumf %64, %63 : vector<1x4x1xf32>
    %66 = math.tanh %65 : vector<1x4x1xf32>
    %cst_20 = arith.constant 1.000000e+00 : f32
    %67 = vector.broadcast %cst_20 : f32 to vector<1x4x1xf32>
    %68 = arith.mulf %67, %59 : vector<1x4x1xf32>
    %69 = arith.divf %66, %68 : vector<1x4x1xf32>
    %70 = arith.mulf %69, %57 : vector<1x4x1xf32>
    %cst_21 = arith.constant 9.99999974E-6 : f32
    %71 = vector.broadcast %cst_21 : f32 to vector<1x4x1xf32>
    %72 = arith.maximumf %70, %71 : vector<1x4x1xf32>
    %cst_22 = arith.constant 9.990000e-01 : f32
    %73 = vector.broadcast %cst_22 : f32 to vector<1x4x1xf32>
    %74 = arith.cmpf ogt, %72, %73 : vector<1x4x1xf32>
    %cst_23 = arith.constant 9.990000e-01 : f32
    %75 = vector.broadcast %cst_23 : f32 to vector<1x4x1xf32>
    %76 = arith.divf %75, %72 : vector<1x4x1xf32>
    %cst_24 = arith.constant 1.000000e+00 : f32
    %77 = vector.broadcast %cst_24 : f32 to vector<1x4x1xf32>
    %78 = arith.select %74, %76, %77 : vector<1x4x1xi1>, vector<1x4x1xf32>
    %79 = vector.broadcast %29 : vector<1x1x1xf32> to vector<1x4x1xf32>
    %80 = arith.mulf %79, %69 : vector<1x4x1xf32>
    %81 = arith.mulf %80, %78 : vector<1x4x1xf32>
    %82 = vector.broadcast %81 : vector<1x4x1xf32> to vector<1x4x196xf32>
    %83 = arith.mulf %51, %82 : vector<1x4x196xf32>
    %84 = arith.mulf %70, %78 : vector<1x4x1xf32>
    %85 = arith.mulf %84, %84 : vector<1x4x1xf32>
    %c0_i32 = arith.constant 0 : i32
    %86 = arith.cmpi eq, %arg1, %c0_i32 : i32
    %87 = arith.extui %86 : i1 to i32
    %c0_i32_25 = arith.constant 0 : i32
    %88 = arith.cmpi ne, %87, %c0_i32_25 : i32
    scf.if %88 {
      %c0_177 = arith.constant 0 : index
      %c0_178 = arith.constant 0 : index
      %c0_179 = arith.constant 0 : index
      %536 = vector.load %arg5[%c0_177, %c0_178, %c0_179] : memref<1x4x196xf32, #tpu.memory_space<vmem>>, vector<1x4x196xf32>
      tpu.vector_store %arg5[%c0_177, %c0_178, %c0_179], %83 {strides = array<i32>} : memref<1x4x196xf32, #tpu.memory_space<vmem>>, vector<1x4x196xf32>,
      %c0_180 = arith.constant 0 : index
      %c0_181 = arith.constant 0 : index
      %c0_182 = arith.constant 0 : index
      %537 = vector.load %arg6[%c0_180, %c0_181, %c0_182] : memref<1x4x1xf32, #tpu.memory_space<vmem>>, vector<1x4x1xf32>
      tpu.vector_store %arg6[%c0_180, %c0_181, %c0_182], %85 {strides = array<i32>} : memref<1x4x1xf32, #tpu.memory_space<vmem>>, vector<1x4x1xf32>,
    } else {
    }
    %c0_i32_26 = arith.constant 0 : i32
    %89 = arith.cmpi sgt, %arg1, %c0_i32_26 : i32
    %90 = arith.extui %89 : i1 to i32
    %c0_i32_27 = arith.constant 0 : i32
    %91 = arith.cmpi ne, %90, %c0_i32_27 : i32
    scf.if %91 {
      %c0_177 = arith.constant 0 : index
      %c0_178 = arith.constant 0 : index
      %c0_179 = arith.constant 0 : index
      %536 = vector.load %arg5[%c0_177, %c0_178, %c0_179] : memref<1x4x196xf32, #tpu.memory_space<vmem>>, vector<1x4x196xf32>
      %c0_180 = arith.constant 0 : index
      %c0_181 = arith.constant 0 : index
      %c0_182 = arith.constant 0 : index
      %537 = vector.load %arg6[%c0_180, %c0_181, %c0_182] : memref<1x4x1xf32, #tpu.memory_space<vmem>>, vector<1x4x1xf32>
      %538 = arith.mulf %536, %83 : vector<1x4x196xf32>
      %cst_183 = arith.constant dense<0.000000e+00> : vector<1x4xf32>
      %539 = vector.multi_reduction <add>, %538, %cst_183 [2] : vector<1x4x196xf32> to vector<1x4xf32>
      %540 = vector.shape_cast %539 : vector<1x4xf32> to vector<1x4x1xf32>
      %cst_184 = arith.constant 2.000000e+00 : f32
      %541 = vector.broadcast %cst_184 : f32 to vector<1x4x1xf32>
      %542 = arith.mulf %541, %540 : vector<1x4x1xf32>
      %cst_185 = arith.constant 1.000000e+00 : f32
      %543 = vector.broadcast %cst_185 : f32 to vector<1x4x1xf32>
      %544 = arith.addf %543, %542 : vector<1x4x1xf32>
      %cst_186 = arith.constant 1.000000e+00 : f32
      %545 = vector.broadcast %cst_186 : f32 to vector<1x4x1xf32>
      %546 = arith.mulf %545, %85 : vector<1x4x1xf32>
      %547 = arith.addf %544, %546 : vector<1x4x1xf32>
      %cst_187 = arith.constant 1.000000e+00 : f32
      %548 = vector.broadcast %cst_187 : f32 to vector<1x4x1xf32>
      %549 = arith.mulf %548, %537 : vector<1x4x1xf32>
      %cst_188 = arith.constant 1.000000e+00 : f32
      %550 = vector.broadcast %cst_188 : f32 to vector<1x4x1xf32>
      %551 = arith.subf %550, %549 : vector<1x4x1xf32>
      %cst_189 = arith.constant 2.000000e+00 : f32
      %552 = vector.broadcast %cst_189 : f32 to vector<1x4x1xf32>
      %553 = arith.mulf %552, %540 : vector<1x4x1xf32>
      %cst_190 = arith.constant 1.000000e+00 : f32
      %554 = vector.broadcast %cst_190 : f32 to vector<1x4x1xf32>
      %555 = arith.addf %554, %553 : vector<1x4x1xf32>
      %cst_191 = arith.constant 1.000000e+00 : f32
      %556 = vector.broadcast %cst_191 : f32 to vector<1x4x1xf32>
      %557 = arith.mulf %556, %537 : vector<1x4x1xf32>
      %558 = arith.mulf %557, %85 : vector<1x4x1xf32>
      %559 = arith.addf %555, %558 : vector<1x4x1xf32>
      %cst_192 = arith.constant 9.99999974E-6 : f32
      %560 = vector.broadcast %cst_192 : f32 to vector<1x4x1xf32>
      %561 = arith.addf %559, %560 : vector<1x4x1xf32>
      %cst_193 = arith.constant 1.000000e+00 : f32
      %562 = vector.broadcast %cst_193 : f32 to vector<1x4x1xf32>
      %563 = arith.divf %562, %561 : vector<1x4x1xf32>
      %564 = arith.mulf %547, %547 : vector<1x4x1xf32>
      %565 = arith.mulf %564, %537 : vector<1x4x1xf32>
      %cst_194 = arith.constant 2.000000e+00 : f32
      %566 = vector.broadcast %cst_194 : f32 to vector<1x4x1xf32>
      %567 = arith.mulf %566, %547 : vector<1x4x1xf32>
      %568 = arith.mulf %567, %551 : vector<1x4x1xf32>
      %569 = arith.mulf %568, %540 : vector<1x4x1xf32>
      %570 = arith.addf %565, %569 : vector<1x4x1xf32>
      %571 = arith.mulf %551, %551 : vector<1x4x1xf32>
      %572 = arith.mulf %571, %85 : vector<1x4x1xf32>
      %573 = arith.addf %570, %572 : vector<1x4x1xf32>
      %574 = arith.mulf %563, %563 : vector<1x4x1xf32>
      %575 = arith.mulf %573, %574 : vector<1x4x1xf32>
      %cst_195 = arith.constant 0.000000e+00 : f32
      %576 = vector.broadcast %cst_195 : f32 to vector<1x4x1xf32>
      %577 = arith.maximumf %575, %576 : vector<1x4x1xf32>
      %578 = math.sqrt %577 : vector<1x4x1xf32>
      %cst_196 = arith.constant 9.99999974E-6 : f32
      %579 = vector.broadcast %cst_196 : f32 to vector<1x4x1xf32>
      %580 = arith.maximumf %578, %579 : vector<1x4x1xf32>
      %cst_197 = arith.constant 9.990000e-01 : f32
      %581 = vector.broadcast %cst_197 : f32 to vector<1x4x1xf32>
      %582 = arith.cmpf ogt, %580, %581 : vector<1x4x1xf32>
      %cst_198 = arith.constant 9.990000e-01 : f32
      %583 = vector.broadcast %cst_198 : f32 to vector<1x4x1xf32>
      %584 = arith.divf %583, %580 : vector<1x4x1xf32>
      %cst_199 = arith.constant 1.000000e+00 : f32
      %585 = vector.broadcast %cst_199 : f32 to vector<1x4x1xf32>
      %586 = arith.select %582, %584, %585 : vector<1x4x1xi1>, vector<1x4x1xf32>
      %587 = vector.broadcast %547 : vector<1x4x1xf32> to vector<1x4x196xf32>
      %588 = arith.mulf %587, %536 : vector<1x4x196xf32>
      %589 = vector.broadcast %551 : vector<1x4x1xf32> to vector<1x4x196xf32>
      %590 = arith.mulf %589, %83 : vector<1x4x196xf32>
      %591 = arith.addf %588, %590 : vector<1x4x196xf32>
      %592 = arith.mulf %563, %586 : vector<1x4x1xf32>
      %593 = vector.broadcast %592 : vector<1x4x1xf32> to vector<1x4x196xf32>
      %594 = arith.mulf %591, %593 : vector<1x4x196xf32>
      %c0_200 = arith.constant 0 : index
      %c0_201 = arith.constant 0 : index
      %c0_202 = arith.constant 0 : index
      %595 = vector.load %arg5[%c0_200, %c0_201, %c0_202] : memref<1x4x196xf32, #tpu.memory_space<vmem>>, vector<1x4x196xf32>
      tpu.vector_store %arg5[%c0_200, %c0_201, %c0_202], %594 {strides = array<i32>} : memref<1x4x196xf32, #tpu.memory_space<vmem>>, vector<1x4x196xf32>,
      %596 = arith.mulf %586, %586 : vector<1x4x1xf32>
      %597 = arith.mulf %577, %596 : vector<1x4x1xf32>
      %c0_203 = arith.constant 0 : index
      %c0_204 = arith.constant 0 : index
      %c0_205 = arith.constant 0 : index
      %598 = vector.load %arg6[%c0_203, %c0_204, %c0_205] : memref<1x4x1xf32, #tpu.memory_space<vmem>>, vector<1x4x1xf32>
      tpu.vector_store %arg6[%c0_203, %c0_204, %c0_205], %597 {strides = array<i32>} : memref<1x4x1xf32, #tpu.memory_space<vmem>>, vector<1x4x1xf32>,
    } else {
    }
    %92 = vector.extract_strided_slice %0 {offsets = [0, 1, 0, 0], sizes = [1, 1, 16, 16], strides = [1, 1, 1, 1]} : vector<1x4x16x16xf32> to vector<1x1x16x16xf32>
    %93 = vector.shape_cast %92 : vector<1x1x16x16xf32> to vector<1x16x16xf32>
    %94 = vector.extract_strided_slice %1 {offsets = [1, 0, 0], sizes = [1, 4, 9], strides = [1, 1, 1]} : vector<4x4x9xf32> to vector<1x4x9xf32>
    %95 = vector.shape_cast %94 : vector<1x4x9xf32> to vector<4x9xf32>
    %96 = arith.mulf %93, %93 : vector<1x16x16xf32>
    %cst_28 = arith.constant dense<0.000000e+00> : vector<1xf32>
    %97 = vector.multi_reduction <add>, %96, %cst_28 [1, 2] : vector<1x16x16xf32> to vector<1xf32>
    %98 = vector.shape_cast %97 : vector<1xf32> to vector<1x1x1xf32>
    %99 = math.sqrt %98 : vector<1x1x1xf32>
    %cst_29 = arith.constant 9.99999974E-6 : f32
    %100 = vector.broadcast %cst_29 : f32 to vector<1x1x1xf32>
    %101 = arith.maximumf %99, %100 : vector<1x1x1xf32>
    %cst_30 = arith.constant 1.000000e+00 : f32
    %102 = vector.broadcast %cst_30 : f32 to vector<1x1x1xf32>
    %103 = arith.mulf %102, %101 : vector<1x1x1xf32>
    %cst_31 = arith.constant -0.999989986 : f32
    %cst_32 = arith.constant 0.999989986 : f32
    %104 = vector.broadcast %cst_31 : f32 to vector<1x1x1xf32>
    %105 = arith.maximumf %104, %103 : vector<1x1x1xf32>
    %106 = vector.broadcast %cst_32 : f32 to vector<1x1x1xf32>
    %107 = arith.minimumf %106, %105 : vector<1x1x1xf32>
    %cst_33 = arith.constant 1.000000e+00 : f32
    %108 = vector.broadcast %cst_33 : f32 to vector<1x1x1xf32>
    %109 = arith.addf %108, %107 : vector<1x1x1xf32>
    %110 = math.log %109 : vector<1x1x1xf32>
    %cst_34 = arith.constant 1.000000e+00 : f32
    %111 = vector.broadcast %cst_34 : f32 to vector<1x1x1xf32>
    %112 = arith.subf %111, %107 : vector<1x1x1xf32>
    %113 = math.log %112 : vector<1x1x1xf32>
    %114 = arith.subf %110, %113 : vector<1x1x1xf32>
    %cst_35 = arith.constant 5.000000e-01 : f32
    %115 = vector.broadcast %cst_35 : f32 to vector<1x1x1xf32>
    %116 = arith.mulf %115, %114 : vector<1x1x1xf32>
    %cst_36 = arith.constant 1.000000e+00 : f32
    %117 = vector.broadcast %cst_36 : f32 to vector<1x1x1xf32>
    %118 = arith.mulf %117, %101 : vector<1x1x1xf32>
    %119 = arith.divf %116, %118 : vector<1x1x1xf32>
    %120 = vector.extract_strided_slice %93 {offsets = [0, 0, 0], sizes = [1, 14, 14], strides = [1, 1, 1]} : vector<1x16x16xf32> to vector<1x14x14xf32>
    %121 = vector.extract_strided_slice %93 {offsets = [0, 0, 1], sizes = [1, 14, 14], strides = [1, 1, 1]} : vector<1x16x16xf32> to vector<1x14x14xf32>
    %122 = vector.extract_strided_slice %93 {offsets = [0, 0, 2], sizes = [1, 14, 14], strides = [1, 1, 1]} : vector<1x16x16xf32> to vector<1x14x14xf32>
    %123 = vector.extract_strided_slice %93 {offsets = [0, 1, 0], sizes = [1, 14, 14], strides = [1, 1, 1]} : vector<1x16x16xf32> to vector<1x14x14xf32>
    %124 = vector.extract_strided_slice %93 {offsets = [0, 1, 1], sizes = [1, 14, 14], strides = [1, 1, 1]} : vector<1x16x16xf32> to vector<1x14x14xf32>
    %125 = vector.extract_strided_slice %93 {offsets = [0, 1, 2], sizes = [1, 14, 14], strides = [1, 1, 1]} : vector<1x16x16xf32> to vector<1x14x14xf32>
    %126 = vector.extract_strided_slice %93 {offsets = [0, 2, 0], sizes = [1, 14, 14], strides = [1, 1, 1]} : vector<1x16x16xf32> to vector<1x14x14xf32>
    %127 = vector.extract_strided_slice %93 {offsets = [0, 2, 1], sizes = [1, 14, 14], strides = [1, 1, 1]} : vector<1x16x16xf32> to vector<1x14x14xf32>
    %128 = vector.extract_strided_slice %93 {offsets = [0, 2, 2], sizes = [1, 14, 14], strides = [1, 1, 1]} : vector<1x16x16xf32> to vector<1x14x14xf32>
    %129 = vector.shape_cast %120 : vector<1x14x14xf32> to vector<1x1x14x14xf32>
    %130 = vector.shape_cast %121 : vector<1x14x14xf32> to vector<1x1x14x14xf32>
    %131 = vector.shape_cast %122 : vector<1x14x14xf32> to vector<1x1x14x14xf32>
    %132 = vector.shape_cast %123 : vector<1x14x14xf32> to vector<1x1x14x14xf32>
    %133 = vector.shape_cast %124 : vector<1x14x14xf32> to vector<1x1x14x14xf32>
    %134 = vector.shape_cast %125 : vector<1x14x14xf32> to vector<1x1x14x14xf32>
    %135 = vector.shape_cast %126 : vector<1x14x14xf32> to vector<1x1x14x14xf32>
    %136 = vector.shape_cast %127 : vector<1x14x14xf32> to vector<1x1x14x14xf32>
    %137 = vector.shape_cast %128 : vector<1x14x14xf32> to vector<1x1x14x14xf32>
    %138 = tpu.concatenate %129, %130, %131, %132, %133, %134, %135, %136, %137 in 1 : vector<1x1x14x14xf32>, vector<1x1x14x14xf32>, vector<1x1x14x14xf32>, vector<1x1x14x14xf32>, vector<1x1x14x14xf32>, vector<1x1x14x14xf32>, vector<1x1x14x14xf32>, vector<1x1x14x14xf32>, vector<1x1x14x14xf32> -> vector<1x9x14x14xf32>
    %139 = vector.shape_cast %138 : vector<1x9x14x14xf32> to vector<1x9x196xf32>
    %140 = vector.shape_cast %95 : vector<4x9xf32> to vector<1x4x9xf32>
    "tpu.trace_start"() <{level = 10 : i32, message = "boq,bqp->bop"}> : () -> ()
    %cst_37 = arith.constant dense<0.000000e+00> : vector<1x4x196xf32>
    %141 = tpu.matmul %140, %139, %cst_37 {dimension_numbers = #tpu.dot_dimension_numbers<[2], [1], [1], [2], [0, 0, 0, 1, 1, 2], [0], [0]>} : vector<1x4x9xf32>, vector<1x9x196xf32>, vector<1x4x196xf32> -> vector<1x4x196xf32>
    "tpu.trace_stop"() : () -> ()
    %142 = arith.mulf %141, %141 : vector<1x4x196xf32>
    %cst_38 = arith.constant dense<0.000000e+00> : vector<1x4xf32>
    %143 = vector.multi_reduction <add>, %142, %cst_38 [2] : vector<1x4x196xf32> to vector<1x4xf32>
    %144 = vector.shape_cast %143 : vector<1x4xf32> to vector<1x4x1xf32>
    %145 = math.sqrt %144 : vector<1x4x1xf32>
    %146 = vector.broadcast %119 : vector<1x1x1xf32> to vector<1x4x1xf32>
    %147 = arith.mulf %146, %145 : vector<1x4x1xf32>
    %cst_39 = arith.constant 9.99999974E-6 : f32
    %148 = vector.broadcast %cst_39 : f32 to vector<1x4x1xf32>
    %149 = arith.maximumf %147, %148 : vector<1x4x1xf32>
    %cst_40 = arith.constant 1.000000e+00 : f32
    %150 = vector.broadcast %cst_40 : f32 to vector<1x4x1xf32>
    %151 = arith.mulf %150, %149 : vector<1x4x1xf32>
    %cst_41 = arith.constant -1.500000e+01 : f32
    %cst_42 = arith.constant 1.500000e+01 : f32
    %152 = vector.broadcast %cst_41 : f32 to vector<1x4x1xf32>
    %153 = arith.maximumf %152, %151 : vector<1x4x1xf32>
    %154 = vector.broadcast %cst_42 : f32 to vector<1x4x1xf32>
    %155 = arith.minimumf %154, %153 : vector<1x4x1xf32>
    %156 = math.tanh %155 : vector<1x4x1xf32>
    %cst_43 = arith.constant 1.000000e+00 : f32
    %157 = vector.broadcast %cst_43 : f32 to vector<1x4x1xf32>
    %158 = arith.mulf %157, %149 : vector<1x4x1xf32>
    %159 = arith.divf %156, %158 : vector<1x4x1xf32>
    %160 = arith.mulf %159, %147 : vector<1x4x1xf32>
    %cst_44 = arith.constant 9.99999974E-6 : f32
    %161 = vector.broadcast %cst_44 : f32 to vector<1x4x1xf32>
    %162 = arith.maximumf %160, %161 : vector<1x4x1xf32>
    %cst_45 = arith.constant 9.990000e-01 : f32
    %163 = vector.broadcast %cst_45 : f32 to vector<1x4x1xf32>
    %164 = arith.cmpf ogt, %162, %163 : vector<1x4x1xf32>
    %cst_46 = arith.constant 9.990000e-01 : f32
    %165 = vector.broadcast %cst_46 : f32 to vector<1x4x1xf32>
    %166 = arith.divf %165, %162 : vector<1x4x1xf32>
    %cst_47 = arith.constant 1.000000e+00 : f32
    %167 = vector.broadcast %cst_47 : f32 to vector<1x4x1xf32>
    %168 = arith.select %164, %166, %167 : vector<1x4x1xi1>, vector<1x4x1xf32>
    %169 = vector.broadcast %119 : vector<1x1x1xf32> to vector<1x4x1xf32>
    %170 = arith.mulf %169, %159 : vector<1x4x1xf32>
    %171 = arith.mulf %170, %168 : vector<1x4x1xf32>
    %172 = vector.broadcast %171 : vector<1x4x1xf32> to vector<1x4x196xf32>
    %173 = arith.mulf %141, %172 : vector<1x4x196xf32>
    %174 = arith.mulf %160, %168 : vector<1x4x1xf32>
    %175 = arith.mulf %174, %174 : vector<1x4x1xf32>
    %c0_48 = arith.constant 0 : index
    %c0_49 = arith.constant 0 : index
    %c0_50 = arith.constant 0 : index
    %176 = vector.load %arg5[%c0_48, %c0_49, %c0_50] : memref<1x4x196xf32, #tpu.memory_space<vmem>>, vector<1x4x196xf32>
    %c0_51 = arith.constant 0 : index
    %c0_52 = arith.constant 0 : index
    %c0_53 = arith.constant 0 : index
    %177 = vector.load %arg6[%c0_51, %c0_52, %c0_53] : memref<1x4x1xf32, #tpu.memory_space<vmem>>, vector<1x4x1xf32>
    %178 = arith.mulf %176, %173 : vector<1x4x196xf32>
    %cst_54 = arith.constant dense<0.000000e+00> : vector<1x4xf32>
    %179 = vector.multi_reduction <add>, %178, %cst_54 [2] : vector<1x4x196xf32> to vector<1x4xf32>
    %180 = vector.shape_cast %179 : vector<1x4xf32> to vector<1x4x1xf32>
    %cst_55 = arith.constant 2.000000e+00 : f32
    %181 = vector.broadcast %cst_55 : f32 to vector<1x4x1xf32>
    %182 = arith.mulf %181, %180 : vector<1x4x1xf32>
    %cst_56 = arith.constant 1.000000e+00 : f32
    %183 = vector.broadcast %cst_56 : f32 to vector<1x4x1xf32>
    %184 = arith.addf %183, %182 : vector<1x4x1xf32>
    %cst_57 = arith.constant 1.000000e+00 : f32
    %185 = vector.broadcast %cst_57 : f32 to vector<1x4x1xf32>
    %186 = arith.mulf %185, %175 : vector<1x4x1xf32>
    %187 = arith.addf %184, %186 : vector<1x4x1xf32>
    %cst_58 = arith.constant 1.000000e+00 : f32
    %188 = vector.broadcast %cst_58 : f32 to vector<1x4x1xf32>
    %189 = arith.mulf %188, %177 : vector<1x4x1xf32>
    %cst_59 = arith.constant 1.000000e+00 : f32
    %190 = vector.broadcast %cst_59 : f32 to vector<1x4x1xf32>
    %191 = arith.subf %190, %189 : vector<1x4x1xf32>
    %cst_60 = arith.constant 2.000000e+00 : f32
    %192 = vector.broadcast %cst_60 : f32 to vector<1x4x1xf32>
    %193 = arith.mulf %192, %180 : vector<1x4x1xf32>
    %cst_61 = arith.constant 1.000000e+00 : f32
    %194 = vector.broadcast %cst_61 : f32 to vector<1x4x1xf32>
    %195 = arith.addf %194, %193 : vector<1x4x1xf32>
    %cst_62 = arith.constant 1.000000e+00 : f32
    %196 = vector.broadcast %cst_62 : f32 to vector<1x4x1xf32>
    %197 = arith.mulf %196, %177 : vector<1x4x1xf32>
    %198 = arith.mulf %197, %175 : vector<1x4x1xf32>
    %199 = arith.addf %195, %198 : vector<1x4x1xf32>
    %cst_63 = arith.constant 9.99999974E-6 : f32
    %200 = vector.broadcast %cst_63 : f32 to vector<1x4x1xf32>
    %201 = arith.addf %199, %200 : vector<1x4x1xf32>
    %cst_64 = arith.constant 1.000000e+00 : f32
    %202 = vector.broadcast %cst_64 : f32 to vector<1x4x1xf32>
    %203 = arith.divf %202, %201 : vector<1x4x1xf32>
    %204 = arith.mulf %187, %187 : vector<1x4x1xf32>
    %205 = arith.mulf %204, %177 : vector<1x4x1xf32>
    %cst_65 = arith.constant 2.000000e+00 : f32
    %206 = vector.broadcast %cst_65 : f32 to vector<1x4x1xf32>
    %207 = arith.mulf %206, %187 : vector<1x4x1xf32>
    %208 = arith.mulf %207, %191 : vector<1x4x1xf32>
    %209 = arith.mulf %208, %180 : vector<1x4x1xf32>
    %210 = arith.addf %205, %209 : vector<1x4x1xf32>
    %211 = arith.mulf %191, %191 : vector<1x4x1xf32>
    %212 = arith.mulf %211, %175 : vector<1x4x1xf32>
    %213 = arith.addf %210, %212 : vector<1x4x1xf32>
    %214 = arith.mulf %203, %203 : vector<1x4x1xf32>
    %215 = arith.mulf %213, %214 : vector<1x4x1xf32>
    %cst_66 = arith.constant 0.000000e+00 : f32
    %216 = vector.broadcast %cst_66 : f32 to vector<1x4x1xf32>
    %217 = arith.maximumf %215, %216 : vector<1x4x1xf32>
    %218 = math.sqrt %217 : vector<1x4x1xf32>
    %cst_67 = arith.constant 9.99999974E-6 : f32
    %219 = vector.broadcast %cst_67 : f32 to vector<1x4x1xf32>
    %220 = arith.maximumf %218, %219 : vector<1x4x1xf32>
    %cst_68 = arith.constant 9.990000e-01 : f32
    %221 = vector.broadcast %cst_68 : f32 to vector<1x4x1xf32>
    %222 = arith.cmpf ogt, %220, %221 : vector<1x4x1xf32>
    %cst_69 = arith.constant 9.990000e-01 : f32
    %223 = vector.broadcast %cst_69 : f32 to vector<1x4x1xf32>
    %224 = arith.divf %223, %220 : vector<1x4x1xf32>
    %cst_70 = arith.constant 1.000000e+00 : f32
    %225 = vector.broadcast %cst_70 : f32 to vector<1x4x1xf32>
    %226 = arith.select %222, %224, %225 : vector<1x4x1xi1>, vector<1x4x1xf32>
    %227 = vector.broadcast %187 : vector<1x4x1xf32> to vector<1x4x196xf32>
    %228 = arith.mulf %227, %176 : vector<1x4x196xf32>
    %229 = vector.broadcast %191 : vector<1x4x1xf32> to vector<1x4x196xf32>
    %230 = arith.mulf %229, %173 : vector<1x4x196xf32>
    %231 = arith.addf %228, %230 : vector<1x4x196xf32>
    %232 = arith.mulf %203, %226 : vector<1x4x1xf32>
    %233 = vector.broadcast %232 : vector<1x4x1xf32> to vector<1x4x196xf32>
    %234 = arith.mulf %231, %233 : vector<1x4x196xf32>
    %c0_71 = arith.constant 0 : index
    %c0_72 = arith.constant 0 : index
    %c0_73 = arith.constant 0 : index
    %235 = vector.load %arg5[%c0_71, %c0_72, %c0_73] : memref<1x4x196xf32, #tpu.memory_space<vmem>>, vector<1x4x196xf32>
    tpu.vector_store %arg5[%c0_71, %c0_72, %c0_73], %234 {strides = array<i32>} : memref<1x4x196xf32, #tpu.memory_space<vmem>>, vector<1x4x196xf32>,
    %236 = arith.mulf %226, %226 : vector<1x4x1xf32>
    %237 = arith.mulf %217, %236 : vector<1x4x1xf32>
    %c0_74 = arith.constant 0 : index
    %c0_75 = arith.constant 0 : index
    %c0_76 = arith.constant 0 : index
    %238 = vector.load %arg6[%c0_74, %c0_75, %c0_76] : memref<1x4x1xf32, #tpu.memory_space<vmem>>, vector<1x4x1xf32>
    tpu.vector_store %arg6[%c0_74, %c0_75, %c0_76], %237 {strides = array<i32>} : memref<1x4x1xf32, #tpu.memory_space<vmem>>, vector<1x4x1xf32>,
    %239 = vector.extract_strided_slice %0 {offsets = [0, 2, 0, 0], sizes = [1, 1, 16, 16], strides = [1, 1, 1, 1]} : vector<1x4x16x16xf32> to vector<1x1x16x16xf32>
    %240 = vector.shape_cast %239 : vector<1x1x16x16xf32> to vector<1x16x16xf32>
    %241 = vector.extract_strided_slice %1 {offsets = [2, 0, 0], sizes = [1, 4, 9], strides = [1, 1, 1]} : vector<4x4x9xf32> to vector<1x4x9xf32>
    %242 = vector.shape_cast %241 : vector<1x4x9xf32> to vector<4x9xf32>
    %243 = arith.mulf %240, %240 : vector<1x16x16xf32>
    %cst_77 = arith.constant dense<0.000000e+00> : vector<1xf32>
    %244 = vector.multi_reduction <add>, %243, %cst_77 [1, 2] : vector<1x16x16xf32> to vector<1xf32>
    %245 = vector.shape_cast %244 : vector<1xf32> to vector<1x1x1xf32>
    %246 = math.sqrt %245 : vector<1x1x1xf32>
    %cst_78 = arith.constant 9.99999974E-6 : f32
    %247 = vector.broadcast %cst_78 : f32 to vector<1x1x1xf32>
    %248 = arith.maximumf %246, %247 : vector<1x1x1xf32>
    %cst_79 = arith.constant 1.000000e+00 : f32
    %249 = vector.broadcast %cst_79 : f32 to vector<1x1x1xf32>
    %250 = arith.mulf %249, %248 : vector<1x1x1xf32>
    %cst_80 = arith.constant -0.999989986 : f32
    %cst_81 = arith.constant 0.999989986 : f32
    %251 = vector.broadcast %cst_80 : f32 to vector<1x1x1xf32>
    %252 = arith.maximumf %251, %250 : vector<1x1x1xf32>
    %253 = vector.broadcast %cst_81 : f32 to vector<1x1x1xf32>
    %254 = arith.minimumf %253, %252 : vector<1x1x1xf32>
    %cst_82 = arith.constant 1.000000e+00 : f32
    %255 = vector.broadcast %cst_82 : f32 to vector<1x1x1xf32>
    %256 = arith.addf %255, %254 : vector<1x1x1xf32>
    %257 = math.log %256 : vector<1x1x1xf32>
    %cst_83 = arith.constant 1.000000e+00 : f32
    %258 = vector.broadcast %cst_83 : f32 to vector<1x1x1xf32>
    %259 = arith.subf %258, %254 : vector<1x1x1xf32>
    %260 = math.log %259 : vector<1x1x1xf32>
    %261 = arith.subf %257, %260 : vector<1x1x1xf32>
    %cst_84 = arith.constant 5.000000e-01 : f32
    %262 = vector.broadcast %cst_84 : f32 to vector<1x1x1xf32>
    %263 = arith.mulf %262, %261 : vector<1x1x1xf32>
    %cst_85 = arith.constant 1.000000e+00 : f32
    %264 = vector.broadcast %cst_85 : f32 to vector<1x1x1xf32>
    %265 = arith.mulf %264, %248 : vector<1x1x1xf32>
    %266 = arith.divf %263, %265 : vector<1x1x1xf32>
    %267 = vector.extract_strided_slice %240 {offsets = [0, 0, 0], sizes = [1, 14, 14], strides = [1, 1, 1]} : vector<1x16x16xf32> to vector<1x14x14xf32>
    %268 = vector.extract_strided_slice %240 {offsets = [0, 0, 1], sizes = [1, 14, 14], strides = [1, 1, 1]} : vector<1x16x16xf32> to vector<1x14x14xf32>
    %269 = vector.extract_strided_slice %240 {offsets = [0, 0, 2], sizes = [1, 14, 14], strides = [1, 1, 1]} : vector<1x16x16xf32> to vector<1x14x14xf32>
    %270 = vector.extract_strided_slice %240 {offsets = [0, 1, 0], sizes = [1, 14, 14], strides = [1, 1, 1]} : vector<1x16x16xf32> to vector<1x14x14xf32>
    %271 = vector.extract_strided_slice %240 {offsets = [0, 1, 1], sizes = [1, 14, 14], strides = [1, 1, 1]} : vector<1x16x16xf32> to vector<1x14x14xf32>
    %272 = vector.extract_strided_slice %240 {offsets = [0, 1, 2], sizes = [1, 14, 14], strides = [1, 1, 1]} : vector<1x16x16xf32> to vector<1x14x14xf32>
    %273 = vector.extract_strided_slice %240 {offsets = [0, 2, 0], sizes = [1, 14, 14], strides = [1, 1, 1]} : vector<1x16x16xf32> to vector<1x14x14xf32>
    %274 = vector.extract_strided_slice %240 {offsets = [0, 2, 1], sizes = [1, 14, 14], strides = [1, 1, 1]} : vector<1x16x16xf32> to vector<1x14x14xf32>
    %275 = vector.extract_strided_slice %240 {offsets = [0, 2, 2], sizes = [1, 14, 14], strides = [1, 1, 1]} : vector<1x16x16xf32> to vector<1x14x14xf32>
    %276 = vector.shape_cast %267 : vector<1x14x14xf32> to vector<1x1x14x14xf32>
    %277 = vector.shape_cast %268 : vector<1x14x14xf32> to vector<1x1x14x14xf32>
    %278 = vector.shape_cast %269 : vector<1x14x14xf32> to vector<1x1x14x14xf32>
    %279 = vector.shape_cast %270 : vector<1x14x14xf32> to vector<1x1x14x14xf32>
    %280 = vector.shape_cast %271 : vector<1x14x14xf32> to vector<1x1x14x14xf32>
    %281 = vector.shape_cast %272 : vector<1x14x14xf32> to vector<1x1x14x14xf32>
    %282 = vector.shape_cast %273 : vector<1x14x14xf32> to vector<1x1x14x14xf32>
    %283 = vector.shape_cast %274 : vector<1x14x14xf32> to vector<1x1x14x14xf32>
    %284 = vector.shape_cast %275 : vector<1x14x14xf32> to vector<1x1x14x14xf32>
    %285 = tpu.concatenate %276, %277, %278, %279, %280, %281, %282, %283, %284 in 1 : vector<1x1x14x14xf32>, vector<1x1x14x14xf32>, vector<1x1x14x14xf32>, vector<1x1x14x14xf32>, vector<1x1x14x14xf32>, vector<1x1x14x14xf32>, vector<1x1x14x14xf32>, vector<1x1x14x14xf32>, vector<1x1x14x14xf32> -> vector<1x9x14x14xf32>
    %286 = vector.shape_cast %285 : vector<1x9x14x14xf32> to vector<1x9x196xf32>
    %287 = vector.shape_cast %242 : vector<4x9xf32> to vector<1x4x9xf32>
    "tpu.trace_start"() <{level = 10 : i32, message = "boq,bqp->bop"}> : () -> ()
    %cst_86 = arith.constant dense<0.000000e+00> : vector<1x4x196xf32>
    %288 = tpu.matmul %287, %286, %cst_86 {dimension_numbers = #tpu.dot_dimension_numbers<[2], [1], [1], [2], [0, 0, 0, 1, 1, 2], [0], [0]>} : vector<1x4x9xf32>, vector<1x9x196xf32>, vector<1x4x196xf32> -> vector<1x4x196xf32>
    "tpu.trace_stop"() : () -> ()
    %289 = arith.mulf %288, %288 : vector<1x4x196xf32>
    %cst_87 = arith.constant dense<0.000000e+00> : vector<1x4xf32>
    %290 = vector.multi_reduction <add>, %289, %cst_87 [2] : vector<1x4x196xf32> to vector<1x4xf32>
    %291 = vector.shape_cast %290 : vector<1x4xf32> to vector<1x4x1xf32>
    %292 = math.sqrt %291 : vector<1x4x1xf32>
    %293 = vector.broadcast %266 : vector<1x1x1xf32> to vector<1x4x1xf32>
    %294 = arith.mulf %293, %292 : vector<1x4x1xf32>
    %cst_88 = arith.constant 9.99999974E-6 : f32
    %295 = vector.broadcast %cst_88 : f32 to vector<1x4x1xf32>
    %296 = arith.maximumf %294, %295 : vector<1x4x1xf32>
    %cst_89 = arith.constant 1.000000e+00 : f32
    %297 = vector.broadcast %cst_89 : f32 to vector<1x4x1xf32>
    %298 = arith.mulf %297, %296 : vector<1x4x1xf32>
    %cst_90 = arith.constant -1.500000e+01 : f32
    %cst_91 = arith.constant 1.500000e+01 : f32
    %299 = vector.broadcast %cst_90 : f32 to vector<1x4x1xf32>
    %300 = arith.maximumf %299, %298 : vector<1x4x1xf32>
    %301 = vector.broadcast %cst_91 : f32 to vector<1x4x1xf32>
    %302 = arith.minimumf %301, %300 : vector<1x4x1xf32>
    %303 = math.tanh %302 : vector<1x4x1xf32>
    %cst_92 = arith.constant 1.000000e+00 : f32
    %304 = vector.broadcast %cst_92 : f32 to vector<1x4x1xf32>
    %305 = arith.mulf %304, %296 : vector<1x4x1xf32>
    %306 = arith.divf %303, %305 : vector<1x4x1xf32>
    %307 = arith.mulf %306, %294 : vector<1x4x1xf32>
    %cst_93 = arith.constant 9.99999974E-6 : f32
    %308 = vector.broadcast %cst_93 : f32 to vector<1x4x1xf32>
    %309 = arith.maximumf %307, %308 : vector<1x4x1xf32>
    %cst_94 = arith.constant 9.990000e-01 : f32
    %310 = vector.broadcast %cst_94 : f32 to vector<1x4x1xf32>
    %311 = arith.cmpf ogt, %309, %310 : vector<1x4x1xf32>
    %cst_95 = arith.constant 9.990000e-01 : f32
    %312 = vector.broadcast %cst_95 : f32 to vector<1x4x1xf32>
    %313 = arith.divf %312, %309 : vector<1x4x1xf32>
    %cst_96 = arith.constant 1.000000e+00 : f32
    %314 = vector.broadcast %cst_96 : f32 to vector<1x4x1xf32>
    %315 = arith.select %311, %313, %314 : vector<1x4x1xi1>, vector<1x4x1xf32>
    %316 = vector.broadcast %266 : vector<1x1x1xf32> to vector<1x4x1xf32>
    %317 = arith.mulf %316, %306 : vector<1x4x1xf32>
    %318 = arith.mulf %317, %315 : vector<1x4x1xf32>
    %319 = vector.broadcast %318 : vector<1x4x1xf32> to vector<1x4x196xf32>
    %320 = arith.mulf %288, %319 : vector<1x4x196xf32>
    %321 = arith.mulf %307, %315 : vector<1x4x1xf32>
    %322 = arith.mulf %321, %321 : vector<1x4x1xf32>
    %c0_97 = arith.constant 0 : index
    %c0_98 = arith.constant 0 : index
    %c0_99 = arith.constant 0 : index
    %323 = vector.load %arg5[%c0_97, %c0_98, %c0_99] : memref<1x4x196xf32, #tpu.memory_space<vmem>>, vector<1x4x196xf32>
    %c0_100 = arith.constant 0 : index
    %c0_101 = arith.constant 0 : index
    %c0_102 = arith.constant 0 : index
    %324 = vector.load %arg6[%c0_100, %c0_101, %c0_102] : memref<1x4x1xf32, #tpu.memory_space<vmem>>, vector<1x4x1xf32>
    %325 = arith.mulf %323, %320 : vector<1x4x196xf32>
    %cst_103 = arith.constant dense<0.000000e+00> : vector<1x4xf32>
    %326 = vector.multi_reduction <add>, %325, %cst_103 [2] : vector<1x4x196xf32> to vector<1x4xf32>
    %327 = vector.shape_cast %326 : vector<1x4xf32> to vector<1x4x1xf32>
    %cst_104 = arith.constant 2.000000e+00 : f32
    %328 = vector.broadcast %cst_104 : f32 to vector<1x4x1xf32>
    %329 = arith.mulf %328, %327 : vector<1x4x1xf32>
    %cst_105 = arith.constant 1.000000e+00 : f32
    %330 = vector.broadcast %cst_105 : f32 to vector<1x4x1xf32>
    %331 = arith.addf %330, %329 : vector<1x4x1xf32>
    %cst_106 = arith.constant 1.000000e+00 : f32
    %332 = vector.broadcast %cst_106 : f32 to vector<1x4x1xf32>
    %333 = arith.mulf %332, %322 : vector<1x4x1xf32>
    %334 = arith.addf %331, %333 : vector<1x4x1xf32>
    %cst_107 = arith.constant 1.000000e+00 : f32
    %335 = vector.broadcast %cst_107 : f32 to vector<1x4x1xf32>
    %336 = arith.mulf %335, %324 : vector<1x4x1xf32>
    %cst_108 = arith.constant 1.000000e+00 : f32
    %337 = vector.broadcast %cst_108 : f32 to vector<1x4x1xf32>
    %338 = arith.subf %337, %336 : vector<1x4x1xf32>
    %cst_109 = arith.constant 2.000000e+00 : f32
    %339 = vector.broadcast %cst_109 : f32 to vector<1x4x1xf32>
    %340 = arith.mulf %339, %327 : vector<1x4x1xf32>
    %cst_110 = arith.constant 1.000000e+00 : f32
    %341 = vector.broadcast %cst_110 : f32 to vector<1x4x1xf32>
    %342 = arith.addf %341, %340 : vector<1x4x1xf32>
    %cst_111 = arith.constant 1.000000e+00 : f32
    %343 = vector.broadcast %cst_111 : f32 to vector<1x4x1xf32>
    %344 = arith.mulf %343, %324 : vector<1x4x1xf32>
    %345 = arith.mulf %344, %322 : vector<1x4x1xf32>
    %346 = arith.addf %342, %345 : vector<1x4x1xf32>
    %cst_112 = arith.constant 9.99999974E-6 : f32
    %347 = vector.broadcast %cst_112 : f32 to vector<1x4x1xf32>
    %348 = arith.addf %346, %347 : vector<1x4x1xf32>
    %cst_113 = arith.constant 1.000000e+00 : f32
    %349 = vector.broadcast %cst_113 : f32 to vector<1x4x1xf32>
    %350 = arith.divf %349, %348 : vector<1x4x1xf32>
    %351 = arith.mulf %334, %334 : vector<1x4x1xf32>
    %352 = arith.mulf %351, %324 : vector<1x4x1xf32>
    %cst_114 = arith.constant 2.000000e+00 : f32
    %353 = vector.broadcast %cst_114 : f32 to vector<1x4x1xf32>
    %354 = arith.mulf %353, %334 : vector<1x4x1xf32>
    %355 = arith.mulf %354, %338 : vector<1x4x1xf32>
    %356 = arith.mulf %355, %327 : vector<1x4x1xf32>
    %357 = arith.addf %352, %356 : vector<1x4x1xf32>
    %358 = arith.mulf %338, %338 : vector<1x4x1xf32>
    %359 = arith.mulf %358, %322 : vector<1x4x1xf32>
    %360 = arith.addf %357, %359 : vector<1x4x1xf32>
    %361 = arith.mulf %350, %350 : vector<1x4x1xf32>
    %362 = arith.mulf %360, %361 : vector<1x4x1xf32>
    %cst_115 = arith.constant 0.000000e+00 : f32
    %363 = vector.broadcast %cst_115 : f32 to vector<1x4x1xf32>
    %364 = arith.maximumf %362, %363 : vector<1x4x1xf32>
    %365 = math.sqrt %364 : vector<1x4x1xf32>
    %cst_116 = arith.constant 9.99999974E-6 : f32
    %366 = vector.broadcast %cst_116 : f32 to vector<1x4x1xf32>
    %367 = arith.maximumf %365, %366 : vector<1x4x1xf32>
    %cst_117 = arith.constant 9.990000e-01 : f32
    %368 = vector.broadcast %cst_117 : f32 to vector<1x4x1xf32>
    %369 = arith.cmpf ogt, %367, %368 : vector<1x4x1xf32>
    %cst_118 = arith.constant 9.990000e-01 : f32
    %370 = vector.broadcast %cst_118 : f32 to vector<1x4x1xf32>
    %371 = arith.divf %370, %367 : vector<1x4x1xf32>
    %cst_119 = arith.constant 1.000000e+00 : f32
    %372 = vector.broadcast %cst_119 : f32 to vector<1x4x1xf32>
    %373 = arith.select %369, %371, %372 : vector<1x4x1xi1>, vector<1x4x1xf32>
    %374 = vector.broadcast %334 : vector<1x4x1xf32> to vector<1x4x196xf32>
    %375 = arith.mulf %374, %323 : vector<1x4x196xf32>
    %376 = vector.broadcast %338 : vector<1x4x1xf32> to vector<1x4x196xf32>
    %377 = arith.mulf %376, %320 : vector<1x4x196xf32>
    %378 = arith.addf %375, %377 : vector<1x4x196xf32>
    %379 = arith.mulf %350, %373 : vector<1x4x1xf32>
    %380 = vector.broadcast %379 : vector<1x4x1xf32> to vector<1x4x196xf32>
    %381 = arith.mulf %378, %380 : vector<1x4x196xf32>
    %c0_120 = arith.constant 0 : index
    %c0_121 = arith.constant 0 : index
    %c0_122 = arith.constant 0 : index
    %382 = vector.load %arg5[%c0_120, %c0_121, %c0_122] : memref<1x4x196xf32, #tpu.memory_space<vmem>>, vector<1x4x196xf32>
    tpu.vector_store %arg5[%c0_120, %c0_121, %c0_122], %381 {strides = array<i32>} : memref<1x4x196xf32, #tpu.memory_space<vmem>>, vector<1x4x196xf32>,
    %383 = arith.mulf %373, %373 : vector<1x4x1xf32>
    %384 = arith.mulf %364, %383 : vector<1x4x1xf32>
    %c0_123 = arith.constant 0 : index
    %c0_124 = arith.constant 0 : index
    %c0_125 = arith.constant 0 : index
    %385 = vector.load %arg6[%c0_123, %c0_124, %c0_125] : memref<1x4x1xf32, #tpu.memory_space<vmem>>, vector<1x4x1xf32>
    tpu.vector_store %arg6[%c0_123, %c0_124, %c0_125], %384 {strides = array<i32>} : memref<1x4x1xf32, #tpu.memory_space<vmem>>, vector<1x4x1xf32>,
    %386 = vector.extract_strided_slice %0 {offsets = [0, 3, 0, 0], sizes = [1, 1, 16, 16], strides = [1, 1, 1, 1]} : vector<1x4x16x16xf32> to vector<1x1x16x16xf32>
    %387 = vector.shape_cast %386 : vector<1x1x16x16xf32> to vector<1x16x16xf32>
    %388 = vector.extract_strided_slice %1 {offsets = [3, 0, 0], sizes = [1, 4, 9], strides = [1, 1, 1]} : vector<4x4x9xf32> to vector<1x4x9xf32>
    %389 = vector.shape_cast %388 : vector<1x4x9xf32> to vector<4x9xf32>
    %390 = arith.mulf %387, %387 : vector<1x16x16xf32>
    %cst_126 = arith.constant dense<0.000000e+00> : vector<1xf32>
    %391 = vector.multi_reduction <add>, %390, %cst_126 [1, 2] : vector<1x16x16xf32> to vector<1xf32>
    %392 = vector.shape_cast %391 : vector<1xf32> to vector<1x1x1xf32>
    %393 = math.sqrt %392 : vector<1x1x1xf32>
    %cst_127 = arith.constant 9.99999974E-6 : f32
    %394 = vector.broadcast %cst_127 : f32 to vector<1x1x1xf32>
    %395 = arith.maximumf %393, %394 : vector<1x1x1xf32>
    %cst_128 = arith.constant 1.000000e+00 : f32
    %396 = vector.broadcast %cst_128 : f32 to vector<1x1x1xf32>
    %397 = arith.mulf %396, %395 : vector<1x1x1xf32>
    %cst_129 = arith.constant -0.999989986 : f32
    %cst_130 = arith.constant 0.999989986 : f32
    %398 = vector.broadcast %cst_129 : f32 to vector<1x1x1xf32>
    %399 = arith.maximumf %398, %397 : vector<1x1x1xf32>
    %400 = vector.broadcast %cst_130 : f32 to vector<1x1x1xf32>
    %401 = arith.minimumf %400, %399 : vector<1x1x1xf32>
    %cst_131 = arith.constant 1.000000e+00 : f32
    %402 = vector.broadcast %cst_131 : f32 to vector<1x1x1xf32>
    %403 = arith.addf %402, %401 : vector<1x1x1xf32>
    %404 = math.log %403 : vector<1x1x1xf32>
    %cst_132 = arith.constant 1.000000e+00 : f32
    %405 = vector.broadcast %cst_132 : f32 to vector<1x1x1xf32>
    %406 = arith.subf %405, %401 : vector<1x1x1xf32>
    %407 = math.log %406 : vector<1x1x1xf32>
    %408 = arith.subf %404, %407 : vector<1x1x1xf32>
    %cst_133 = arith.constant 5.000000e-01 : f32
    %409 = vector.broadcast %cst_133 : f32 to vector<1x1x1xf32>
    %410 = arith.mulf %409, %408 : vector<1x1x1xf32>
    %cst_134 = arith.constant 1.000000e+00 : f32
    %411 = vector.broadcast %cst_134 : f32 to vector<1x1x1xf32>
    %412 = arith.mulf %411, %395 : vector<1x1x1xf32>
    %413 = arith.divf %410, %412 : vector<1x1x1xf32>
    %414 = vector.extract_strided_slice %387 {offsets = [0, 0, 0], sizes = [1, 14, 14], strides = [1, 1, 1]} : vector<1x16x16xf32> to vector<1x14x14xf32>
    %415 = vector.extract_strided_slice %387 {offsets = [0, 0, 1], sizes = [1, 14, 14], strides = [1, 1, 1]} : vector<1x16x16xf32> to vector<1x14x14xf32>
    %416 = vector.extract_strided_slice %387 {offsets = [0, 0, 2], sizes = [1, 14, 14], strides = [1, 1, 1]} : vector<1x16x16xf32> to vector<1x14x14xf32>
    %417 = vector.extract_strided_slice %387 {offsets = [0, 1, 0], sizes = [1, 14, 14], strides = [1, 1, 1]} : vector<1x16x16xf32> to vector<1x14x14xf32>
    %418 = vector.extract_strided_slice %387 {offsets = [0, 1, 1], sizes = [1, 14, 14], strides = [1, 1, 1]} : vector<1x16x16xf32> to vector<1x14x14xf32>
    %419 = vector.extract_strided_slice %387 {offsets = [0, 1, 2], sizes = [1, 14, 14], strides = [1, 1, 1]} : vector<1x16x16xf32> to vector<1x14x14xf32>
    %420 = vector.extract_strided_slice %387 {offsets = [0, 2, 0], sizes = [1, 14, 14], strides = [1, 1, 1]} : vector<1x16x16xf32> to vector<1x14x14xf32>
    %421 = vector.extract_strided_slice %387 {offsets = [0, 2, 1], sizes = [1, 14, 14], strides = [1, 1, 1]} : vector<1x16x16xf32> to vector<1x14x14xf32>
    %422 = vector.extract_strided_slice %387 {offsets = [0, 2, 2], sizes = [1, 14, 14], strides = [1, 1, 1]} : vector<1x16x16xf32> to vector<1x14x14xf32>
    %423 = vector.shape_cast %414 : vector<1x14x14xf32> to vector<1x1x14x14xf32>
    %424 = vector.shape_cast %415 : vector<1x14x14xf32> to vector<1x1x14x14xf32>
    %425 = vector.shape_cast %416 : vector<1x14x14xf32> to vector<1x1x14x14xf32>
    %426 = vector.shape_cast %417 : vector<1x14x14xf32> to vector<1x1x14x14xf32>
    %427 = vector.shape_cast %418 : vector<1x14x14xf32> to vector<1x1x14x14xf32>
    %428 = vector.shape_cast %419 : vector<1x14x14xf32> to vector<1x1x14x14xf32>
    %429 = vector.shape_cast %420 : vector<1x14x14xf32> to vector<1x1x14x14xf32>
    %430 = vector.shape_cast %421 : vector<1x14x14xf32> to vector<1x1x14x14xf32>
    %431 = vector.shape_cast %422 : vector<1x14x14xf32> to vector<1x1x14x14xf32>
    %432 = tpu.concatenate %423, %424, %425, %426, %427, %428, %429, %430, %431 in 1 : vector<1x1x14x14xf32>, vector<1x1x14x14xf32>, vector<1x1x14x14xf32>, vector<1x1x14x14xf32>, vector<1x1x14x14xf32>, vector<1x1x14x14xf32>, vector<1x1x14x14xf32>, vector<1x1x14x14xf32>, vector<1x1x14x14xf32> -> vector<1x9x14x14xf32>
    %433 = vector.shape_cast %432 : vector<1x9x14x14xf32> to vector<1x9x196xf32>
    %434 = vector.shape_cast %389 : vector<4x9xf32> to vector<1x4x9xf32>
    "tpu.trace_start"() <{level = 10 : i32, message = "boq,bqp->bop"}> : () -> ()
    %cst_135 = arith.constant dense<0.000000e+00> : vector<1x4x196xf32>
    %435 = tpu.matmul %434, %433, %cst_135 {dimension_numbers = #tpu.dot_dimension_numbers<[2], [1], [1], [2], [0, 0, 0, 1, 1, 2], [0], [0]>} : vector<1x4x9xf32>, vector<1x9x196xf32>, vector<1x4x196xf32> -> vector<1x4x196xf32>
    "tpu.trace_stop"() : () -> ()
    %436 = arith.mulf %435, %435 : vector<1x4x196xf32>
    %cst_136 = arith.constant dense<0.000000e+00> : vector<1x4xf32>
    %437 = vector.multi_reduction <add>, %436, %cst_136 [2] : vector<1x4x196xf32> to vector<1x4xf32>
    %438 = vector.shape_cast %437 : vector<1x4xf32> to vector<1x4x1xf32>
    %439 = math.sqrt %438 : vector<1x4x1xf32>
    %440 = vector.broadcast %413 : vector<1x1x1xf32> to vector<1x4x1xf32>
    %441 = arith.mulf %440, %439 : vector<1x4x1xf32>
    %cst_137 = arith.constant 9.99999974E-6 : f32
    %442 = vector.broadcast %cst_137 : f32 to vector<1x4x1xf32>
    %443 = arith.maximumf %441, %442 : vector<1x4x1xf32>
    %cst_138 = arith.constant 1.000000e+00 : f32
    %444 = vector.broadcast %cst_138 : f32 to vector<1x4x1xf32>
    %445 = arith.mulf %444, %443 : vector<1x4x1xf32>
    %cst_139 = arith.constant -1.500000e+01 : f32
    %cst_140 = arith.constant 1.500000e+01 : f32
    %446 = vector.broadcast %cst_139 : f32 to vector<1x4x1xf32>
    %447 = arith.maximumf %446, %445 : vector<1x4x1xf32>
    %448 = vector.broadcast %cst_140 : f32 to vector<1x4x1xf32>
    %449 = arith.minimumf %448, %447 : vector<1x4x1xf32>
    %450 = math.tanh %449 : vector<1x4x1xf32>
    %cst_141 = arith.constant 1.000000e+00 : f32
    %451 = vector.broadcast %cst_141 : f32 to vector<1x4x1xf32>
    %452 = arith.mulf %451, %443 : vector<1x4x1xf32>
    %453 = arith.divf %450, %452 : vector<1x4x1xf32>
    %454 = arith.mulf %453, %441 : vector<1x4x1xf32>
    %cst_142 = arith.constant 9.99999974E-6 : f32
    %455 = vector.broadcast %cst_142 : f32 to vector<1x4x1xf32>
    %456 = arith.maximumf %454, %455 : vector<1x4x1xf32>
    %cst_143 = arith.constant 9.990000e-01 : f32
    %457 = vector.broadcast %cst_143 : f32 to vector<1x4x1xf32>
    %458 = arith.cmpf ogt, %456, %457 : vector<1x4x1xf32>
    %cst_144 = arith.constant 9.990000e-01 : f32
    %459 = vector.broadcast %cst_144 : f32 to vector<1x4x1xf32>
    %460 = arith.divf %459, %456 : vector<1x4x1xf32>
    %cst_145 = arith.constant 1.000000e+00 : f32
    %461 = vector.broadcast %cst_145 : f32 to vector<1x4x1xf32>
    %462 = arith.select %458, %460, %461 : vector<1x4x1xi1>, vector<1x4x1xf32>
    %463 = vector.broadcast %413 : vector<1x1x1xf32> to vector<1x4x1xf32>
    %464 = arith.mulf %463, %453 : vector<1x4x1xf32>
    %465 = arith.mulf %464, %462 : vector<1x4x1xf32>
    %466 = vector.broadcast %465 : vector<1x4x1xf32> to vector<1x4x196xf32>
    %467 = arith.mulf %435, %466 : vector<1x4x196xf32>
    %468 = arith.mulf %454, %462 : vector<1x4x1xf32>
    %469 = arith.mulf %468, %468 : vector<1x4x1xf32>
    %c0_146 = arith.constant 0 : index
    %c0_147 = arith.constant 0 : index
    %c0_148 = arith.constant 0 : index
    %470 = vector.load %arg5[%c0_146, %c0_147, %c0_148] : memref<1x4x196xf32, #tpu.memory_space<vmem>>, vector<1x4x196xf32>
    %c0_149 = arith.constant 0 : index
    %c0_150 = arith.constant 0 : index
    %c0_151 = arith.constant 0 : index
    %471 = vector.load %arg6[%c0_149, %c0_150, %c0_151] : memref<1x4x1xf32, #tpu.memory_space<vmem>>, vector<1x4x1xf32>
    %472 = arith.mulf %470, %467 : vector<1x4x196xf32>
    %cst_152 = arith.constant dense<0.000000e+00> : vector<1x4xf32>
    %473 = vector.multi_reduction <add>, %472, %cst_152 [2] : vector<1x4x196xf32> to vector<1x4xf32>
    %474 = vector.shape_cast %473 : vector<1x4xf32> to vector<1x4x1xf32>
    %cst_153 = arith.constant 2.000000e+00 : f32
    %475 = vector.broadcast %cst_153 : f32 to vector<1x4x1xf32>
    %476 = arith.mulf %475, %474 : vector<1x4x1xf32>
    %cst_154 = arith.constant 1.000000e+00 : f32
    %477 = vector.broadcast %cst_154 : f32 to vector<1x4x1xf32>
    %478 = arith.addf %477, %476 : vector<1x4x1xf32>
    %cst_155 = arith.constant 1.000000e+00 : f32
    %479 = vector.broadcast %cst_155 : f32 to vector<1x4x1xf32>
    %480 = arith.mulf %479, %469 : vector<1x4x1xf32>
    %481 = arith.addf %478, %480 : vector<1x4x1xf32>
    %cst_156 = arith.constant 1.000000e+00 : f32
    %482 = vector.broadcast %cst_156 : f32 to vector<1x4x1xf32>
    %483 = arith.mulf %482, %471 : vector<1x4x1xf32>
    %cst_157 = arith.constant 1.000000e+00 : f32
    %484 = vector.broadcast %cst_157 : f32 to vector<1x4x1xf32>
    %485 = arith.subf %484, %483 : vector<1x4x1xf32>
    %cst_158 = arith.constant 2.000000e+00 : f32
    %486 = vector.broadcast %cst_158 : f32 to vector<1x4x1xf32>
    %487 = arith.mulf %486, %474 : vector<1x4x1xf32>
    %cst_159 = arith.constant 1.000000e+00 : f32
    %488 = vector.broadcast %cst_159 : f32 to vector<1x4x1xf32>
    %489 = arith.addf %488, %487 : vector<1x4x1xf32>
    %cst_160 = arith.constant 1.000000e+00 : f32
    %490 = vector.broadcast %cst_160 : f32 to vector<1x4x1xf32>
    %491 = arith.mulf %490, %471 : vector<1x4x1xf32>
    %492 = arith.mulf %491, %469 : vector<1x4x1xf32>
    %493 = arith.addf %489, %492 : vector<1x4x1xf32>
    %cst_161 = arith.constant 9.99999974E-6 : f32
    %494 = vector.broadcast %cst_161 : f32 to vector<1x4x1xf32>
    %495 = arith.addf %493, %494 : vector<1x4x1xf32>
    %cst_162 = arith.constant 1.000000e+00 : f32
    %496 = vector.broadcast %cst_162 : f32 to vector<1x4x1xf32>
    %497 = arith.divf %496, %495 : vector<1x4x1xf32>
    %498 = arith.mulf %481, %481 : vector<1x4x1xf32>
    %499 = arith.mulf %498, %471 : vector<1x4x1xf32>
    %cst_163 = arith.constant 2.000000e+00 : f32
    %500 = vector.broadcast %cst_163 : f32 to vector<1x4x1xf32>
    %501 = arith.mulf %500, %481 : vector<1x4x1xf32>
    %502 = arith.mulf %501, %485 : vector<1x4x1xf32>
    %503 = arith.mulf %502, %474 : vector<1x4x1xf32>
    %504 = arith.addf %499, %503 : vector<1x4x1xf32>
    %505 = arith.mulf %485, %485 : vector<1x4x1xf32>
    %506 = arith.mulf %505, %469 : vector<1x4x1xf32>
    %507 = arith.addf %504, %506 : vector<1x4x1xf32>
    %508 = arith.mulf %497, %497 : vector<1x4x1xf32>
    %509 = arith.mulf %507, %508 : vector<1x4x1xf32>
    %cst_164 = arith.constant 0.000000e+00 : f32
    %510 = vector.broadcast %cst_164 : f32 to vector<1x4x1xf32>
    %511 = arith.maximumf %509, %510 : vector<1x4x1xf32>
    %512 = math.sqrt %511 : vector<1x4x1xf32>
    %cst_165 = arith.constant 9.99999974E-6 : f32
    %513 = vector.broadcast %cst_165 : f32 to vector<1x4x1xf32>
    %514 = arith.maximumf %512, %513 : vector<1x4x1xf32>
    %cst_166 = arith.constant 9.990000e-01 : f32
    %515 = vector.broadcast %cst_166 : f32 to vector<1x4x1xf32>
    %516 = arith.cmpf ogt, %514, %515 : vector<1x4x1xf32>
    %cst_167 = arith.constant 9.990000e-01 : f32
    %517 = vector.broadcast %cst_167 : f32 to vector<1x4x1xf32>
    %518 = arith.divf %517, %514 : vector<1x4x1xf32>
    %cst_168 = arith.constant 1.000000e+00 : f32
    %519 = vector.broadcast %cst_168 : f32 to vector<1x4x1xf32>
    %520 = arith.select %516, %518, %519 : vector<1x4x1xi1>, vector<1x4x1xf32>
    %521 = vector.broadcast %481 : vector<1x4x1xf32> to vector<1x4x196xf32>
    %522 = arith.mulf %521, %470 : vector<1x4x196xf32>
    %523 = vector.broadcast %485 : vector<1x4x1xf32> to vector<1x4x196xf32>
    %524 = arith.mulf %523, %467 : vector<1x4x196xf32>
    %525 = arith.addf %522, %524 : vector<1x4x196xf32>
    %526 = arith.mulf %497, %520 : vector<1x4x1xf32>
    %527 = vector.broadcast %526 : vector<1x4x1xf32> to vector<1x4x196xf32>
    %528 = arith.mulf %525, %527 : vector<1x4x196xf32>
    %c0_169 = arith.constant 0 : index
    %c0_170 = arith.constant 0 : index
    %c0_171 = arith.constant 0 : index
    %529 = vector.load %arg5[%c0_169, %c0_170, %c0_171] : memref<1x4x196xf32, #tpu.memory_space<vmem>>, vector<1x4x196xf32>
    tpu.vector_store %arg5[%c0_169, %c0_170, %c0_171], %528 {strides = array<i32>} : memref<1x4x196xf32, #tpu.memory_space<vmem>>, vector<1x4x196xf32>,
    %530 = arith.mulf %520, %520 : vector<1x4x1xf32>
    %531 = arith.mulf %511, %530 : vector<1x4x1xf32>
    %c0_172 = arith.constant 0 : index
    %c0_173 = arith.constant 0 : index
    %c0_174 = arith.constant 0 : index
    %532 = vector.load %arg6[%c0_172, %c0_173, %c0_174] : memref<1x4x1xf32, #tpu.memory_space<vmem>>, vector<1x4x1xf32>
    tpu.vector_store %arg6[%c0_172, %c0_173, %c0_174], %531 {strides = array<i32>} : memref<1x4x1xf32, #tpu.memory_space<vmem>>, vector<1x4x1xf32>,
    %c0_i32_175 = arith.constant 0 : i32
    %533 = arith.cmpi eq, %arg1, %c0_i32_175 : i32
    %534 = arith.extui %533 : i1 to i32
    %c0_i32_176 = arith.constant 0 : i32
    %535 = arith.cmpi ne, %534, %c0_i32_176 : i32
    scf.if %535 {
      %c0_177 = arith.constant 0 : index
      %c0_178 = arith.constant 0 : index
      %c0_179 = arith.constant 0 : index
      %536 = vector.load %arg5[%c0_177, %c0_178, %c0_179] : memref<1x4x196xf32, #tpu.memory_space<vmem>>, vector<1x4x196xf32>
      %c0_180 = arith.constant 0 : index
      %c0_181 = arith.constant 0 : index
      %c0_182 = arith.constant 0 : index
      %537 = vector.load %arg6[%c0_180, %c0_181, %c0_182] : memref<1x4x1xf32, #tpu.memory_space<vmem>>, vector<1x4x1xf32>
      %c0_183 = arith.constant 0 : index
      %c0_184 = arith.constant 0 : index
      %538 = vector.load %arg4[%c0_183, %c0_184] : memref<4x1xf32, #tpu.memory_space<vmem>>, vector<4x1xf32>
      %cst_185 = arith.constant dense<0.000000e+00> : vector<1x4xf32>
      %539 = vector.multi_reduction <add>, %536, %cst_185 [2] : vector<1x4x196xf32> to vector<1x4xf32>
      %540 = vector.shape_cast %539 : vector<1x4xf32> to vector<1x4x1xf32>
      %541 = vector.shape_cast %538 : vector<4x1xf32> to vector<1x4x1xf32>
      %542 = arith.mulf %541, %540 : vector<1x4x1xf32>
      %cst_186 = arith.constant 1.960000e+02 : f32
      %543 = vector.broadcast %cst_186 : f32 to vector<4x1xf32>
      %544 = arith.mulf %543, %538 : vector<4x1xf32>
      %545 = arith.mulf %544, %538 : vector<4x1xf32>
      %cst_187 = arith.constant 2.000000e+00 : f32
      %546 = vector.broadcast %cst_187 : f32 to vector<1x4x1xf32>
      %547 = arith.mulf %546, %542 : vector<1x4x1xf32>
      %cst_188 = arith.constant 1.000000e+00 : f32
      %548 = vector.broadcast %cst_188 : f32 to vector<1x4x1xf32>
      %549 = arith.addf %548, %547 : vector<1x4x1xf32>
      %cst_189 = arith.constant 1.000000e+00 : f32
      %550 = vector.broadcast %cst_189 : f32 to vector<4x1xf32>
      %551 = arith.mulf %550, %545 : vector<4x1xf32>
      %552 = vector.shape_cast %551 : vector<4x1xf32> to vector<1x4x1xf32>
      %553 = arith.addf %549, %552 : vector<1x4x1xf32>
      %cst_190 = arith.constant 1.000000e+00 : f32
      %554 = vector.broadcast %cst_190 : f32 to vector<1x4x1xf32>
      %555 = arith.mulf %554, %537 : vector<1x4x1xf32>
      %cst_191 = arith.constant 1.000000e+00 : f32
      %556 = vector.broadcast %cst_191 : f32 to vector<1x4x1xf32>
      %557 = arith.subf %556, %555 : vector<1x4x1xf32>
      %cst_192 = arith.constant 2.000000e+00 : f32
      %558 = vector.broadcast %cst_192 : f32 to vector<1x4x1xf32>
      %559 = arith.mulf %558, %542 : vector<1x4x1xf32>
      %cst_193 = arith.constant 1.000000e+00 : f32
      %560 = vector.broadcast %cst_193 : f32 to vector<1x4x1xf32>
      %561 = arith.addf %560, %559 : vector<1x4x1xf32>
      %cst_194 = arith.constant 1.000000e+00 : f32
      %562 = vector.broadcast %cst_194 : f32 to vector<1x4x1xf32>
      %563 = arith.mulf %562, %537 : vector<1x4x1xf32>
      %564 = vector.shape_cast %545 : vector<4x1xf32> to vector<1x4x1xf32>
      %565 = arith.mulf %563, %564 : vector<1x4x1xf32>
      %566 = arith.addf %561, %565 : vector<1x4x1xf32>
      %cst_195 = arith.constant 9.99999974E-6 : f32
      %567 = vector.broadcast %cst_195 : f32 to vector<1x4x1xf32>
      %568 = arith.addf %566, %567 : vector<1x4x1xf32>
      %cst_196 = arith.constant 1.000000e+00 : f32
      %569 = vector.broadcast %cst_196 : f32 to vector<1x4x1xf32>
      %570 = arith.divf %569, %568 : vector<1x4x1xf32>
      %571 = arith.mulf %553, %553 : vector<1x4x1xf32>
      %572 = arith.mulf %571, %537 : vector<1x4x1xf32>
      %cst_197 = arith.constant 2.000000e+00 : f32
      %573 = vector.broadcast %cst_197 : f32 to vector<1x4x1xf32>
      %574 = arith.mulf %573, %553 : vector<1x4x1xf32>
      %575 = arith.mulf %574, %557 : vector<1x4x1xf32>
      %576 = arith.mulf %575, %542 : vector<1x4x1xf32>
      %577 = arith.addf %572, %576 : vector<1x4x1xf32>
      %578 = arith.mulf %557, %557 : vector<1x4x1xf32>
      %579 = vector.shape_cast %545 : vector<4x1xf32> to vector<1x4x1xf32>
      %580 = arith.mulf %578, %579 : vector<1x4x1xf32>
      %581 = arith.addf %577, %580 : vector<1x4x1xf32>
      %582 = arith.mulf %570, %570 : vector<1x4x1xf32>
      %583 = arith.mulf %581, %582 : vector<1x4x1xf32>
      %cst_198 = arith.constant 0.000000e+00 : f32
      %584 = vector.broadcast %cst_198 : f32 to vector<1x4x1xf32>
      %585 = arith.maximumf %583, %584 : vector<1x4x1xf32>
      %586 = math.sqrt %585 : vector<1x4x1xf32>
      %cst_199 = arith.constant 9.99999974E-6 : f32
      %587 = vector.broadcast %cst_199 : f32 to vector<1x4x1xf32>
      %588 = arith.maximumf %586, %587 : vector<1x4x1xf32>
      %cst_200 = arith.constant 9.990000e-01 : f32
      %589 = vector.broadcast %cst_200 : f32 to vector<1x4x1xf32>
      %590 = arith.cmpf ogt, %588, %589 : vector<1x4x1xf32>
      %cst_201 = arith.constant 9.990000e-01 : f32
      %591 = vector.broadcast %cst_201 : f32 to vector<1x4x1xf32>
      %592 = arith.divf %591, %588 : vector<1x4x1xf32>
      %cst_202 = arith.constant 1.000000e+00 : f32
      %593 = vector.broadcast %cst_202 : f32 to vector<1x4x1xf32>
      %594 = arith.select %590, %592, %593 : vector<1x4x1xi1>, vector<1x4x1xf32>
      %595 = vector.broadcast %553 : vector<1x4x1xf32> to vector<1x4x196xf32>
      %596 = arith.mulf %595, %536 : vector<1x4x196xf32>
      %597 = vector.shape_cast %538 : vector<4x1xf32> to vector<1x4x1xf32>
      %598 = arith.mulf %557, %597 : vector<1x4x1xf32>
      %599 = vector.broadcast %598 : vector<1x4x1xf32> to vector<1x4x196xf32>
      %600 = arith.addf %596, %599 : vector<1x4x196xf32>
      %601 = arith.mulf %570, %594 : vector<1x4x1xf32>
      %602 = vector.broadcast %601 : vector<1x4x1xf32> to vector<1x4x196xf32>
      %603 = arith.mulf %600, %602 : vector<1x4x196xf32>
      %c0_203 = arith.constant 0 : index
      %c0_204 = arith.constant 0 : index
      %c0_205 = arith.constant 0 : index
      %604 = vector.load %arg5[%c0_203, %c0_204, %c0_205] : memref<1x4x196xf32, #tpu.memory_space<vmem>>, vector<1x4x196xf32>
      tpu.vector_store %arg5[%c0_203, %c0_204, %c0_205], %603 {strides = array<i32>} : memref<1x4x196xf32, #tpu.memory_space<vmem>>, vector<1x4x196xf32>,
    } else {
    }
    return
  }
  func.func @transform_0(%arg0: i32, %arg1: i32) -> (i32, i32, i32, i32) {
    %c0_i32 = arith.constant 0 : i32
    %c0_i32_0 = arith.constant 0 : i32
    %c0_i32_1 = arith.constant 0 : i32
    return %arg0, %arg1, %c0_i32, %c0_i32_0 : i32, i32, i32, i32
  }
  func.func @transform_1(%arg0: i32, %arg1: i32) -> (i32, i32, i32) {
    %c0_i32 = arith.constant 0 : i32
    %c0_i32_0 = arith.constant 0 : i32
    %c0_i32_1 = arith.constant 0 : i32
    return %arg1, %c0_i32, %c0_i32_0 : i32, i32, i32
  }
  func.func @transform_2(%arg0: i32, %arg1: i32) -> (i32, i32) {
    %c0_i32 = arith.constant 0 : i32
    %c0_i32_0 = arith.constant 0 : i32
    %c0_i32_1 = arith.constant 0 : i32
    return %c0_i32, %c0_i32_0 : i32, i32
  }
  func.func @transform_3(%arg0: i32, %arg1: i32) -> (i32, i32, i32) {
    %c0_i32 = arith.constant 0 : i32
    %c0_i32_0 = arith.constant 0 : i32
    %c0_i32_1 = arith.constant 0 : i32
    return %arg0, %c0_i32, %c0_i32_0 : i32, i32, i32
  }
}

</mosaic_0001>

<bundles_post_ra>
// kernel: tpu_custom_call.1
= control target key start
LH: loop header
LB: loop body
LE: loop exit
PB: predicated region body
PF: predicated region fallthrough
CT: control target
= control target key end

     0   :  { %8 = vsyncpa [#allocation4], 0  ;;  %s5504_s0 = inlined_call_operand.hbm [shape: f32[2,4,16,16], index: 0, kind: input, shape index: {}]   ;;  %s5505_s1 = inlined_call_operand.hbm [shape: f32[4,4,9], index: 1, kind: input, shape index: {}]   ;;  %s5506_s2 = inlined_call_operand.vmem [shape: f32[4,1], index: 2, kind: input, shape index: {}]   ;;  %s5507_s3 = inlined_call_operand.hbm [shape: f32[2,4,196], index: 3, kind: output, shape index: {}]  }
   0x1   :  { %10 = vsyncpa [#allocation4 + $0x1], 0 }
   0x2   :  { %11 = vsyncpa [#allocation7], 0 }
   0x3   :  { %12 = vsyncpa [#allocation5], 0 }
   0x4   :  { %14 = vsyncpa [#allocation5 + $0x1], 0  ;;  %s4132_s12 = smov 0   ;;  %s4134_s13 = smov 0  }
   0x5   :  { %s4136_s14 = smov 0   ;;  %s4138_s15 = smov 0  }
   0x6   :  { %s4140_s16 = smov 0   ;;  %s4142_s17 = smov 0  }
   0x7 LB: > { %s3424_s18 = sadd.s32 4294967295, %s4084_s17   ;;  %s3425_s19 = sadd.s32 4294967294, %s4084_s17   ;;  %s4084_s17 = sphi %s4142_s17, %s20_s17   ;;  %s4080_s16 = sphi %s4140_s16, %s5556_s16   ;;  %s4076_s15 = sphi %s4138_s15, %s5555_s15   ;;  %s4072_s14 = sphi %s4136_s14, %s5554_s14   ;;  %s4068_s13 = sphi %s4134_s13, %s5553_s13   ;;  %s4064_s12 = sphi %s4132_s12, %s5552_s12  }
   0x8   : > { %p54_p0 = scmp.ne.s32.totalorder %s4068_s13, %s4064_s12  ;;  %p4166_p1 = scmp.eq.s32.totalorder %s3424_s18, 0 }
   0x9   : > { %p4170_p2 = scmp.eq.s32.totalorder %s3424_s18, 1  ;;  %p131_p3 = scmp.eq.s32.totalorder %s3425_s19, 1 }
   0xa   : > { %s5520_s20 = scalar_select %p4166_p1, 1, 0 }
   0xb   : > { %s5521_s21 = scalar_select %p4170_p2, 1, 0 }
   0xc   : > { %p4176_p4 = por %p4166_p1, %p54_p0  ;;  %p3426_p5 = scmp.ge.s32.totalorder %s4084_s17, 1 }
   0xd   : > { %p4181_p6 = por %p131_p3, %p54_p0  ;;  %p138_p7 = scmp.lt.s32.totalorder %s4084_s17, 3 }
   0xe   : > { %s5522_s22 = scalar_select %p4176_p4, 1, 0 }
   0xf   : > { %s5523_s23 = scalar_select %p4181_p6, 1, 0 }
  0x10   : > { %p4186_p8 = pnand %p3426_p5, %p138_p7  ;;  %s4086_s25 = smov [#allocation6]  }
  0x11   : > { %s153_s26 = sshll.u32 %s4086_s25, 4  ;;  %s32_s28 = sadd.s32 1, %s4080_s16  ;;  %s154_s26 = int_to_ptr.vmem [resolvable:$true] %s153_s26 }
  0x12   : > { %s5524_s24 = scalar_select %p4186_p8, 1, 0 }
  0x13   : > { %p3495_p9 = pneg %p4186_p8  ;;  %s3940_s4 = scalar_lea.hbm %s5505_s1, 256 }
  0x14   : > { %p3941_p12 = scmp.ne.s32.totalorder %s5505_s1, %s3940_s4  ;;  %p3947_p5 = scmp.lt.u32.totalorder %s3940_s4, %s5505_s1 }
  0x15   : > { %p4195_p11 = pnand %p3495_p9, %p4166_p1 }
  0x17   : > { %p3942_p13 = pneg %p4195_p11 }
  0x19   : > { %p3943_p0 = pnand %p3942_p13, %p3941_p12 }
  0x1b   : > { %p3944_p3 = pneg %p3943_p0 }
  0x1d   : > { %p3949_p7 = pnand %p3947_p5, %p3944_p3 }
  0x1f   : > { %3952 = shalt.err (!%p3949_p7)
}
  0x20   : > { %s3953_s9 = scalar_lea.vmem %s154_s26, 256  ;;  %p3961_p1 = scmp.lt.s32.totalorder %s154_s26, %s154_s26 }
  0x21   : > { %p3954_p9 = scmp.ne.s32.totalorder %s154_s26, %s3953_s9  ;;  %p3962_p4 = scmp.lt.s32.totalorder %s3953_s9, %s3953_s9 }
  0x23   : > { %p3956_p10 = pnand %p3954_p9, %p3942_p13  ;;  %p3963_p8 = por %p3962_p4, %p3961_p1 }
  0x25   : > { %p3957_p6 = pneg %p3956_p10 }
  0x27   : > { %p3964_p2 = pnand %p3963_p8, %p3957_p6 }
  0x29   : > { %3967 = shalt.err (!%p3964_p2)
}
  0x2a   : > { %s4087_s10 = smov 64   ;;  %s4088_s11 = smov 4  }
  0x2b   : > { %3498 = dma.hbm_to_vmem [thread:$0]  (!%p4195_p11), %s5505_s1, 256, %s154_s26, [#allocation7], %s4087_s10, %s4087_s10, %s4088_s11  }
  0x2c   : > { %p34_p1 = scmp.ge.s32.totalorder %s32_s28, 2  ;;  %s41_s25 = sadd.s32 1, %s4072_s14 }
  0x2d   : > { %p48_p2 = scmp.ne.s32.totalorder %s4072_s14, %s4068_s13  ;;  %p49_p4 = scmp.eq.s32.totalorder %s4084_s17, 0 }
  0x2e   : > { %s5558_s28 = smov (%p34_p1, %s32_s28), 0  ;;  %p5527_p8 = scmp.ne.s32.totalorder %s5521_s21, 0 }
  0x2f   : > { %p4222_p6 = por %p49_p4, %p48_p2  ;;  %s36_s27 = ssub.s32 %s4080_s16, %s5558_s28 }
  0x30   : > { %p4228_p10 = por %p5527_p8, %p48_p2  ;;  %p3508_p12 = scmp.lt.s32.totalorder %s4084_s17, 2 }
  0x31   : > { %p39_p11 = scmp.eq.s32.totalorder %s36_s27, 0  ;;  %s170_s26 = sand.u32 1, %s4072_s14  }
  0x32   : > { %s3429_s4 = sshll.u32 %s170_s26, 6  ;;  %s3461_s6 = sshll.u32 %s4080_s16, 10 }
  0x33   : > { %s4237_s5 = scalar_select %p39_p11, %s4072_s14, %s41_s25  }
  0x34   : > { %s4243_s9 = scalar_lea.hbm %s5504_s0, %s3461_s6  ;;  %s174_s21 = scalar_lea.vmem [#allocation3], %s3429_s4 }
  0x35   : > { %s184_s10 = sshll.u32 %s174_s21, 4  ;;  %p4249_p13 = pnand %p3508_p12, %p4222_p6  ;;  %s4245_s10 = int_to_ptr.vmem [resolvable:$true] %s184_s10 }
  0x36   : > { %s4253_s18 = scalar_lea.sflag [#allocation4], %s170_s26  ;;  %s3968_s19 = scalar_lea.hbm %s4243_s9, 1024 }
  0x37   : > { %p3969_p0 = scmp.ne.s32.totalorder %s4243_s9, %s3968_s19  ;;  %p3970_p3 = pneg %p4249_p13 }
  0x38   : > { %s3973_s29 = scalar_lea.hbm %s5504_s0, 2048  ;;  %p3974_p9 = scmp.lt.u32.totalorder %s4243_s9, %s5504_s0 }
  0x39   : > { %p3971_p5 = pnand %p3970_p3, %p3969_p0  ;;  %p3975_p1 = scmp.lt.u32.totalorder %s3973_s29, %s3968_s19 }
  0x3a   : > { %p3977_p4 = scmp.lt.u32.totalorder %s3968_s19, %s4243_s9 }
  0x3b   : > { %p3972_p7 = pneg %p3971_p5  ;;  %p3976_p2 = por %p3975_p1, %p3974_p9 }
  0x3d   : > { %p3978_p6 = por %p3977_p4, %p3976_p2 }
  0x3f   : > { %p3979_p8 = pnand %p3978_p6, %p3972_p7 }
  0x41   : > { %3982 = shalt.err (!%p3979_p8)
}
  0x42   : > { %s3983_s26 = scalar_lea.vmem %s4245_s10, 1024  ;;  %s4089_s7 = smov [#allocation3]  }
  0x43   : > { %p3984_p12 = scmp.ne.s32.totalorder %s4245_s10, %s3983_s26  ;;  %s3988_s8 = sshll.u32 %s4089_s7, 4  ;;  %s3989_s8 = int_to_ptr.vmem [resolvable:$false] %s3988_s8 }
  0x44   : > { %s3990_s21 = scalar_lea.vmem %s3989_s8, 2048  ;;  %p3991_p5 = scmp.lt.s32.totalorder %s4245_s10, %s3989_s8 }
  0x45   : > { %p3986_p11 = pnand %p3984_p12, %p3970_p3  ;;  %p3992_p9 = scmp.lt.s32.totalorder %s3990_s21, %s3983_s26 }
  0x47   : > { %p3987_p0 = pneg %p3986_p11  ;;  %p3993_p1 = por %p3992_p9, %p3991_p5 }
  0x49   : > { %p3994_p2 = pnand %p3993_p1, %p3987_p0 }
  0x4b   : > { %3997 = shalt.err (!%p3994_p2)
}
  0x4c   : > { %s4090_s19 = smov 128   ;;  %s4091_s25 = smov 8  }
  0x4d   : > { %3502 = dma.hbm_to_vmem [thread:$0]  (!%p4249_p13), %s4243_s9, 1024, %s4245_s10, %s4253_s18, %s4090_s19, %s4090_s19, %s4091_s25  }
  0x4e   : > { %p5530_p3 = scmp.ne.s32.totalorder %s5524_s24, 0 }
  0x4f   : > { %s4284_s27 = sand.u32 (!%p5530_p3), 1, %s4068_s13   ;;  %p5531_p7 = scmp.ne.s32.totalorder (!%p5530_p3), %s5522_s22, 0 }
  0x50   : > { %196 = sbr.rel (%p5530_p3) target bundleno = 2241 (0x8c1), region = 32  ;;  %s3433_s29 = sshll.u32 (!%p5530_p3), %s4284_s27, 6 }
  0x51   : > { %s199_s4 = scalar_lea.sflag (!%p5530_p3), [#allocation4], %s4284_s27  ;;  %s4288_s6 = scalar_lea.vmem (!%p5530_p3), [#allocation3], %s3433_s29 }
  0x57   : > { %4051 = dma.done.wait (%p5531_p7), %s199_s4, 1024  }
  0x58   : > { %4053 = vsyncadd (%p5531_p7), %s199_s4, 4294966272  ;;  %p5532_p13 = scmp.ne.s32.totalorder %s5520_s20, 0 }
  0x5a   : > { %4055 = dma.done.wait (%p5532_p13), [#allocation7], 256  }
  0x5b   : > { %4057 = vsyncadd (%p5532_p13), [#allocation7], 4294967040  ;;  %v4299_v0 = vld [vmem:[%s4288_s6 + $0x8] sm:$0xff]  ;;  %v4302_v1 = vld [vmem:[%s4288_s6] sm:$0xff]  ;;  %vm5513_vm0 = vcmask 1046528   ;;  %s4092_s24 = smov 127   ;;  %v332_v19 = vlaneseq }
  0x5c   : > { %281 = vrot.lane.b32.xlu1 %v4299_v0, %s4092_s24  ;;  %279 = vrot.lane.b32.xlu0 %v4302_v1, %s4092_s24  ;;  %v292_v2 = vrot.slane %v4302_v1, 1  ;;  %v4310_v3 = vrot.slane %v4299_v0, 1  ;;  %v310_v4 = vrot.slane %v4302_v1, 2  ;;  %v4314_v5 = vrot.slane %v4299_v0, 2  ;;  %s4093_s20 = smov 126   ;;  %v4343_v9 = vld [vmem:[%s4288_s6 + $0x10] sm:$0xff] }
  0x5d   : > { %vm5512_vm1 = vcmask 1045504   ;;  %v4094_v8 = vmov 0.0   ;;  %v4346_v10 = vld [vmem:[%s4288_s6 + $0x18] sm:$0xff]  ;;  %v1068_v11 = vrot.slane %v4343_v9, 1  ;;  %v1085_v14 = vrot.slane %v4343_v9, 2  ;;  %s4097_s22 = smov 12  }
  0x5e   : > { %v4318_v6 = vsel %vm5513_vm0, %v292_v2, %v4310_v3  ;;  %v4326_v7 = vsel %vm5512_vm1, %v310_v4, %v4314_v5  ;;  %881 = vmatprep.mubr.f32.mxu0 %v4094_v8  ;;  %1641 = vmatprep.mubr.f32.mxu1 %v4094_v8  ;;  %v4354_v12 = vrot.slane %v4346_v10, 1  ;;  %v4366_v15 = vrot.slane %v4346_v10, 2  ;;  %s4098_s9 = smov 112   ;;  %s4099_s10 = smov 26  }
  0x5f   : > { %v4095_v17 = vmov 1983009808   ;;  %v333_v23 = vshrl.u32 %v332_v19, 7  ;;  %v4096_v26 = vmov 1934713408   ;;  %s4100_s11 = smov 40  }
  0x60   : > { %285 = vrot.lane.b32.xlu0 %v4302_v1, %s4093_s20  ;;  %297 = vrot.lane.b32.xlu1 %v4318_v6, %s4092_s24  ;;  %v4362_v13 = vsel %vm5513_vm0, %v1068_v11, %v4354_v12  ;;  %v4374_v16 = vsel %vm5512_vm1, %v1085_v14, %v4366_v15  ;;  %v330_v18 = vunpack.c.l.s4 %v4095_v17  ;;  %v394_v27 = vunpack.c.l.s4 %v4096_v26  ;;  %s4101_s18 = smov 54   ;;  %s4102_s26 = smov 14  }
  0x61   : > { %s4103_s7 = smov 42   ;;  %s4104_s8 = smov 28   ;;  %vm794_vm2 = vcmask 97280   ;;  %vm797_vm3 = vcmask 211968   ;;  %vm800_vm4 = vcmask 326656   ;;  %vm803_vm5 = vcmask 441344  }
  0x62   : > { %v331_v22 = vunpack.c.0.s8 %v330_v18  ;;  %v395_v35 = vunpack.c.0.s8 %v394_v27  ;;  %s4105_s21 = smov 70   ;;  %s4106_s19 = smov 56   ;;  %vm810_vm6 = vcmask 1040384   ;;  %vm4109_vm7 = vmmov 1  }
  0x63   : > { %s4107_s25 = smov 84   ;;  %s4108_s29 = smov 98   ;;  %vm4773_vm8 = vmpackc.low %vm810_vm6, %vm4109_vm7  ;;  %vm767_vm9 = vcmask 113664   ;;  %vm770_vm10 = vcmask 228352   ;;  %vm773_vm11 = vcmask 343040   ;;  %vm776_vm12 = vcmask 457728  }
  0x64   : > { %315 = vrot.lane.b32.xlu0 %v4326_v7, %s4092_s24  ;;  %303 = vrot.lane.b32.xlu1 %v4318_v6, %s4093_s20  ;;  %v4402_v29 = vsub.s32 %v331_v22, %v333_v23  ;;  %v4428_v43 = vsub.s32 %v395_v35, %v333_v23  ;;  %vm5519_vm13 = vcmask 572416   ;;  %vm5518_vm14 = vcmask 687104   ;;  %s3435_s4 = sshll.u32 %s4284_s27, 3 }
  0x65   : > { %vm5517_vm15 = vcmask 801792   ;;  %vm5514_vm6 = vcmask 916480   ;;  %vm5515_vm7 = vcmask 1031168  }
  0x68   : > { %287 = vrot.lane.b32.xlu0 %v4299_v0, %s4093_s20  ;;  %299 = vrot.lane.b32.xlu1 %v4310_v3, %s4092_s24 }
  0x6c   : > { %305 = vrot.lane.b32.xlu0 %v4310_v3, %s4093_s20  ;;  %317 = vrot.lane.b32.xlu1 %v4314_v5, %s4092_s24 }
  0x70   : > { %321 = vrot.lane.b32.xlu0 %v4326_v7, %s4093_s20  ;;  %323 = vrot.lane.b32.xlu1 %v4314_v5, %s4093_s20 }
  0x74   : > { %1056 = vrot.lane.b32.xlu0 %v4343_v9, %s4092_s24  ;;  %1062 = vrot.lane.b32.xlu1 %v4343_v9, %s4093_s20 }
  0x78   : > { %1073 = vrot.lane.b32.xlu0 %v4362_v13, %s4092_s24  ;;  %1079 = vrot.lane.b32.xlu1 %v4362_v13, %s4093_s20 }
  0x7c   : > { %1090 = vrot.lane.b32.xlu0 %v4374_v16, %s4092_s24  ;;  %1058 = vrot.lane.b32.xlu1 %v4346_v10, %s4092_s24 }
  0x80   : > { %1064 = vrot.lane.b32.xlu0 %v4346_v10, %s4093_s20  ;;  %1075 = vrot.lane.b32.xlu1 %v4354_v12, %s4092_s24 }
  0x84   : > { %1081 = vrot.lane.b32.xlu0 %v4354_v12, %s4093_s20  ;;  %1092 = vrot.lane.b32.xlu1 %v4366_v15, %s4092_s24 }
  0x88   : > { %1096 = vrot.lane.b32.xlu0 %v4374_v16, %s4093_s20  ;;  %1098 = vrot.lane.b32.xlu1 %v4366_v15, %s4093_s20 }
  0xce   : > { %v4392_v20 = vpop.permute.xlu1 %281  ;;  %v4394_v21 = vpop.permute.xlu0 %279 }
  0xcf   : > { %v343_v30 = vcombine.low %v4394_v21, %v4318_v6  ;;  %v528_v45 = vcombine.low %v4392_v20, %v4310_v3  ;;  %v529_v14 = vcombine.high %v4392_v20, %v4310_v3 }
  0xd1   : > { %v4416_v36 = vrot.slane %v343_v30, %v4402_v29  ;;  %v536_v54 = vrot.slane %v528_v45, %v4402_v29 }
  0xd2   : > { %v4396_v24 = vpop.permute.xlu0 %285  ;;  %v4398_v25 = vpop.permute.xlu1 %297 }
  0xd3   : > { %v327_v28 = vcombine.low %v4302_v1, %v4396_v24  ;;  %v359_v32 = vcombine.low %v4398_v25, %v4326_v7  ;;  %v328_v17 = vcombine.high %v4302_v1, %v4396_v24  ;;  %v344_v24 = vcombine.high %v4394_v21, %v4318_v6 }
  0xd5   : > { %v4407_v31 = vrot.slane %v327_v28, %v4402_v29  ;;  %v4423_v39 = vrot.slane %v359_v32, %v4402_v29 }
  0xd6   : > { %v4411_v33 = vpop.permute.xlu0 %315  ;;  %v4413_v34 = vpop.permute.xlu1 %303 }
  0xd7   : > { %v375_v37 = vcombine.low %v4413_v34, %v4411_v33  ;;  %v391_v38 = vcombine.low %v4407_v31, %v4416_v36  ;;  %v376_v45 = vcombine.high %v4413_v34, %v4411_v33 }
  0xd9   : > { %v4426_v40 = vrot.slane %v375_v37, %v4402_v29  ;;  %v4438_v51 = vrot.slane %v391_v38, %v4428_v43  ;;  %v543_v37 = vrot.slane %v529_v14, %v4402_v29  ;;  %v4475_v38 = vrot.slane %v328_v17, %v4402_v29 }
  0xda   : > { %v288_v41 = vpop.permute.xlu0 %287  ;;  %v300_v42 = vpop.permute.xlu1 %299 }
  0xdb   : > { %v512_v44 = vcombine.low %v4299_v0, %v288_v41  ;;  %v423_v46 = vcombine.low %v4423_v39, %v4426_v40  ;;  %v544_v47 = vcombine.low %v300_v42, %v4314_v5  ;;  %v513_v2 = vcombine.high %v4299_v0, %v288_v41 }
  0xdc   : > { %v545_v18 = vcombine.high %v300_v42, %v4314_v5 }
  0xdd   : > { %v520_v48 = vrot.slane %v512_v44, %v4402_v29  ;;  %v4441_v52 = vrot.slane %v423_v46, %v4428_v43  ;;  %v552_v56 = vrot.slane %v544_v47, %v4402_v29  ;;  %v527_v1 = vrot.slane %v513_v2, %v4402_v29 }
  0xde   : > { %v306_v49 = vpop.permute.xlu0 %305  ;;  %v318_v50 = vpop.permute.xlu1 %317  ;;  %v559_v41 = vrot.slane %v545_v18, %v4402_v29 }
  0xdf   : > { %v560_v53 = vcombine.low %v306_v49, %v318_v50  ;;  %v455_v55 = vcombine.low %v4438_v51, %v4441_v52  ;;  %v576_v58 = vcombine.low %v520_v48, %v536_v54  ;;  %v577_v61 = vcombine.high %v520_v48, %v536_v54 }
  0xe0   : > { %v561_v4 = vcombine.high %v306_v49, %v318_v50  ;;  %v592_v47 = vcombine.low %v527_v1, %v543_v37  ;;  %v4485_v49 = vrot.slane %v344_v24, %v4402_v29  ;;  %v392_v50 = vcombine.high %v4407_v31, %v4416_v36 }
  0xe1   : > { %v568_v57 = vrot.slane %v560_v53, %v4402_v29  ;;  %v584_v27 = vrot.slane %v576_v58, %v4428_v43  ;;  %v591_v3 = vrot.slane %v577_v61, %v4428_v43  ;;  %v360_v53 = vcombine.high %v4398_v25, %v4326_v7 }
  0xe2   : > { %v4448_v59 = vpop.permute.xlu0 %321  ;;  %v324_v60 = vpop.permute.xlu1 %323  ;;  %v575_v5 = vrot.slane %v561_v4, %v4402_v29  ;;  %v424_v58 = vcombine.high %v4423_v39, %v4426_v40  ;;  %v599_v7 = vrot.slane %v592_v47, %v4428_v43  ;;  %v4518_v14 = vrot.slane %v392_v50, %v4428_v43 }
  0xe3   : > { %v600_v62 = vcombine.low %v552_v56, %v568_v57  ;;  %v601_v63 = vcombine.high %v552_v56, %v568_v57  ;;  %v636_v11 = vrot.slane %v324_v60, %v4402_v29  ;;  %v652_v33 = vcombine.high %v324_v60, %v4094_v8 }
  0xe4   : > { %v616_v48 = vcombine.low %v559_v41, %v575_v5  ;;  %v407_v56 = vcombine.low %v4475_v38, %v4485_v49  ;;  %v4501_v57 = vrot.slane %v376_v45, %v4402_v29  ;;  %v470_v60 = vrot.slane %v4448_v59, %v4402_v29 }
  0xe5   : > { %v608_v19 = vrot.slane %v600_v62, %v4428_v43  ;;  %v637_v22 = vcombine.high %v636_v11, %v4094_v8  ;;  %v644_v23 = vrot.slane %v636_v11, %v4428_v43  ;;  %v615_v28 = vrot.slane %v601_v63, %v4428_v43 }
  0xe6   : > { %v4460_v26 = vpop.permute.xlu0 %1056  ;;  %v4462_v0 = vpop.permute.xlu1 %1062  ;;  %v623_v25 = vrot.slane %v616_v48, %v4428_v43  ;;  %v4512_v62 = vrot.slane %v360_v53, %v4402_v29  ;;  %v659_v63 = vrot.slane %v652_v33, %v4428_v43  ;;  %v4542_v45 = vrot.slane %v470_v60, %v4428_v43 }
  0xe7   : > { %v625_v20 = vcombine.high %v584_v27, %v608_v19  ;;  %v660_v30 = vcombine.high %v644_v23, %v4094_v8  ;;  %v626_v32 = vcombine.low %v591_v3, %v615_v28  ;;  %v651_v35 = vrot.slane %v637_v22, %v4428_v43 }
  0xe8   : > { %v624_v46 = vcombine.low %v584_v27, %v608_v19  ;;  %v627_v31 = vcombine.high %v591_v3, %v615_v28  ;;  %v628_v4 = vcombine.low %v599_v7, %v623_v25  ;;  %v439_v17 = vcombine.low %v4512_v62, %v4501_v57 }
  0xe9   : > { %v3583_v6 = vpack.i.bf16 %v660_v30, %v625_v20  ;;  %v3588_v21 = vpack.i.bf16 %v651_v35, %v626_v32  ;;  %v661_v36 = vcombine.high %v651_v35, %v4094_v8  ;;  %v4525_v19 = vrot.slane %v424_v58, %v4428_v43 }
  0xea   : > { %v4478_v42 = vpop.permute.xlu0 %1073  ;;  %v4480_v44 = vpop.permute.xlu1 %1079  ;;  %v3603_v61 = vpack.i.bf16 %v644_v23, %v624_v46  ;;  %v4528_v22 = vrot.slane %v407_v56, %v4428_v43  ;;  %v463_v23 = vcombine.high %v4448_v59, %v4094_v8  ;;  %v478_v27 = vcombine.high %v470_v60, %v4094_v8 }
  0xeb   : > { %3584 = vrot.lane.b32.xlu1 %v3583_v6, %s4093_s20  ;;  %3589 = vrot.lane.b32.xlu0 %v3588_v21, %s4097_s22  ;;  %v3593_v39 = vpack.i.bf16 %v661_v36, %v627_v31  ;;  %v1118_v28 = vcombine.low %v4460_v26, %v4362_v13  ;;  %v3598_v5 = vpack.i.bf16 %v659_v63, %v628_v4 }
  0xec   : > { %v629_v30 = vcombine.high %v599_v7, %v623_v25  ;;  %v662_v32 = vcombine.high %v659_v63, %v4094_v8  ;;  %v1102_v35 = vcombine.low %v4343_v9, %v4462_v0  ;;  %v1134_v31 = vcombine.low %v4478_v42, %v4374_v16 }
  0xed   : > { %v4552_v33 = vrot.slane %v1118_v28, %v4402_v29 }
  0xee   : > { %v4494_v34 = vpop.permute.xlu0 %1090  ;;  %v4496_v54 = vpop.permute.xlu1 %1058 }
  0xef   : > { %3604 = vrot.lane.b32.xlu1 %v3603_v61, %s4098_s9  ;;  %v1303_v11 = vcombine.low %v4496_v54, %v4354_v12  ;;  %3594 = vrot.lane.b32.xlu0 %v3593_v39, %s4099_s10  ;;  %v1150_v6 = vcombine.low %v4480_v44, %v4494_v34  ;;  %v1304_v56 = vcombine.high %v4496_v54, %v4354_v12 }
  0xf1   : > { %v1311_v59 = vrot.slane %v1303_v11, %v4402_v29  ;;  %v4563_v25 = vrot.slane %v1150_v6, %v4402_v29  ;;  %v1318_v4 = vrot.slane %v1304_v56, %v4402_v29 }
  0xf2   : > { %v1065_v40 = vpop.permute.xlu0 %1064  ;;  %v1076_v2 = vpop.permute.xlu1 %1075 }
  0xf3   : > { %v1287_v18 = vcombine.low %v4346_v10, %v1065_v40  ;;  %v1319_v3 = vcombine.low %v1076_v2, %v4366_v15  ;;  %v1288_v21 = vcombine.high %v4346_v10, %v1065_v40  ;;  %v1320_v46 = vcombine.high %v1076_v2, %v4366_v15  ;;  %3599 = vrot.lane.b32.xlu0 %v3598_v5, %s4100_s11 }
  0xf4   : > { %v3608_v10 = vpack.i.bf16 %v662_v32, %v629_v30  ;;  %v4558_v15 = vrot.slane %v1102_v35, %v4402_v29  ;;  %v456_v35 = vcombine.high %v4438_v51, %v4441_v52 }
  0xf5   : > { %v1295_v1 = vrot.slane %v1287_v18, %v4402_v29  ;;  %v1327_v50 = vrot.slane %v1319_v3, %v4402_v29  ;;  %v1302_v60 = vrot.slane %v1288_v21, %v4402_v29  ;;  %v1334_v63 = vrot.slane %v1320_v46, %v4402_v29 }
  0xf6   : > { %v1082_v20 = vpop.permute.xlu0 %1081  ;;  %v1093_v24 = vpop.permute.xlu1 %1092  ;;  %v477_v3 = vrot.slane %v463_v23, %v4402_v29  ;;  %v1166_v23 = vcombine.low %v4558_v15, %v4552_v33 }
  0xf7   : > { %v1335_v37 = vcombine.low %v1082_v20, %v1093_v24  ;;  %v1336_v41 = vcombine.high %v1082_v20, %v1093_v24  ;;  %v1351_v47 = vcombine.low %v1295_v1, %v1311_v59  ;;  %v1352_v48 = vcombine.high %v1295_v1, %v1311_v59  ;;  %3609 = vrot.lane.b32.xlu0 %v3608_v10, %s4101_s18 }
  0xf8   : > { %v1142_v1 = vrot.slane %v1134_v31, %v4402_v29  ;;  %v1367_v24 = vcombine.low %v1302_v60, %v1318_v4  ;;  %v492_v59 = vrot.slane %v478_v27, %v4428_v43  ;;  %v1119_v27 = vcombine.high %v4460_v26, %v4362_v13 }
  0xf9   : > { %v1343_v53 = vrot.slane %v1335_v37, %v4402_v29  ;;  %v1350_v58 = vrot.slane %v1336_v41, %v4402_v29  ;;  %v4574_v40 = vrot.slane %v1351_v47, %v4428_v43  ;;  %v1366_v2 = vrot.slane %v1352_v48, %v4428_v43 }
  0xfa   : > { %v1099_v61 = vpop.permute.xlu1 %1098  ;;  %v1198_v37 = vcombine.low %v1142_v1, %v4563_v25  ;;  %v508_v41 = vcombine.high %v4542_v45, %v4094_v8  ;;  %v4602_v48 = vrot.slane %v477_v3, %v4428_v43  ;;  %v1097_v56 = vpop.permute.xlu0 %1096  ;;  %v4614_v31 = vrot.slane %v1367_v24, %v4428_v43 }
  0xfb   : > { %v1375_v36 = vcombine.low %v1327_v50, %v1343_v53  ;;  %v1376_v7 = vcombine.high %v1327_v50, %v1343_v53  ;;  %v1411_v12 = vrot.slane %v1099_v61, %v4402_v29  ;;  %v1391_v11 = vcombine.low %v1334_v63, %v1350_v58 }
  0xfc   : > { %v1103_v50 = vcombine.high %v4343_v9, %v4462_v0  ;;  %v1151_v53 = vcombine.high %v4480_v44, %v4494_v34  ;;  %v1427_v58 = vcombine.high %v1099_v61, %v4094_v8  ;;  %v1135_v9 = vcombine.high %v4478_v42, %v4374_v16 }
  0xfd   : > { %v4570_v54 = vrot.slane %v1375_v36, %v4428_v43  ;;  %v1390_v39 = vrot.slane %v1376_v7, %v4428_v43  ;;  %v1412_v18 = vcombine.high %v1411_v12, %v4094_v8  ;;  %v4580_v28 = vrot.slane %v1411_v12, %v4428_v43 }
  0xfe   : > { %v4598_v6 = vrot.slane %v1391_v11, %v4428_v43  ;;  %v4617_v36 = vrot.slane %v1166_v23, %v4428_v43  ;;  %v509_v13 = vcombine.high %v492_v59, %v4094_v8  ;;  %v4623_v26 = vrot.slane %v1198_v37, %v4428_v43 }
  0xff   : > { %v1400_v5 = vcombine.high %v4574_v40, %v4570_v54  ;;  %v1401_v20 = vcombine.low %v1366_v2, %v1390_v39  ;;  %v1426_v30 = vrot.slane %v1412_v18, %v4428_v43  ;;  %v1435_v32 = vcombine.high %v4580_v28, %v4094_v8 }
 0x100   : > { %v1402_v10 = vcombine.high %v1366_v2, %v1390_v39  ;;  %v1245_v0 = vrot.slane %v1097_v56, %v4402_v29  ;;  %v3633_v34 = vpack.i.bf16 %v508_v41, %v456_v35  ;;  %v1403_v61 = vcombine.low %v4614_v31, %v4598_v6 }
 0x101   : > { %v3613_v21 = vpack.i.bf16 %v1435_v32, %v1400_v5  ;;  %v3618_v46 = vpack.i.bf16 %v1426_v30, %v1401_v20  ;;  %v1436_v47 = vcombine.high %v1426_v30, %v4094_v8  ;;  %v1133_v7 = vrot.slane %v1119_v27, %v4402_v29 }
 0x102   : > { %v458_v60 = vcombine.high %v4518_v14, %v4525_v19  ;;  %v447_v16 = vrot.slane %v439_v17, %v4428_v43  ;;  %v1230_v42 = vcombine.low %v4617_v36, %v4623_v26  ;;  %v1165_v63 = vrot.slane %v1151_v53, %v4402_v29 }
 0x103   : > { %3614 = vrot.lane.b32.xlu0 %v3613_v21, %s4093_s20  ;;  %3619 = vrot.lane.b32.xlu1 %v3618_v46, %s4097_s22  ;;  %v3623_v44 = vpack.i.bf16 %v1436_v47, %v1402_v10  ;;  %v1199_v12 = vcombine.high %v1142_v1, %v4563_v25  ;;  %v4640_v39 = vrot.slane %v1427_v58, %v4428_v43 }
 0x104   : > { %v1117_v2 = vrot.slane %v1103_v50, %v4402_v29  ;;  %v1167_v17 = vcombine.high %v4558_v15, %v4552_v33  ;;  %v1149_v4 = vrot.slane %v1135_v9, %v4402_v29  ;;  %v3643_v11 = vpack.i.bf16 %v509_v13, %v458_v60 }
 0x105   : > { %v1238_v18 = vcombine.high %v1097_v56, %v4094_v8  ;;  %v1253_v25 = vcombine.high %v1245_v0, %v4094_v8  ;;  %v3628_v1 = vpack.i.bf16 %v4640_v39, %v1403_v61  ;;  %v510_v5 = vcombine.high %v4602_v48, %v4094_v8 }
 0x106   : > { %v440_v20 = vcombine.high %v4512_v62, %v4501_v57  ;;  %v457_v24 = vcombine.low %v4518_v14, %v4525_v19  ;;  %v1214_v30 = vcombine.low %v1149_v4, %v1165_v63  ;;  %v460_v33 = vcombine.high %v4528_v22, %v447_v16 }
 0x107   : > { %3624 = vrot.lane.b32.xlu1 %v3623_v44, %s4099_s10  ;;  %3634 = vrot.lane.b32.xlu0 %v3633_v34, %s4102_s26  ;;  %v1213_v15 = vrot.slane %v1199_v12, %v4428_v43  ;;  %v408_v32 = vcombine.high %v4475_v38, %v4485_v49  ;;  %v493_v35 = vcombine.high %v477_v3, %v4094_v8 }
 0x108   : > { %v1181_v57 = vrot.slane %v1167_v17, %v4428_v43  ;;  %v1182_v62 = vcombine.low %v1117_v2, %v1133_v7  ;;  %v1252_v14 = vrot.slane %v1238_v18, %v4402_v29  ;;  %v3638_v19 = vpack.i.bf16 %v492_v59, %v457_v24 }
 0x109   : > { %v3653_v23 = vpack.i.bf16 %v510_v5, %v460_v33  ;;  %v1267_v37 = vrot.slane %v1253_v25, %v4428_v43  ;;  %v459_v41 = vcombine.low %v4528_v22, %v447_v16  ;;  %v454_v21 = vrot.slane %v440_v20, %v4428_v43  ;;  %v4704_v33 = vld [vmem:[%s4288_s6 + $0x20] sm:$0xff] }
 0x10a   : > { %v1215_v46 = vcombine.high %v1149_v4, %v1165_v63  ;;  %v1232_v38 = vcombine.low %v1181_v57, %v1213_v15  ;;  %v1222_v49 = vrot.slane %v1214_v30, %v4428_v43  ;;  %v1183_v3 = vcombine.high %v1117_v2, %v1133_v7 }
 0x10b   : > { %3629 = vrot.lane.b32.xlu1 %v3628_v1, %s4100_s11  ;;  %3644 = vrot.lane.b32.xlu0 %v3643_v11, %s4103_s7  ;;  %v1190_v59 = vrot.slane %v1182_v62, %v4428_v43  ;;  %v3648_v47 = vpack.i.bf16 %v4602_v48, %v459_v41  ;;  %v422_v27 = vrot.slane %v408_v32, %v4428_v43  ;;  %v4707_v32 = vld [vmem:[%s4288_s6 + $0x28] sm:$0xff] }
 0x10c   : > { %v1268_v22 = vcombine.high %v1252_v14, %v4094_v8  ;;  %v3673_v50 = vpack.i.bf16 %v1267_v37, %v1232_v38  ;;  %v507_v53 = vrot.slane %v493_v35, %v4428_v43  ;;  %v1275_v56 = vrot.slane %v1252_v14, %v4428_v43 }
 0x10d   : > { %v461_v58 = vcombine.low %v422_v27, %v454_v21  ;;  %v1234_v10 = vcombine.low %v1190_v59, %v1222_v49  ;;  %v1229_v9 = vrot.slane %v1215_v46, %v4428_v43  ;;  %v1197_v48 = vrot.slane %v1183_v3, %v4428_v43 }
 0x10e   : > { %v4683_v13 = vrot.slane %v1245_v0, %v4428_v43  ;;  %v511_v61 = vcombine.high %v507_v53, %v4094_v8  ;;  %v1282_v7 = vrot.slane %v1268_v22, %v4428_v43  ;;  %v462_v60 = vcombine.high %v422_v27, %v454_v21 }
 0x10f   : > { %3639 = vrot.lane.b32.xlu1 %v3638_v19, %s4104_s8  ;;  %3654 = vrot.lane.b32.xlu0 %v3653_v23, %s4105_s21  ;;  %v3658_v44 = vpack.i.bf16 %v507_v53, %v461_v58  ;;  %v3683_v34 = vpack.i.bf16 %v1275_v56, %v1234_v10  ;;  %v1236_v16 = vcombine.low %v1197_v48, %v1229_v9  ;;  %v1826_v14 = vrot.slane %v4704_v33, 2 }
 0x110   : > { %v3663_v63 = vpack.i.bf16 %v511_v61, %v462_v60  ;;  %v1283_v2 = vcombine.high %v4683_v13, %v4094_v8  ;;  %v1286_v0 = vcombine.high %v1282_v7, %v4094_v8  ;;  %v1231_v17 = vcombine.high %v4617_v36, %v4623_v26 }
 0x111   : > { %v3693_v12 = vpack.i.bf16 %v1282_v7, %v1236_v16  ;;  %v1237_v4 = vcombine.high %v1197_v48, %v1229_v9  ;;  %v1284_v25 = vcombine.high %v1267_v37, %v4094_v8  ;;  %v1399_v1 = vcombine.low %v4574_v40, %v4570_v54 }
 0x112   : > { %v3668_v11 = vpack.i.bf16 %v1283_v2, %v1231_v17  ;;  %v1233_v5 = vcombine.high %v1181_v57, %v1213_v15  ;;  %v1285_v30 = vcombine.high %v1275_v56, %v4094_v8  ;;  %v1235_v35 = vcombine.high %v1190_v59, %v1222_v49 }
 0x113   : > { %3649 = vrot.lane.b32.xlu1 %v3648_v47, %s4106_s19  ;;  %3674 = vrot.lane.b32.xlu0 %v3673_v50, %s4104_s8  ;;  %v3698_v18 = vpack.i.bf16 %v1286_v0, %v1237_v4  ;;  %v3703_v24 = vpack.i.bf16 %v4580_v28, %v1399_v1  ;;  %v1809_v54 = vrot.slane %v4704_v33, 1  ;;  %v4713_v40 = vrot.slane %v4707_v32, 1 }
 0x114   : > { %v3678_v20 = vpack.i.bf16 %v1284_v25, %v1233_v5  ;;  %v1437_v15 = vcombine.high %v4640_v39, %v4094_v8  ;;  %v3688_v28 = vpack.i.bf16 %v1285_v30, %v1235_v35  ;;  %v1404_v57 = vcombine.high %v4614_v31, %v4598_v6 }
 0x115   : > { %v4724_v62 = vsel %vm5513_vm0, %v1809_v54, %v4713_v40  ;;  %v4728_v19 = vrot.slane %v4707_v32, 2  ;;  %vm245_vm0 = vcmask 130048  }
 0x116   : > { %v3708_v23 = vpack.i.bf16 %v1437_v15, %v1404_v57 }
 0x117   : > { %3659 = vrot.lane.b32.xlu1 %v3658_v44, %s4107_s25  ;;  %3684 = vrot.lane.b32.xlu0 %v3683_v34, %s4106_s19  ;;  %v4735_v6 = vsel %vm5512_vm1, %v1826_v14, %v4728_v19  ;;  %vm5516_vm1 = vcmask 72704  }
 0x11b   : > { %3664 = vrot.lane.b32.xlu1 %v3663_v63, %s4108_s29  ;;  %3694 = vrot.lane.b32.xlu0 %v3693_v12, %s4107_s25 }
 0x11f   : > { %3669 = vrot.lane.b32.xlu1 %v3668_v11, %s4102_s26  ;;  %3699 = vrot.lane.b32.xlu0 %v3698_v18, %s4108_s29 }
 0x123   : > { %3679 = vrot.lane.b32.xlu1 %v3678_v20, %s4103_s7  ;;  %3704 = vrot.lane.b32.xlu0 %v3703_v24, %s4098_s9 }
 0x127   : > { %3689 = vrot.lane.b32.xlu1 %v3688_v28, %s4105_s21  ;;  %1797 = vrot.lane.b32.xlu0 %v4704_v33, %s4092_s24 }
 0x12b   : > { %3709 = vrot.lane.b32.xlu1 %v3708_v23, %s4101_s18  ;;  %1814 = vrot.lane.b32.xlu0 %v4724_v62, %s4092_s24 }
 0x12f   : > { %1803 = vrot.lane.b32.xlu1 %v4704_v33, %s4093_s20  ;;  %1831 = vrot.lane.b32.xlu0 %v4735_v6, %s4092_s24 }
 0x133   : > { %1820 = vrot.lane.b32.xlu1 %v4724_v62, %s4093_s20  ;;  %1805 = vrot.lane.b32.xlu0 %v4707_v32, %s4093_s20 }
 0x137   : > { %1799 = vrot.lane.b32.xlu1 %v4707_v32, %s4092_s24  ;;  %1822 = vrot.lane.b32.xlu0 %v4713_v40, %s4093_s20 }
 0x13b   : > { %1816 = vrot.lane.b32.xlu1 %v4713_v40, %s4092_s24  ;;  %1837 = vrot.lane.b32.xlu0 %v4735_v6, %s4093_s20 }
 0x13f   : > { %1833 = vrot.lane.b32.xlu1 %v4728_v19, %s4092_s24 }
 0x143   : > { %1839 = vrot.lane.b32.xlu1 %v4728_v19, %s4093_s20 }
 0x15d   : > { %v3590_v31 = vpop.permute.xlu0 %3589  ;;  %v4757_v37 = vpop.permute.xlu1 %3584 }
 0x15e   : > { %v3592_v41 = vunpack.i.h.bf16 %v3590_v31  ;;  %v3591_v21 = vunpack.i.l.bf16 %v3590_v31  ;;  %v3587_v46 = vunpack.i.h.bf16 %v4757_v37  ;;  %v3586_v38 = vunpack.i.l.bf16 %v4757_v37 }
 0x160   : > { %v796_v22 = vsel %vm794_vm2, %v3587_v46, %v3592_v41  ;;  %v795_v50 = vsel %vm794_vm2, %v3586_v38, %v3591_v21 }
 0x161   : > { %v3595_v39 = vpop.permute.xlu0 %3594  ;;  %v3605_v60 = vpop.permute.xlu1 %3604 }
 0x162   : > { %v3597_v3 = vunpack.i.h.bf16 %v3595_v39  ;;  %v3596_v59 = vunpack.i.l.bf16 %v3595_v39 }
 0x164   : > { %v798_v10 = vsel %vm797_vm3, %v795_v50, %v3596_v59  ;;  %v799_v9 = vsel %vm797_vm3, %v796_v22, %v3597_v3 }
 0x165   : > { %v3600_v49 = vpop.permute.xlu0 %3599 }
 0x166   : > { %v3602_v47 = vunpack.i.h.bf16 %v3600_v49  ;;  %v3601_v27 = vunpack.i.l.bf16 %v3600_v49 }
 0x168   : > { %v801_v48 = vsel %vm800_vm4, %v798_v10, %v3601_v27  ;;  %v802_v44 = vsel %vm800_vm4, %v799_v9, %v3602_v47  ;;  %v3606_v10 = vunpack.i.l.bf16 %v3605_v60 }
 0x169   : > { %v3610_v53 = vpop.permute.xlu0 %3609 }
 0x16a   : > { %v3612_v56 = vunpack.i.h.bf16 %v3610_v53  ;;  %v3611_v58 = vunpack.i.l.bf16 %v3610_v53 }
 0x16c   : > { %v804_v34 = vsel %vm803_vm5, %v801_v48, %v3611_v58  ;;  %v805_v61 = vsel %vm803_vm5, %v802_v44, %v3612_v56  ;;  %v3607_v58 = vunpack.i.h.bf16 %v3605_v60 }
 0x16d   : > { %v3463_v16 = vpack.c.bf16 %v805_v61, %v804_v34 }
 0x16f   : > { %3465 = vmatprep.subr.msk.bf16.mxu0 %vm4773_vm8, %v3463_v16 }
 0x175   : > { %v4779_v63 = vpop.permute.xlu0 %3614  ;;  %v4781_v12 = vpop.permute.xlu1 %3619 }
 0x176   : > { %v3616_v60 = vunpack.i.l.bf16 %v4779_v63 }
 0x179   : > { %v4783_v2 = vpop.permute.xlu1 %3624  ;;  %v3635_v0 = vpop.permute.xlu0 %3634 }
 0x17a   : > { %v3637_v25 = vunpack.i.h.bf16 %v3635_v0  ;;  %v3636_v1 = vunpack.i.l.bf16 %v3635_v0 }
 0x17c   : > { %v769_v35 = vsel %vm767_vm9, %v4542_v45, %v3637_v25  ;;  %v768_v54 = vsel %vm767_vm9, %v455_v55, %v3636_v1  ;;  %v3622_v1 = vunpack.i.h.bf16 %v4781_v12 }
 0x17d   : > { %v4785_v17 = vpop.permute.xlu1 %3629  ;;  %v3645_v4 = vpop.permute.xlu0 %3644 }
 0x17e   : > { %v3647_v23 = vunpack.i.h.bf16 %v3645_v4  ;;  %v3646_v31 = vunpack.i.l.bf16 %v3645_v4 }
 0x181   : > { %v3640_v11 = vpop.permute.xlu1 %3639  ;;  %v3655_v18 = vpop.permute.xlu0 %3654 }
 0x182   : > { %v3642_v5 = vunpack.i.h.bf16 %v3640_v11  ;;  %v3641_v20 = vunpack.i.l.bf16 %v3640_v11  ;;  %v3657_v3 = vunpack.i.h.bf16 %v3655_v18  ;;  %v3656_v59 = vunpack.i.l.bf16 %v3655_v18 }
 0x183   : > { %v3617_v11 = vunpack.i.h.bf16 %v4779_v63 }
 0x184   : > { %v771_v15 = vsel %vm770_vm10, %v768_v54, %v3641_v20  ;;  %v772_v28 = vsel %vm770_vm10, %v769_v35, %v3642_v5 }
 0x185   : > { %v3650_v24 = vpop.permute.xlu1 %3649  ;;  %v4787_v30 = vpop.permute.xlu0 %3674  ;;  %v774_v45 = vsel %vm773_vm11, %v771_v15, %v3646_v31  ;;  %v775_v21 = vsel %vm773_vm11, %v772_v28, %v3647_v23  ;;  %v3627_v28 = vunpack.i.h.bf16 %v4783_v2 }
 0x186   : > { %v3652_v57 = vunpack.i.h.bf16 %v3650_v24  ;;  %v3651_v14 = vunpack.i.l.bf16 %v3650_v24  ;;  %v3621_v24 = vunpack.i.l.bf16 %v4781_v12  ;;  %v3676_v37 = vunpack.i.l.bf16 %v4787_v30 }
 0x188   : > { %v777_v51 = vsel %vm776_vm12, %v774_v45, %v3651_v14  ;;  %v778_v52 = vsel %vm776_vm12, %v775_v21, %v3652_v57  ;;  %v3626_v57 = vunpack.i.l.bf16 %v4783_v2  ;;  %v1560_v2 = vsel %vm794_vm2, %v3616_v60, %v3621_v24 }
 0x189   : > { %v3660_v39 = vpop.permute.xlu1 %3659  ;;  %v4797_v41 = vpop.permute.xlu0 %3684  ;;  %v780_v22 = vsel %vm5519_vm13, %v777_v51, %v3656_v59  ;;  %v781_v50 = vsel %vm5519_vm13, %v778_v52, %v3657_v3  ;;  %v3631_v3 = vunpack.i.l.bf16 %v4785_v17 }
 0x18a   : > { %v3662_v55 = vunpack.i.h.bf16 %v3660_v39  ;;  %v3661_v49 = vunpack.i.l.bf16 %v3660_v39  ;;  %v1562_v39 = vsel %vm797_vm3, %v1560_v2, %v3626_v57  ;;  %v3687_v21 = vunpack.i.h.bf16 %v4797_v41 }
 0x18b   : > { %v3686_v51 = vunpack.i.l.bf16 %v4797_v41 }
 0x18c   : > { %v783_v9 = vsel %vm5518_vm14, %v780_v22, %v3661_v49  ;;  %v784_v48 = vsel %vm5518_vm14, %v781_v50, %v3662_v55  ;;  %v3632_v49 = vunpack.i.h.bf16 %v4785_v17 }
 0x18d   : > { %v3665_v47 = vpop.permute.xlu1 %3664  ;;  %v4803_v27 = vpop.permute.xlu0 %3694 }
 0x18e   : > { %v3667_v53 = vunpack.i.h.bf16 %v3665_v47  ;;  %v3666_v56 = vunpack.i.l.bf16 %v3665_v47  ;;  %v3697_v22 = vunpack.i.h.bf16 %v4803_v27  ;;  %v3696_v50 = vunpack.i.l.bf16 %v4803_v27 }
 0x190   : > { %v786_v44 = vsel %vm5517_vm15, %v783_v9, %v3666_v56  ;;  %v787_v34 = vsel %vm5517_vm15, %v784_v48, %v3667_v53 }
 0x191   : > { %v3670_v61 = vpop.permute.xlu1 %3669  ;;  %v3700_v16 = vpop.permute.xlu0 %3699  ;;  %v789_v0 = vsel %vm5514_vm6, %v786_v44, %v3606_v10  ;;  %v790_v4 = vsel %vm5514_vm6, %v787_v34, %v3607_v58 }
 0x192   : > { %v3672_v18 = vunpack.i.h.bf16 %v3670_v61  ;;  %v3671_v25 = vunpack.i.l.bf16 %v3670_v61  ;;  %v792_v5 = vsel %vm5515_vm7, %v789_v0, %v3586_v38  ;;  %v793_v20 = vsel %vm5515_vm7, %v790_v4, %v3587_v46 }
 0x193   : > { %v3466_v15 = vpack.c.bf16 %v793_v20, %v792_v5  ;;  %v3677_v38 = vunpack.i.h.bf16 %v4787_v30  ;;  %v3702_v56 = vunpack.i.h.bf16 %v3700_v16  ;;  %v3701_v58 = vunpack.i.l.bf16 %v3700_v16 }
 0x194   : > { %v1543_v35 = vsel %vm767_vm9, %v4683_v13, %v3672_v18  ;;  %v1542_v54 = vsel %vm767_vm9, %v1230_v42, %v3671_v25  ;;  %v239_v13 = vld [vmem:[#allocation6] sm:$0xf]  ;;  %v1561_v42 = vsel %vm794_vm2, %v3617_v11, %v3622_v1  ;;  %v1564_v16 = vsel %vm800_vm4, %v1562_v39, %v3631_v3 }
 0x195   : > { %v3680_v46 = vpop.permute.xlu1 %3679  ;;  %v3705_v14 = vpop.permute.xlu0 %3704  ;;  %3468 = vmatpush1.bf16.msk.msra.mxu0 %vm4773_vm8, %v3466_v15  ;;  %v1544_v36 = vsel %vm770_vm10, %v1542_v54, %v3676_v37  ;;  %v1545_v26 = vsel %vm770_vm10, %v1543_v35, %v3677_v38  ;;  %v1563_v45 = vsel %vm797_vm3, %v1561_v42, %v3627_v28 }
 0x196   : > { %v3682_v12 = vunpack.i.h.bf16 %v3680_v46  ;;  %v3681_v23 = vunpack.i.l.bf16 %v3680_v46  ;;  %v3707_v48 = vunpack.i.h.bf16 %v3705_v14  ;;  %v3706_v17 = vunpack.i.l.bf16 %v3705_v14 }
 0x197   : > { %v1565_v1 = vsel %vm800_vm4, %v1563_v45, %v3632_v49 }
 0x198   : > { %v1546_v30 = vsel %vm773_vm11, %v1544_v36, %v3681_v23  ;;  %v1547_v31 = vsel %vm773_vm11, %v1545_v26, %v3682_v12  ;;  %3439 = vmatmul.mubr.msk.f32.vlgmr.msra.gmra.mrb[0].mxu0 %vm5516_vm1, %v239_v13 }
 0x199   : > { %v3690_v52 = vpop.permute.xlu1 %3689  ;;  %v1798_v55 = vpop.permute.xlu0 %1797  ;;  %2382 = vmatprep.mubr.f32.mxu0 %v4094_v8  ;;  %v1548_v53 = vsel %vm776_vm12, %v1546_v30, %v3686_v51  ;;  %v1549_v41 = vsel %vm776_vm12, %v1547_v31, %v3687_v21 }
 0x19a   : > { %v3692_v59 = vunpack.i.h.bf16 %v3690_v52  ;;  %v3691_v47 = vunpack.i.l.bf16 %v3690_v52  ;;  %v1859_v57 = vcombine.low %v1798_v55, %v4724_v62  ;;  %v1860_v2 = vcombine.high %v1798_v55, %v4724_v62 }
 0x19c   : > { %v1550_v10 = vsel %vm5519_vm13, %v1548_v53, %v3691_v47  ;;  %v1551_v9 = vsel %vm5519_vm13, %v1549_v41, %v3692_v59  ;;  %v1874_v62 = vrot.slane %v1860_v2, %v4402_v29 }
 0x19d   : > { %v1552_v44 = vsel %vm5518_vm14, %v1550_v10, %v3696_v50  ;;  %v1553_v34 = vsel %vm5518_vm14, %v1551_v9, %v3697_v22  ;;  %v3710_v61 = vpop.permute.xlu1 %3709  ;;  %v1815_v0 = vpop.permute.xlu0 %1814 }
 0x19e   : > { %v3712_v4 = vunpack.i.h.bf16 %v3710_v61  ;;  %v3711_v27 = vunpack.i.l.bf16 %v3710_v61  ;;  %v1554_v18 = vsel %vm5517_vm15, %v1552_v44, %v3701_v58  ;;  %v1555_v25 = vsel %vm5517_vm15, %v1553_v34, %v3702_v56 }
 0x19f   : > { %v1556_v5 = vsel %vm5514_vm6, %v1554_v18, %v3706_v17  ;;  %v1557_v20 = vsel %vm5514_vm6, %v1555_v25, %v3707_v48  ;;  %v1875_v12 = vcombine.low %v1815_v0, %v4735_v6  ;;  %v1876_v55 = vcombine.high %v1815_v0, %v4735_v6 }
 0x1a0   : > { %v1566_v24 = vsel %vm803_vm5, %v1564_v16, %v3711_v27  ;;  %v1567_v35 = vsel %vm803_vm5, %v1565_v1, %v3712_v4  ;;  %v1558_v54 = vsel %vm5515_vm7, %v1556_v5, %v3616_v60  ;;  %v1559_v15 = vsel %vm5515_vm7, %v1557_v20, %v3617_v11  ;;  %v240_v60 = vld [vmem:[#allocation6 + $0x4] sm:$0xf] }
 0x1a1   : > { %v1804_v28 = vpop.permute.xlu1 %1803  ;;  %v3469_v38 = vpack.c.bf16 %v1567_v35, %v1566_v24  ;;  %v3472_v37 = vpack.c.bf16 %v1559_v15, %v1558_v54  ;;  %v1832_v46 = vpop.permute.xlu0 %1831  ;;  %v1867_v11 = vrot.slane %v1859_v57, %v4402_v29  ;;  %v1883_v36 = vrot.slane %v1875_v12, %v4402_v29 }
 0x1a2   : > { %v1843_v14 = vcombine.low %v4704_v33, %v1804_v28  ;;  %v1844_v42 = vcombine.high %v4704_v33, %v1804_v28  ;;  %v1890_v6 = vrot.slane %v1876_v55, %v4402_v29 }
 0x1a3   : > { %3471 = vmatprep.subr.msk.bf16.mxu1 %vm4773_vm8, %v3469_v38 }
 0x1a4   : > { %3474 = vmatpush1.bf16.msk.msra.mxu1 %vm4773_vm8, %v3472_v37  ;;  %v1851_v63 = vrot.slane %v1843_v14, %v4402_v29  ;;  %v1858_v33 = vrot.slane %v1844_v42, %v4402_v29 }
 0x1a5   : > { %v1821_v23 = vpop.permute.xlu1 %1820  ;;  %v4880_v13 = vpop.permute.xlu0 %1805 }
 0x1a6   : > { %v1891_v26 = vcombine.low %v1821_v23, %v1832_v46  ;;  %v1907_v30 = vcombine.low %v1851_v63, %v1867_v11  ;;  %v2028_v45 = vcombine.low %v4707_v32, %v4880_v13  ;;  %v1892_v49 = vcombine.high %v1821_v23, %v1832_v46 }
 0x1a7   : > { %3444 = vmatmul.mubr.msk.f32.vlgmr.msra.gmra.mrb[0].mxu1 %vm5516_vm1, %v240_v60  ;;  %v1908_v58 = vcombine.high %v1851_v63, %v1867_v11  ;;  %v1923_v9 = vcombine.low %v1858_v33, %v1874_v62  ;;  %v1924_v4 = vcombine.high %v1858_v33, %v1874_v62  ;;  %v2029_v16 = vcombine.high %v4707_v32, %v4880_v13 }
 0x1a8   : > { %3120 = vmatprep.mubr.f32.mxu1 %v4094_v8  ;;  %v1899_v39 = vrot.slane %v1891_v26, %v4402_v29  ;;  %v4900_v3 = vrot.slane %v1907_v30, %v4428_v43  ;;  %v2036_v50 = vrot.slane %v2028_v45, %v4402_v29  ;;  %v1906_v10 = vrot.slane %v1892_v49, %v4402_v29 }
 0x1a9   : > { %v4887_v31 = vpop.permute.xlu1 %1799  ;;  %v4894_v52 = vpop.permute.xlu0 %1822  ;;  %v1922_v18 = vrot.slane %v1908_v58, %v4428_v43  ;;  %v1931_v5 = vrot.slane %v1923_v9, %v4428_v43 }
 0x1aa   : > { %v2044_v21 = vcombine.low %v4887_v31, %v4713_v40  ;;  %v1939_v51 = vcombine.low %v1883_v36, %v1899_v39  ;;  %v1940_v27 = vcombine.high %v1883_v36, %v1899_v39  ;;  %v1955_v25 = vcombine.low %v1890_v6, %v1906_v10 }
 0x1ab   : > { %v2045_v20 = vcombine.high %v4887_v31, %v4713_v40  ;;  %v1956_v37 = vcombine.high %v1890_v6, %v1906_v10 }
 0x1ac   : > { %v2052_v59 = vrot.slane %v2044_v21, %v4402_v29  ;;  %v4904_v47 = vrot.slane %v1939_v51, %v4428_v43  ;;  %v1954_v38 = vrot.slane %v1940_v27, %v4428_v43  ;;  %v1963_v14 = vrot.slane %v1955_v25, %v4428_v43 }
 0x1ad   : > { %v1817_v22 = vpop.permute.xlu1 %1816  ;;  %v1838_v56 = vpop.permute.xlu0 %1837  ;;  %v1938_v21 = vrot.slane %v1924_v4, %v4428_v43  ;;  %v2043_v51 = vrot.slane %v2029_v16, %v4402_v29  ;;  %v2059_v33 = vrot.slane %v2045_v20, %v4402_v29  ;;  %v1970_v62 = vrot.slane %v1956_v37, %v4428_v43 }
 0x1ae   : > { %v2060_v53 = vcombine.low %v1817_v22, %v4728_v19  ;;  %v1971_v41 = vcombine.low %v4900_v3, %v4904_v47  ;;  %v2092_v48 = vcombine.low %v2036_v50, %v2052_v59  ;;  %v2093_v17 = vcombine.high %v2036_v50, %v2052_v59 }
 0x1af   : > { %v1986_v0 = vrot.slane %v1838_v56, %v4402_v29  ;;  %v1979_v46 = vcombine.high %v1838_v56, %v4094_v8  ;;  %v2061_v11 = vcombine.high %v1817_v22, %v4728_v19  ;;  %v1972_v36 = vcombine.high %v4900_v3, %v4904_v47 }
 0x1b0   : > { %v2068_v34 = vrot.slane %v2060_v53, %v4402_v29  ;;  %v4923_v24 = vrot.slane %v2092_v48, %v4428_v43  ;;  %v4926_v35 = vrot.slane %v2093_v17, %v4428_v43  ;;  %v1973_v45 = vcombine.low %v1922_v18, %v1954_v38 }
 0x1b1   : > { %v1834_v44 = vpop.permute.xlu1 %1833  ;;  %v4930_v32 = vrot.slane %v1986_v0, %v4428_v43  ;;  %v1994_v40 = vcombine.high %v1986_v0, %v4094_v8  ;;  %v1993_v19 = vrot.slane %v1979_v46, %v4402_v29  ;;  %v2075_v55 = vrot.slane %v2061_v11, %v4402_v29  ;;  %v3934_v11 = vld [vmem:[%s4288_s6 + $0x10] sm:$0xff] }
 0x1b2   : > { %v2076_v61 = vcombine.low %v4894_v52, %v1834_v44  ;;  %v2077_v23 = vcombine.high %v4894_v52, %v1834_v44  ;;  %v1974_v50 = vcombine.high %v1922_v18, %v1954_v38  ;;  %v1975_v10 = vcombine.low %v1931_v5, %v1963_v14 }
 0x1b3   : > { %v2024_v42 = vcombine.high %v4930_v32, %v4094_v8  ;;  %v2008_v39 = vrot.slane %v1994_v40, %v4428_v43  ;;  %v2009_v56 = vcombine.high %v1993_v19, %v4094_v8  ;;  %v2016_v58 = vrot.slane %v1993_v19, %v4428_v43 }
 0x1b4   : > { %v2084_v1 = vrot.slane %v2076_v61, %v4402_v29  ;;  %v2091_v59 = vrot.slane %v2077_v23, %v4402_v29  ;;  %v2108_v9 = vcombine.low %v2043_v51, %v2059_v33  ;;  %v1976_v44 = vcombine.high %v1931_v5, %v1963_v14 }
 0x1b5   : > { %v1840_v54 = vpop.permute.xlu1 %1839  ;;  %v3723_v22 = vpack.i.bf16 %v2024_v42, %v1972_v36  ;;  %v2025_v53 = vcombine.high %v2008_v39, %v4094_v8  ;;  %v3728_v6 = vpack.i.bf16 %v2008_v39, %v1973_v45  ;;  %v3738_v61 = vpack.i.bf16 %v2016_v58, %v1975_v10  ;;  %v3936_v36 = vld [vmem:[%s4288_s6] sm:$0xff]  ;;  %v3937_v42 = vld [vmem:[%s4288_s6 + $0x8] sm:$0xff] }
 0x1b6   : > { %v2116_v15 = vcombine.low %v2068_v34, %v2084_v1  ;;  %v2117_v28 = vcombine.high %v2068_v34, %v2084_v1  ;;  %v2152_v57 = vrot.slane %v1840_v54, %v4402_v29  ;;  %v2132_v48 = vcombine.low %v2075_v55, %v2091_v59 }
 0x1b7   : > { %v3733_v17 = vpack.i.bf16 %v2025_v53, %v1974_v50  ;;  %v2026_v34 = vcombine.high %v2016_v58, %v4094_v8  ;;  %v1977_v0 = vcombine.low %v1938_v21, %v1970_v62  ;;  %v2023_v4 = vrot.slane %v2009_v56, %v4428_v43 }
 0x1b8   : > { %v4937_v12 = vrot.slane %v2116_v15, %v4428_v43  ;;  %v2131_v60 = vrot.slane %v2117_v28, %v4428_v43  ;;  %v2153_v63 = vcombine.high %v2152_v57, %v4094_v8  ;;  %v2160_v13 = vrot.slane %v2152_v57, %v4428_v43 }
 0x1b9   : > { %v2115_v27 = vrot.slane %v2108_v9, %v4428_v43  ;;  %v2168_v18 = vcombine.high %v1840_v54, %v4094_v8  ;;  %v2139_v25 = vrot.slane %v2132_v48, %v4428_v43  ;;  %v3743_v16 = vpack.i.bf16 %v2026_v34, %v1976_v44 }
 0x1ba   : > { %v2167_v26 = vrot.slane %v2153_v63, %v4428_v43  ;;  %v2142_v2 = vcombine.low %v4926_v35, %v2131_v60  ;;  %v2141_v30 = vcombine.high %v4923_v24, %v4937_v12  ;;  %v2176_v31 = vcombine.high %v2160_v13, %v4094_v8 }
 0x1bb   : > { %v2143_v1 = vcombine.high %v4926_v35, %v2131_v60  ;;  %v3753_v20 = vpack.i.bf16 %v2023_v4, %v1977_v0  ;;  %v1978_v15 = vcombine.high %v1938_v21, %v1970_v62  ;;  %v2027_v28 = vcombine.high %v2023_v4, %v4094_v8 }
 0x1bc   : > { %v3718_v52 = vpack.i.bf16 %v2167_v26, %v2142_v2  ;;  %v3713_v49 = vpack.i.bf16 %v2176_v31, %v2141_v30  ;;  %v2177_v5 = vcombine.high %v2167_v26, %v4094_v8  ;;  %v2175_v57 = vrot.slane %v2168_v18, %v4428_v43 }
 0x1bd   : > { %v2144_v38 = vcombine.low %v2115_v27, %v2139_v25  ;;  %v3758_v37 = vpack.i.bf16 %v2027_v28, %v1978_v15  ;;  %v2140_v35 = vcombine.low %v4923_v24, %v4937_v12  ;;  %v2145_v14 = vcombine.high %v2115_v27, %v2139_v25  ;;  %v3935_v24 = vld [vmem:[%s4288_s6 + $0x18] sm:$0xff] }
 0x1be   : > { %3719 = vrot.lane.b32.xlu0 %v3718_v52, %s4097_s22  ;;  %3714 = vrot.lane.b32.xlu1 %v3713_v49, %s4093_s20  ;;  %v3748_v54 = vpack.i.bf16 %v2177_v5, %v2143_v1  ;;  %v2178_v46 = vcombine.high %v2175_v57, %v4094_v8  ;;  %v1021_v23 = vmul.f32 %v3934_v11, %v3934_v11 }
 0x1bf   : > { %v3763_v40 = vpack.i.bf16 %v2175_v57, %v2144_v38  ;;  %v3768_v60 = vpack.i.bf16 %v2160_v13, %v2140_v35  ;;  %v1022_v12 = vmul.f32 %v3935_v24, %v3935_v24  ;;  %v243_v26 = vmul.f32 %v3936_v36, %v3936_v36 }
 0x1c0   : > { %v3773_v63 = vpack.i.bf16 %v2178_v46, %v2145_v14  ;;  %v244_v2 = vmul.f32 %v3937_v42, %v3937_v42  ;;  %v1023_v30 = vsel %vm245_vm0, %v1021_v23, 0.0 }
 0x1c1   : > { %v1024_v13 = vsel %vm245_vm0, %v1022_v12, 0.0  ;;  %v246_v31 = vsel %vm245_vm0, %v243_v26, 0.0 }
 0x1c2   : > { %3724 = vrot.lane.b32.xlu0 %v3723_v22, %s4102_s26  ;;  %3729 = vrot.lane.b32.xlu1 %v3728_v6, %s4104_s8  ;;  %v247_v19 = vsel %vm245_vm0, %v244_v2, 0.0  ;;  %v1025_v39 = vadd.f32 %v1024_v13, %v1023_v30 }
 0x1c3   : > { %v248_v45 = vadd.f32 %v247_v19, %v246_v31 }
 0x1c6   : > { %3734 = vrot.lane.b32.xlu0 %v3733_v17, %s4103_s7  ;;  %3739 = vrot.lane.b32.xlu1 %v3738_v61, %s4106_s19 }
 0x1ca   : > { %3744 = vrot.lane.b32.xlu0 %v3743_v16, %s4105_s21  ;;  %3754 = vrot.lane.b32.xlu1 %v3753_v20, %s4107_s25 }
 0x1ce   : > { %3749 = vrot.lane.b32.xlu0 %v3748_v54, %s4099_s10  ;;  %3759 = vrot.lane.b32.xlu1 %v3758_v37, %s4108_s29 }
 0x1d2   : > { %3764 = vrot.lane.b32.xlu0 %v3763_v40, %s4100_s11  ;;  %3769 = vrot.lane.b32.xlu1 %v3768_v60, %s4098_s9 }
 0x1d6   : > { %3774 = vrot.lane.b32.xlu0 %v3773_v63, %s4101_s18 }
 0x1f5   : > { %1026 = vadd.xlane.f32.xlu0 %v1025_v39 }
 0x1f6   : > { %249 = vadd.xlane.f32.xlu1 %v248_v45 }
 0x230   : > { %v3720_v21 = vpop.permute.xlu0 %3719  ;;  %v4997_v51 = vpop.permute.xlu1 %3714 }
 0x231   : > { %v3717_v9 = vunpack.i.h.bf16 %v4997_v51  ;;  %v3716_v48 = vunpack.i.l.bf16 %v4997_v51  ;;  %v3722_v17 = vunpack.i.h.bf16 %v3720_v21  ;;  %v3721_v44 = vunpack.i.l.bf16 %v3720_v21 }
 0x233   : > { %v2302_v25 = vsel %vm794_vm2, %v3717_v9, %v3722_v17  ;;  %v2301_v16 = vsel %vm794_vm2, %v3716_v48, %v3721_v44 }
 0x234   : > { %v3725_v52 = vpop.permute.xlu0 %3724  ;;  %v3730_v33 = vpop.permute.xlu1 %3729 }
 0x235   : > { %v3727_v62 = vunpack.i.h.bf16 %v3725_v52  ;;  %v3726_v55 = vunpack.i.l.bf16 %v3725_v52  ;;  %v3732_v22 = vunpack.i.h.bf16 %v3730_v33  ;;  %v3731_v50 = vunpack.i.l.bf16 %v3730_v33 }
 0x237   : > { %v2284_v53 = vsel %vm767_vm9, %v4930_v32, %v3727_v62  ;;  %v2283_v56 = vsel %vm767_vm9, %v1971_v41, %v3726_v55 }
 0x238   : > { %v3735_v49 = vpop.permute.xlu0 %3734  ;;  %v3740_v59 = vpop.permute.xlu1 %3739  ;;  %v2285_v4 = vsel %vm770_vm10, %v2283_v56, %v3731_v50  ;;  %v2286_v32 = vsel %vm770_vm10, %v2284_v53, %v3732_v22 }
 0x239   : > { %v3737_v58 = vunpack.i.h.bf16 %v3735_v49  ;;  %v3736_v6 = vunpack.i.l.bf16 %v3735_v49  ;;  %v3742_v61 = vunpack.i.h.bf16 %v3740_v59  ;;  %v3741_v0 = vunpack.i.l.bf16 %v3740_v59  ;;  %v241_v59 = vld [vmem:[#allocation6 + $0x8] sm:$0xf] }
 0x23b   : > { %v2287_v3 = vsel %vm773_vm11, %v2285_v4, %v3736_v6  ;;  %v2288_v47 = vsel %vm773_vm11, %v2286_v32, %v3737_v58  ;;  %v5057_v4 = vld [vmem:[%s4288_s6 + $0x30] sm:$0xff]  ;;  %v5060_v32 = vld [vmem:[%s4288_s6 + $0x38] sm:$0xff] }
 0x23c   : > { %v3745_v10 = vpop.permute.xlu0 %3744  ;;  %v3755_v34 = vpop.permute.xlu1 %3754  ;;  %v2289_v57 = vsel %vm776_vm12, %v2287_v3, %v3741_v0  ;;  %v2290_v54 = vsel %vm776_vm12, %v2288_v47, %v3742_v61  ;;  %v2547_v3 = vrot.slane %v5057_v4, 1  ;;  %v5064_v47 = vrot.slane %v5060_v32, 1 }
 0x23d   : > { %v3747_v41 = vunpack.i.h.bf16 %v3745_v10  ;;  %v3746_v27 = vunpack.i.l.bf16 %v3745_v10  ;;  %v3757_v15 = vunpack.i.h.bf16 %v3755_v34  ;;  %v3756_v28 = vunpack.i.l.bf16 %v3755_v34 }
 0x23f   : > { %v2291_v38 = vsel %vm5519_vm13, %v2289_v57, %v3746_v27  ;;  %v2292_v37 = vsel %vm5519_vm13, %v2290_v54, %v3747_v41  ;;  %v2564_v27 = vrot.slane %v5057_v4, 2 }
 0x240   : > { %v3750_v18 = vpop.permute.xlu0 %3749  ;;  %v3760_v1 = vpop.permute.xlu1 %3759  ;;  %v2293_v24 = vsel %vm5518_vm14, %v2291_v38, %v3756_v28  ;;  %v2294_v12 = vsel %vm5518_vm14, %v2292_v37, %v3757_v15 }
 0x241   : > { %v3752_v5 = vunpack.i.h.bf16 %v3750_v18  ;;  %v3751_v20 = vunpack.i.l.bf16 %v3750_v18  ;;  %v3762_v35 = vunpack.i.h.bf16 %v3760_v1  ;;  %v3761_v46 = vunpack.i.l.bf16 %v3760_v1 }
 0x242   : > { %v5080_v18 = vrot.slane %v5060_v32, 2 }
 0x243   : > { %v2303_v14 = vsel %vm797_vm3, %v2301_v16, %v3751_v20  ;;  %v2304_v60 = vsel %vm797_vm3, %v2302_v25, %v3752_v5  ;;  %v2295_v42 = vsel %vm5517_vm15, %v2293_v24, %v3761_v46  ;;  %v2296_v2 = vsel %vm5517_vm15, %v2294_v12, %v3762_v35 }
 0x244   : > { %v3765_v40 = vpop.permute.xlu0 %3764  ;;  %v3770_v63 = vpop.permute.xlu1 %3769 }
 0x245   : > { %v3767_v11 = vunpack.i.h.bf16 %v3765_v40  ;;  %v3766_v23 = vunpack.i.l.bf16 %v3765_v40  ;;  %v3772_v36 = vunpack.i.h.bf16 %v3770_v63  ;;  %v3771_v26 = vunpack.i.l.bf16 %v3770_v63 }
 0x247   : > { %v2297_v30 = vsel %vm5514_vm6, %v2295_v42, %v3771_v26  ;;  %v2298_v13 = vsel %vm5514_vm6, %v2296_v2, %v3772_v36  ;;  %v2305_v31 = vsel %vm800_vm4, %v2303_v14, %v3766_v23  ;;  %v2306_v19 = vsel %vm800_vm4, %v2304_v60, %v3767_v11 }
 0x248   : > { %v3775_v39 = vpop.permute.xlu0 %3774  ;;  %v2299_v51 = vsel %vm5515_vm7, %v2297_v30, %v3716_v48  ;;  %v2300_v52 = vsel %vm5515_vm7, %v2298_v13, %v3717_v9  ;;  %vm890_vm6 = vcmask 1043456   ;;  %vm892_vm7 = vcmask 551936  }
 0x249   : > { %v3777_v45 = vunpack.i.h.bf16 %v3775_v39  ;;  %v3776_v21 = vunpack.i.l.bf16 %v3775_v39  ;;  %v3478_v49 = vpack.c.bf16 %v2300_v52, %v2299_v51 }
 0x24b   : > { %v2307_v33 = vsel %vm803_vm5, %v2305_v31, %v3776_v21  ;;  %v2308_v62 = vsel %vm803_vm5, %v2306_v19, %v3777_v45  ;;  %v4110_v45 = vmov 0  }
 0x24c   : > { %v3475_v55 = vpack.c.bf16 %v2308_v62, %v2307_v33  ;;  %3843 = vset.pattern.permute.xlu0 %v4110_v45  ;;  %3844 = vset.pattern.permute.xlu1 %v4110_v45 }
 0x24e   : > { %3477 = vmatprep.subr.msk.bf16.mxu0 %vm4773_vm8, %v3475_v55 }
 0x24f   : > { %3480 = vmatpush1.bf16.msk.msra.mxu0 %vm4773_vm8, %v3478_v49 }
 0x252   : > { %3449 = vmatmul.mubr.msk.f32.vlgmr.msra.gmra.mrb[2].mxu0 %vm5516_vm1, %v241_v59  ;;  %vm5535_vm1 = vcmask 1046528  }
 0x253   : > { %v5070_v41 = vsel %vm5535_vm1, %v2547_v3, %v5064_v47  ;;  %vm5536_vm1 = vcmask 1045504  }
 0x254   : > { %v5088_v25 = vsel %vm5536_vm1, %v2564_v27, %v5080_v18 }
 0x26b   : > { %v5036_v22 = vpop.f32.mrb[0].mxu0 }
 0x26c   : > { %v888_v50 = vmul.f32 %v5036_v22, %v5036_v22  ;;  %v5040_v53 = vpop.f32.mrb[1].mxu0 }
 0x26d   : > { %v889_v56 = vmul.f32 %v5040_v53, %v5040_v53 }
 0x26e   : > { %v891_v58 = vsel %vm890_vm6, %v888_v50, 0.0 }
 0x26f   : > { %v893_v6 = vsel %vm892_vm7, %v889_v56, 0.0 }
 0x270   : > { %v894_v10 = vadd.f32 %v893_v6, %v891_v58 }
 0x272   : > { %895 = vadd.xlane.f32.xlu0 %v894_v10 }
 0x27a   : > { %v5046_v9 = vpop.f32.mrb[0].mxu1 }
 0x27b   : > { %v1648_v48 = vmul.f32 %v5046_v9, %v5046_v9  ;;  %v5050_v17 = vpop.f32.mrb[1].mxu1 }
 0x27c   : > { %v1649_v44 = vmul.f32 %v5050_v17, %v5050_v17 }
 0x27d   : > { %v1650_v34 = vsel %vm890_vm6, %v1648_v48, 0.0 }
 0x27e   : > { %v1651_v61 = vsel %vm892_vm7, %v1649_v44, 0.0 }
 0x27f   : > { %v1652_v0 = vadd.f32 %v1651_v61, %v1650_v34 }
 0x281   : > { %1653 = vadd.xlane.f32.xlu1 %v1652_v0 }
 0x282   : > { %v1027_v28 = vpop.xlane.xlu0 %1026 }
 0x283   : > { %v250_v16 = vpop.xlane.xlu1 %249  ;;  %v1028_v54 = vrot.slane %v1027_v28, 4 }
 0x284   : > { %v251_v1 = vrot.slane %v250_v16, 4 }
 0x285   : > { %v1029_v37 = vadd.f32 %v1028_v54, %v1027_v28 }
 0x286   : > { %v252_v5 = vadd.f32 %v251_v1, %v250_v16 }
 0x287   : > { %v1030_v35 = vrot.slane %v1029_v37, 2 }
 0x288   : > { %2535 = vrot.lane.b32.xlu0 %v5057_v4, %s4092_s24  ;;  %v253_v20 = vrot.slane %v252_v5, 2 }
 0x289   : > { %v1031_v46 = vadd.f32 %v1030_v35, %v1029_v37 }
 0x28a   : > { %v254_v15 = vadd.f32 %v253_v20, %v252_v5 }
 0x28b   : > { %v1032_v40 = vrot.slane %v1031_v46, 1 }
 0x28c   : > { %2558 = vrot.lane.b32.xlu0 %v5070_v41, %s4093_s20  ;;  %v255_v57 = vrot.slane %v254_v15, 1 }
 0x28d   : > { %v1033_v63 = vadd.f32 %v1032_v40, %v1031_v46 }
 0x28e   : > { %v256_v38 = vadd.f32 %v255_v57, %v254_v15 }
 0x28f   : > { %vm1036_vm14 = vcmp.eq.f32.partialorder %v1033_v63, inf  ;;  %v1039_v13 = vand.u32 2147483648, %v1033_v63  ;;  %vm1038_vm13 = vcmp.eq.f32.partialorder %v1033_v63, 0.0 }
 0x290   : > { %2537 = vrot.lane.b32.xlu0 %v5060_v32, %s4092_s24  ;;  %3846 = vrsqrt.f32 %v256_v38  ;;  %vm259_vm1 = vcmp.eq.f32.partialorder %v256_v38, inf  ;;  %v262_v11 = vand.u32 2147483648, %v256_v38  ;;  %vm261_vm15 = vcmp.eq.f32.partialorder %v256_v38, 0.0 }
 0x291   : > { %3848 = vrsqrt.f32 %v1033_v63 }
 0x292   : > { %2541 = vrot.lane.b32.xlu1 %v5057_v4, %s4093_s20 }
 0x294   : > { %2554 = vrot.lane.b32.xlu0 %v5064_v47, %s4092_s24 }
 0x296   : > { %2552 = vrot.lane.b32.xlu1 %v5070_v41, %s4092_s24 }
 0x298   : > { %2571 = vrot.lane.b32.xlu0 %v5080_v18, %s4092_s24 }
 0x29a   : > { %2569 = vrot.lane.b32.xlu1 %v5088_v25, %s4092_s24  ;;  %v3847_v14 = vpop.eup %3846  ;;  %s5257_s24 = scalar_lea.vmem [#allocation8], %s3435_s4 }
 0x29b   : > { %v258_v60 = vmul.f32 %v3847_v14, %v256_v38  ;;  %v3849_v36 = vpop.eup %3848 }
 0x29c   : > { %2577 = vrot.lane.b32.xlu0 %v5080_v18, %s4093_s20  ;;  %v1035_v42 = vmul.f32 %v3849_v36, %v1033_v63 }
 0x29d   : > { %v260_v23 = vsel %vm259_vm1, %v256_v38, %v258_v60 }
 0x29e   : > { %2543 = vrot.lane.b32.xlu1 %v5060_v32, %s4093_s20  ;;  %v263_v24 = vsel %vm261_vm15, %v262_v11, %v260_v23  ;;  %v1037_v31 = vsel %vm1036_vm14, %v1033_v63, %v1035_v42 }
 0x29f   : > { %v264_v12 = vmax.f32 %v263_v24, 1e-05  ;;  %v1040_v19 = vsel %vm1038_vm13, %v1039_v13, %v1037_v31 }
 0x2a0   : > { %v1041_v39 = vmax.f32 %v1040_v19, 1e-05 }
 0x2a1   : > { %v3436_v26 = vclamps-f32 %v264_v12, 0.99999 }
 0x2a2   : > { %2560 = vrot.lane.b32.xlu1 %v5064_v47, %s4093_s20  ;;  %v3441_v21 = vclamps-f32 %v1041_v39, 0.99999 }
 0x2a3   : > { %v267_v2 = vadd.f32 1.0, %v3436_v26  ;;  %v270_v30 = vsub.f32 1.0, %v3436_v26 }
 0x2a4   : > { %v1044_v62 = vadd.f32 1.0, %v3441_v21  ;;  %v1047_v59 = vsub.f32 1.0, %v3441_v21 }
 0x2a5   : > { %3850 = vlog2.f32 %v267_v2 }
 0x2a6   : > { %2575 = vrot.lane.b32.xlu1 %v5088_v25, %s4093_s20  ;;  %3852 = vlog2.f32 %v270_v30 }
 0x2a7   : > { %3854 = vrcp.f32 %v264_v12 }
 0x2af   : > { %v3851_v51 = vpop.eup %3850 }
 0x2b0   : > { %v3853_v52 = vpop.eup %3852  ;;  %v269_v55 = vmul.f32 0.6931472, %v3851_v51 }
 0x2b1   : > { %v272_v49 = vmul.f32 0.6931472, %v3853_v52  ;;  %v3855_v56 = vpop.eup %3854 }
 0x2b3   : > { %v273_v50 = vsub.f32 %v269_v55, %v272_v49 }
 0x2b5   : > { %v274_v58 = vmul.f32 0.5, %v273_v50 }
 0x2b7   : > { %v5102_v44 = vmul.f32 %v3855_v56, %v274_v58 }
 0x2ff   : > { %v896_v33 = vpop.xlane.xlu0 %895 }
 0x300   : > { %3856 = vrsqrt.f32 %v896_v33  ;;  %vm899_vm13 = vcmp.eq.f32.partialorder %v896_v33, inf  ;;  %v902_v48 = vand.u32 2147483648, %v896_v33  ;;  %vm901_vm14 = vcmp.eq.f32.partialorder %v896_v33, 0.0 }
 0x301   : > { %3858 = vlog2.f32 %v1044_v62 }
 0x302   : > { %3860 = vlog2.f32 %v1047_v59 }
 0x303   : > { %v2536_v0 = vpop.permute.xlu0 %2535 }
 0x304   : > { %v2597_v37 = vcombine.low %v2536_v0, %v5070_v41  ;;  %v2598_v49 = vcombine.high %v2536_v0, %v5070_v41 }
 0x306   : > { %v2605_v11 = vrot.slane %v2597_v37, %v4402_v29 }
 0x307   : > { %v2559_v54 = vpop.permute.xlu0 %2558 }
 0x30a   : > { %v3857_v6 = vpop.eup %3856 }
 0x30b   : > { %v898_v10 = vmul.f32 %v3857_v6, %v896_v33  ;;  %v3859_v3 = vpop.eup %3858  ;;  %v5108_v14 = vpop.permute.xlu0 %2537 }
 0x30c   : > { %v3861_v16 = vpop.eup %3860  ;;  %v1046_v15 = vmul.f32 0.6931472, %v3859_v3  ;;  %v5145_v3 = vrot.slane %v2598_v49, %v4402_v29 }
 0x30d   : > { %v900_v34 = vsel %vm899_vm13, %v896_v33, %v898_v10  ;;  %v1049_v28 = vmul.f32 0.6931472, %v3861_v16  ;;  %vm931_vm13 = vcmask 556036  }
 0x30e   : > { %v1654_v61 = vpop.xlane.xlu1 %1653  ;;  %v903_v27 = vsel %vm901_vm14, %v902_v48, %v900_v34  ;;  %vm934_vm14 = vcmask 3072  }
 0x30f   : > { %3862 = vrsqrt.f32 %v1654_v61  ;;  %v904_v1 = vmul.f32 %v903_v27, %v5102_v44  ;;  %v1050_v40 = vsub.f32 %v1046_v15, %v1049_v28  ;;  %vm1657_vm15 = vcmp.eq.f32.partialorder %v1654_v61, inf  ;;  %v5116_v45 = vpop.permute.xlu0 %2554 }
 0x310   : > { %3864 = vrcp.f32 %v1041_v39  ;;  %v1660_v30 = vand.u32 2147483648, %v1654_v61  ;;  %vm1659_vm1 = vcmp.eq.f32.partialorder %v1654_v61, 0.0 }
 0x311   : > { %v905_v5 = vmax.f32 %v904_v1, 1e-05  ;;  %v1051_v26 = vmul.f32 0.5, %v1050_v40  ;;  %v2782_v40 = vcombine.low %v5108_v14, %v5064_v47 }
 0x312   : > { %v2542_v20 = vpop.permute.xlu1 %2541 }
 0x313   : > { %v3440_v57 = vclamps-f32 %v905_v5, 15.0  ;;  %3866 = vrcp.f32 %v905_v5  ;;  %v2581_v38 = vcombine.low %v5057_v4, %v2542_v20  ;;  %v2582_v62 = vcombine.high %v5057_v4, %v2542_v20  ;;  %v5150_v16 = vpop.permute.xlu0 %2571 }
 0x315   : > { %3868 = vtanh.f32 %v3440_v57  ;;  %v2589_v63 = vrot.slane %v2581_v38, %v4402_v29 }
 0x316   : > { %v2553_v35 = vpop.permute.xlu1 %2552 }
 0x317   : > { %v2613_v46 = vcombine.low %v2553_v35, %v5088_v25  ;;  %v2645_v13 = vcombine.low %v2589_v63, %v2605_v11  ;;  %v2614_v55 = vcombine.high %v2553_v35, %v5088_v25  ;;  %v2646_v34 = vcombine.high %v2589_v63, %v2605_v11 }
 0x318   : > { %v5139_v25 = vrot.slane %v2582_v62, %v4402_v29 }
 0x319   : > { %v3863_v60 = vpop.eup %3862  ;;  %v2621_v12 = vrot.slane %v2613_v46, %v4402_v29  ;;  %v5124_v56 = vrot.slane %v2645_v13, %v4428_v43  ;;  %v5142_v0 = vrot.slane %v2614_v55, %v4402_v29  ;;  %v2660_v57 = vrot.slane %v2646_v34, %v4428_v43 }
 0x31a   : > { %v1656_v23 = vmul.f32 %v3863_v60, %v1654_v61  ;;  %v2570_v24 = vpop.permute.xlu1 %2569  ;;  %v3865_v42 = vpop.eup %3864  ;;  %v2661_v37 = vcombine.low %v5139_v25, %v5145_v3 }
 0x31b   : > { %v2629_v36 = vcombine.low %v2559_v54, %v2570_v24  ;;  %v5118_v52 = vmul.f32 %v3865_v42, %v1051_v26  ;;  %v2630_v59 = vcombine.high %v2559_v54, %v2570_v24  ;;  %v5180_v26 = vpop.permute.xlu0 %2577 }
 0x31c   : > { %v1658_v2 = vsel %vm1657_vm15, %v1654_v61, %v1656_v23 }
 0x31d   : > { %v2637_v31 = vrot.slane %v2629_v36, %v4402_v29  ;;  %v1661_v19 = vsel %vm1659_vm1, %v1660_v30, %v1658_v2  ;;  %v3867_v21 = vpop.eup %3866  ;;  %v5148_v27 = vrot.slane %v2630_v59, %v4402_v29  ;;  %vm5235_vm1 = vmor %vm931_vm13, %vm890_vm6 }
 0x31e   : > { %v5114_v39 = vpop.permute.xlu1 %2543  ;;  %v5130_v6 = vmul.f32 %v1661_v19, %v5118_v52  ;;  %v5188_v19 = vrot.slane %v2661_v37, %v4428_v43 }
 0x31f   : > { %v2677_v51 = vcombine.low %v2621_v12, %v2637_v31  ;;  %v3869_v33 = vpop.eup %3868  ;;  %v2678_v61 = vcombine.high %v2621_v12, %v2637_v31  ;;  %v2766_v35 = vcombine.low %v5060_v32, %v5114_v39  ;;  %v2693_v46 = vcombine.low %v5142_v0, %v5148_v27 }
 0x320   : > { %v910_v50 = vmul.f32 %v3869_v33, %v3867_v21  ;;  %v1663_v5 = vmax.f32 %v5130_v6, 1e-05  ;;  %v2798_v12 = vcombine.low %v5116_v45, %v5080_v18  ;;  %v2790_v31 = vrot.slane %v2782_v40, %v4402_v29 }
 0x321   : > { %v5127_v58 = vrot.slane %v2677_v51, %v4428_v43  ;;  %v2692_v54 = vrot.slane %v2678_v61, %v4428_v43  ;;  %v2774_v13 = vrot.slane %v2766_v35, %v4402_v29  ;;  %v5191_v21 = vrot.slane %v2693_v46, %v4428_v43 }
 0x322   : > { %v5132_v10 = vpop.permute.xlu1 %2560  ;;  %v5134_v48 = vmul.f32 %v910_v50, %v904_v1  ;;  %v3445_v23 = vclamps-f32 %v1663_v5, 15.0  ;;  %v2890_v33 = vrot.slane %v5180_v26, %v4402_v29  ;;  %v2806_v55 = vrot.slane %v2798_v12, %v4402_v29 }
 0x323   : > { %v2709_v41 = vcombine.low %v5124_v56, %v5127_v58  ;;  %v2710_v11 = vcombine.high %v5124_v56, %v5127_v58  ;;  %v2814_v36 = vcombine.low %v5132_v10, %v5150_v16  ;;  %v2711_v30 = vcombine.low %v2660_v57, %v2692_v54 }
 0x324   : > { %v912_v1 = vmax.f32 %v5134_v48, 1e-05  ;;  %v2712_v34 = vcombine.high %v2660_v57, %v2692_v54  ;;  %v5204_v37 = vrot.slane %v2890_v33, %v4428_v43  ;;  %v2713_v35 = vcombine.low %v5188_v19, %v5191_v21 }
 0x325   : > { %v5154_v20 = vpop.f32.mrb[2].mxu0  ;;  %v2822_v49 = vrot.slane %v2814_v36, %v4402_v29 }
 0x326   : > { %v2576_v15 = vpop.permute.xlu1 %2575  ;;  %v5156_v28 = vpop.f32.mrb[3].mxu0  ;;  %3870 = vrcp.f32 %v912_v1  ;;  %v2389_v54 = vmul.f32 %v5154_v20, %v5154_v20  ;;  %vm913_vm15 = vcmp.gt.f32.partialorder %v912_v1, 0.999 }
 0x327   : > { %v2724_v38 = vrot.slane %v2576_v15, %v4402_v29  ;;  %v2717_v24 = vcombine.high %v2576_v15, %v4094_v8  ;;  %3872 = vrcp.f32 %v1663_v5  ;;  %v2830_v5 = vcombine.low %v2774_v13, %v2790_v31 }
 0x328   : > { %3874 = vtanh.f32 %v3445_v23  ;;  %v2854_v57 = vcombine.low %v2806_v55, %v2822_v49  ;;  %v2391_v12 = vsel %vm890_vm6, %v2389_v54, 0.0 }
 0x329   : > { %v2732_v60 = vcombine.high %v2724_v38, %v4094_v8  ;;  %v5171_v63 = vrot.slane %v2724_v38, %v4428_v43  ;;  %v5196_v62 = vrot.slane %v2717_v24, %v4402_v29  ;;  %v917_v38 = vmul.f32 %v910_v50, %v5102_v44 }
 0x32a   : > { %v2390_v50 = vmul.f32 %v5156_v28, %v5156_v28  ;;  %v5216_v23 = vrot.slane %v2830_v5, %v4428_v43  ;;  %v2714_v24 = vcombine.high %v5188_v19, %v5191_v21  ;;  %v2783_v5 = vcombine.high %v5108_v14, %v5064_v47 }
 0x32b   : > { %v2746_v42 = vrot.slane %v2732_v60, %v4428_v43  ;;  %v2762_v2 = vcombine.high %v5171_v63, %v4094_v8  ;;  %v2754_v40 = vrot.slane %v5196_v62, %v4428_v43  ;;  %v2831_v60 = vcombine.high %v2774_v13, %v2790_v31 }
 0x32d   : > { %v3778_v51 = vpack.i.bf16 %v2762_v2, %v2710_v11  ;;  %v3783_v59 = vpack.i.bf16 %v2746_v42, %v2711_v30  ;;  %v2763_v61 = vcombine.high %v2746_v42, %v4094_v8  ;;  %v2855_v2 = vcombine.high %v2806_v55, %v2822_v49 }
 0x32e   : > { %v2392_v30 = vsel %vm892_vm7, %v2390_v50, 0.0  ;;  %v2764_v31 = vcombine.high %v2754_v40, %v4094_v8  ;;  %v2662_v49 = vcombine.high %v5139_v25, %v5145_v3  ;;  %v2694_v25 = vcombine.high %v5142_v0, %v5148_v27 }
 0x32f   : > { %3779 = vrot.lane.b32.xlu0 %v3778_v51, %s4102_s26  ;;  %v3788_v44 = vpack.i.bf16 %v2763_v61, %v2712_v34  ;;  %v5226_v51 = vrot.slane %v2854_v57, %v4428_v43  ;;  %v5228_v34 = vadd.f32 %v2392_v30, %v2391_v12  ;;  %v2845_v47 = vrot.slane %v2831_v60, %v4428_v43  ;;  %s3317_s26 = scalar_lea.sflag [#allocation5], %s4284_s27 }
 0x330   : > { %v3871_v15 = vpop.eup %3870  ;;  %v2869_v14 = vrot.slane %v2855_v2, %v4428_v43  ;;  %v2797_v0 = vrot.slane %v2783_v5, %v4402_v29 }
 0x331   : > { %v915_v46 = vmul.f32 0.999, %v3871_v15  ;;  %v3873_v36 = vpop.eup %3872  ;;  %v2891_v15 = vcombine.high %v2890_v33, %v4094_v8 }
 0x332   : > { %v3875_v13 = vpop.eup %3874  ;;  %v2880_v60 = vcombine.low %v2845_v47, %v2869_v14  ;;  %v2881_v30 = vcombine.high %v2845_v47, %v2869_v14  ;;  %v3938_v14 = vld [vmem:[%s4288_s6 + $0x20] sm:$0xff] }
 0x333   : > { %3784 = vrot.lane.b32.xlu0 %v3783_v59, %s4104_s8  ;;  %v916_v11 = vsel %vm913_vm15, %v915_v46, 1.0  ;;  %v3793_v59 = vpack.i.bf16 %v2754_v40, %v2713_v35  ;;  %v2767_v46 = vcombine.high %v5060_v32, %v5114_v39  ;;  %v2879_v39 = vcombine.high %v5216_v23, %v5226_v51 }
 0x334   : > { %v918_v42 = vmul.f32 %v917_v38, %v916_v11  ;;  %v921_v1 = vmul.f32 %v916_v11, %v5134_v48  ;;  %v1668_v48 = vmul.f32 %v3875_v13, %v3873_v36  ;;  %v2914_v38 = vcombine.high %v5204_v37, %v4094_v8 }
 0x335   : > { %v2781_v27 = vrot.slane %v2767_v46, %v4402_v29  ;;  %v2905_v33 = vrot.slane %v2891_v15, %v4428_v43  ;;  %v2747_v40 = vcombine.high %v5196_v62, %v4094_v8  ;;  %v2906_v36 = vcombine.high %v5180_v26, %v4094_v8 }
 0x336   : > { %v919_v19 = vmul.f32 %v918_v42, %v5036_v22  ;;  %v920_v21 = vmul.f32 %v918_v42, %v5040_v53  ;;  %v922_v61 = vmul.f32 %v921_v1, %v921_v1  ;;  %v2799_v22 = vcombine.high %v5116_v45, %v5080_v18 }
 0x337   : > { %3789 = vrot.lane.b32.xlu0 %v3788_v44, %s4103_s7  ;;  %v1669_v35 = vmul.f32 %v1668_v48, %v5130_v6  ;;  %v2815_v18 = vcombine.high %v5132_v10, %v5150_v16  ;;  %v3798_v45 = vpack.i.bf16 %v2764_v31, %v2714_v24  ;;  %v2676_v10 = vrot.slane %v2662_v49, %v4428_v43 }
 0x338   : > { %v929_v53 = vcombine.low %v919_v19, %v920_v21  ;;  %935 = vst.msk [vmem:[#allocation2] sm:$0xf] %vm934_vm14, %v922_v61  ;;  %v2813_v3 = vrot.slane %v2799_v22, %v4402_v29  ;;  %v2708_v16 = vrot.slane %v2694_v25, %v4428_v43  ;;  %v3803_v54 = vpack.i.bf16 %v2914_v38, %v2879_v39  ;;  %v3939_v39 = vld [vmem:[%s4288_s6 + $0x28] sm:$0xff] }
 0x339   : > { %v1670_v6 = vmax.f32 %v1669_v35, 1e-05  ;;  %v2829_v57 = vrot.slane %v2815_v18, %v4402_v29  ;;  %v2846_v44 = vcombine.low %v2781_v27, %v2797_v0  ;;  %v2761_v50 = vrot.slane %v2747_v40, %v4428_v43 }
 0x33a   : > { %933 = vst.msk [vmem:[%s5257_s24] sm:$0xff] %vm5235_vm1, %v929_v53  ;;  %v3808_v24 = vpack.i.bf16 %v2905_v33, %v2880_v60  ;;  %v2715_v12 = vcombine.low %v2676_v10, %v2708_v16  ;;  %v2915_v42 = vcombine.high %v2905_v33, %v4094_v8  ;;  %v1675_v31 = vmul.f32 %v1668_v48, %v5118_v52 }
 0x33b   : > { %3794 = vrot.lane.b32.xlu0 %v3793_v59, %s4106_s19  ;;  %3876 = vrcp.f32 %v1670_v6  ;;  %v2870_v11 = vcombine.low %v2813_v3, %v2829_v57  ;;  %v2853_v29 = vrot.slane %v2846_v44, %v4428_v43  ;;  %vm1671_vm13 = vcmp.gt.f32.partialorder %v1670_v6, 0.999 }
 0x33c   : > { %v3813_v2 = vpack.i.bf16 %v2761_v50, %v2715_v12  ;;  %v2913_v59 = vrot.slane %v2906_v36, %v4428_v43  ;;  %v3818_v21 = vpack.i.bf16 %v2915_v42, %v2881_v30  ;;  %v2878_v52 = vcombine.low %v5216_v23, %v5226_v51 }
 0x33d   : > { %v2877_v1 = vrot.slane %v2870_v11, %v4428_v43  ;;  %v2716_v47 = vcombine.high %v2676_v10, %v2708_v16  ;;  %v2765_v18 = vcombine.high %v2761_v50, %v4094_v8  ;;  %v1763_v6 = vmul.f32 %v3939_v39, %v3939_v39 }
 0x33e   : > { %v2916_v38 = vcombine.high %v2913_v59, %v4094_v8 }
 0x33f   : > { %3799 = vrot.lane.b32.xlu0 %v3798_v45, %s4105_s21  ;;  %v2882_v26 = vcombine.low %v2853_v29, %v2877_v1  ;;  %v1762_v45 = vmul.f32 %v3938_v14, %v3938_v14  ;;  %v1765_v3 = vsel %vm245_vm0, %v1763_v6, 0.0  ;;  %v5317_v33 = vld [vmem:[#allocation2] sm:$0xf] }
 0x340   : > { %v5321_v10 = vsub.f32 1.0, %v5317_v33 }
 0x341   : > { %v3828_v53 = vpack.i.bf16 %v2913_v59, %v2882_v26  ;;  %v5301_v48 = vld [vmem:[%s5257_s24] sm:$0xff]  ;;  %v1764_v0 = vsel %vm245_vm0, %v1762_v45, 0.0 }
 0x342   : > { %v1766_v27 = vadd.f32 %v1765_v3, %v1764_v0 }
 0x343   : > { %3804 = vrot.lane.b32.xlu0 %v3803_v54, %s4093_s20 }
 0x345   : > { %v3877_v62 = vpop.eup %3876 }
 0x346   : > { %v1673_v13 = vmul.f32 0.999, %v3877_v62 }
 0x347   : > { %3809 = vrot.lane.b32.xlu0 %v3808_v24, %s4097_s22  ;;  %s3462_s22 = sshll.u32 %s4076_s15, 7  ;;  %s4111_s15 = smov [#allocation8]  }
 0x348   : > { %v1674_v19 = vsel %vm1671_vm13, %v1673_v13, 1.0  ;;  %s4002_s8 = sshll.u32 %s4111_s15, 4  ;;  %s4003_s8 = int_to_ptr.vmem [resolvable:$false] %s4002_s8 }
 0x349   : > { %v1676_v61 = vmul.f32 %v1675_v31, %v1674_v19  ;;  %v5287_v49 = vmul.f32 %v1674_v19, %v1669_v35  ;;  %v2883_v35 = vcombine.high %v2853_v29, %v2877_v1  ;;  %s4004_s21 = scalar_lea.vmem %s4003_s8, 256 }
 0x34b   : > { %3814 = vrot.lane.b32.xlu0 %v3813_v2, %s4107_s25  ;;  %v5290_v5 = vmul.f32 %v1676_v61, %v5046_v9  ;;  %v5293_v22 = vmul.f32 %v1676_v61, %v5050_v17  ;;  %v3833_v9 = vpack.i.bf16 %v5204_v37, %v2878_v52  ;;  %v3838_v25 = vpack.i.bf16 %v2916_v38, %v2883_v35 }
 0x34c   : > { %v3823_v37 = vpack.i.bf16 %v2765_v18, %v2716_v47 }
 0x34d   : > { %v1685_v43 = vcombine.low %v5290_v5, %v5293_v22 }
 0x34f   : > { %3819 = vrot.lane.b32.xlu0 %v3818_v21, %s4099_s10  ;;  %v1687_v15 = vmul.f32 %v1685_v43, %v5301_v48 }
 0x351   : > { %v1689_v17 = vcombine.high %v1687_v15, %v1687_v15  ;;  %v1691_v23 = vsel %vm890_vm6, %v1687_v15, 0.0 }
 0x353   : > { %3829 = vrot.lane.b32.xlu0 %v3828_v53, %s4100_s11  ;;  %v1692_v51 = vsel %vm892_vm7, %v1689_v17, 0.0 }
 0x354   : > { %v1693_v46 = vadd.f32 %v1692_v51, %v1691_v23 }
 0x356   : > { %1694 = vadd.xlane.f32.xlu1 %v1693_v46  ;;  %v1680_v46 = vmul.f32 %v5287_v49, %v5287_v49 }
 0x357   : > { %3834 = vrot.lane.b32.xlu0 %v3833_v9, %s4098_s9  ;;  %s3331_s9 = sshll.u32 %s5257_s24, 4  ;;  %s5454_s9 = int_to_ptr.vmem [resolvable:$true] %s3331_s9 }
 0x358   : > { %v1700_v3 = vmul.f32 %v5317_v33, %v1680_v46  ;;  %s3998_s7 = scalar_lea.vmem %s5454_s9, 128  ;;  %p4005_p12 = scmp.lt.s32.totalorder %s5454_s9, %s4003_s8 }
 0x359   : > { %p3999_p4 = scmp.ne.s32.totalorder %s5454_s9, %s3998_s7  ;;  %p4006_p11 = scmp.lt.s32.totalorder %s4004_s21, %s3998_s7 }
 0x35b   : > { %3839 = vrot.lane.b32.xlu0 %v3838_v25, %s4101_s18  ;;  %s5452_s18 = scalar_lea.hbm %s5507_s3, %s3462_s22  ;;  %p4000_p6 = pnand %p3999_p4, %p4228_p10 }
 0x35c   : > { %p4007_p0 = por %p4006_p11, %p4005_p12 }
 0x35d   : > { %p4001_p8 = pneg %p4000_p6 }
 0x35f   : > { %p4008_p5 = pnand %p4007_p0, %p4001_p8 }
 0x367   : > { %3824 = vrot.lane.b32.xlu1 %v3823_v37, %s4108_s29 }
 0x37a   : > { %1767 = vadd.xlane.f32.xlu0 %v1766_v27 }
 0x38b   : > { %2394 = vadd.xlane.f32.xlu1 %v5228_v34 }
 0x390   : > { %1736 = vperm.xlu0 %3843, %v5321_v10  }
 0x3a1   : > { %v3780_v8 = vpop.permute.xlu0 %3779 }
 0x3a2   : > { %v3781_v16 = vunpack.i.l.bf16 %v3780_v8  ;;  %v3782_v40 = vunpack.i.h.bf16 %v3780_v8 }
 0x3a4   : > { %v3021_v57 = vsel %vm767_vm9, %v2709_v41, %v3781_v16  ;;  %v3022_v50 = vsel %vm767_vm9, %v5171_v63, %v3782_v40  ;;  %vm5543_vm9 = vcmask 801792  }
 0x3a5   : > { %v3785_v54 = vpop.permute.xlu0 %3784 }
 0x3a6   : > { %v3787_v60 = vunpack.i.h.bf16 %v3785_v54  ;;  %v3786_v44 = vunpack.i.l.bf16 %v3785_v54 }
 0x3a8   : > { %v3024_v34 = vsel %vm770_vm10, %v3022_v50, %v3787_v60  ;;  %v3023_v11 = vsel %vm770_vm10, %v3021_v57, %v3786_v44  ;;  %vm5544_vm10 = vcmask 916480  }
 0x3a9   : > { %v3790_v24 = vpop.permute.xlu0 %3789  ;;  %vm5547_vm15 = vmmov %vm5544_vm10 }
 0x3aa   : > { %v3792_v51 = vunpack.i.h.bf16 %v3790_v24  ;;  %v3791_v25 = vunpack.i.l.bf16 %v3790_v24 }
 0x3ac   : > { %v3026_v39 = vsel %vm773_vm11, %v3024_v34, %v3792_v51  ;;  %v3025_v27 = vsel %vm773_vm11, %v3023_v11, %v3791_v25  ;;  %vm5545_vm11 = vmmov %vm5543_vm9 }
 0x3ad   : > { %v3795_v12 = vpop.permute.xlu0 %3794 }
 0x3ae   : > { %v3797_v47 = vunpack.i.h.bf16 %v3795_v12  ;;  %v3796_v18 = vunpack.i.l.bf16 %v3795_v12 }
 0x3b0   : > { %v3028_v8 = vsel %vm776_vm12, %v3026_v39, %v3797_v47  ;;  %v3027_v49 = vsel %vm776_vm12, %v3025_v27, %v3796_v18  ;;  %vm5546_vm12 = vcmask 1031168  }
 0x3b1   : > { %v3800_v36 = vpop.permute.xlu0 %3799  ;;  %vm5548_vm13 = vmmov %vm5546_vm12 }
 0x3b2   : > { %v3802_v37 = vunpack.i.h.bf16 %v3800_v36  ;;  %v3801_v6 = vunpack.i.l.bf16 %v3800_v36 }
 0x3b5   : > { %v5332_v42 = vpop.permute.xlu0 %3804 }
 0x3b6   : > { %v3807_v58 = vunpack.i.h.bf16 %v5332_v42  ;;  %v3806_v41 = vunpack.i.l.bf16 %v5332_v42 }
 0x3b9   : > { %v3810_v62 = vpop.permute.xlu0 %3809 }
 0x3ba   : > { %v3812_v1 = vunpack.i.h.bf16 %v3810_v62  ;;  %v3811_v2 = vunpack.i.l.bf16 %v3810_v62 }
 0x3bc   : > { %v3039_v31 = vsel %vm794_vm2, %v3806_v41, %v3811_v2  ;;  %v3040_v59 = vsel %vm794_vm2, %v3807_v58, %v3812_v1  ;;  %vm5539_vm2 = vcmask 572416  }
 0x3bd   : > { %v3815_v29 = vpop.permute.xlu0 %3814  ;;  %v3030_v57 = vsel %vm5539_vm2, %v3028_v8, %v3802_v37 }
 0x3be   : > { %v3817_v0 = vunpack.i.h.bf16 %v3815_v29  ;;  %v3816_v16 = vunpack.i.l.bf16 %v3815_v29 }
 0x3c1   : > { %v3820_v56 = vpop.permute.xlu0 %3819 }
 0x3c2   : > { %v3822_v63 = vunpack.i.h.bf16 %v3820_v56  ;;  %v3821_v13 = vunpack.i.l.bf16 %v3820_v56 }
 0x3c4   : > { %v3042_v61 = vsel %vm797_vm3, %v3040_v59, %v3822_v63  ;;  %v3041_v53 = vsel %vm797_vm3, %v3039_v31, %v3821_v13  ;;  %vm5540_vm3 = vmmov %vm5539_vm2  ;;  %vm5549_vm2 = vcmask 72704  }
 0x3c5   : > { %v3830_v30 = vpop.permute.xlu0 %3829  ;;  %v3029_v24 = vsel %vm5540_vm3, %v3027_v49, %v3801_v6 }
 0x3c6   : > { %v3832_v19 = vunpack.i.h.bf16 %v3830_v30  ;;  %v3831_v26 = vunpack.i.l.bf16 %v3830_v30 }
 0x3c8   : > { %v3043_v52 = vsel %vm800_vm4, %v3041_v53, %v3831_v26  ;;  %v3044_v43 = vsel %vm800_vm4, %v3042_v61, %v3832_v19  ;;  %vm5541_vm4 = vcmask 687104   ;;  %v242_v61 = vld [vmem:[#allocation6 + $0xc] sm:$0xf]  ;;  %v1711_v53 = vmul.f32 %v5321_v10, %v5321_v10 }
 0x3c9   : > { %v3835_v21 = vpop.permute.xlu0 %3834  ;;  %v3032_v12 = vsel %vm5541_vm4, %v3030_v57, %v3817_v0 }
 0x3ca   : > { %v3837_v36 = vunpack.i.h.bf16 %v3835_v21  ;;  %v3836_v56 = vunpack.i.l.bf16 %v3835_v21 }
 0x3cd   : > { %v3840_v15 = vpop.permute.xlu0 %3839 }
 0x3ce   : > { %v3842_v38 = vunpack.i.h.bf16 %v3840_v15  ;;  %v3841_v9 = vunpack.i.l.bf16 %v3840_v15 }
 0x3d0   : > { %v3045_v17 = vsel %vm803_vm5, %v3043_v52, %v3841_v9  ;;  %v3046_v35 = vsel %vm803_vm5, %v3044_v43, %v3842_v38  ;;  %vm5542_vm5 = vmmov %vm5541_vm4 }
 0x3d1   : > { %v3481_v23 = vpack.c.bf16 %v3046_v35, %v3045_v17  ;;  %v3031_v11 = vsel %vm5542_vm5, %v3029_v24, %v3816_v16  ;;  %v2501_v24 = vmul.f32 %v5060_v32, %v5060_v32 }
 0x3d3   : > { %3483 = vmatprep.subr.msk.bf16.mxu1 %vm4773_vm8, %v3481_v23 }
 0x3e3   : > { %v1695_v14 = vpop.xlane.xlu1 %1694 }
 0x3e4   : > { %v1696_v45 = vmul.f32 2.0, %v1695_v14 }
 0x3e6   : > { %v1697_v40 = vadd.f32 1.0, %v1696_v45 }
 0x3e7   : > { %v3825_v54 = vpop.permute.xlu1 %3824 }
 0x3e8   : > { %v5354_v60 = vadd.f32 %v1697_v40, %v1680_v46  ;;  %v1701_v44 = vadd.f32 %v1700_v3, %v1697_v40  ;;  %v3827_v50 = vunpack.i.h.bf16 %v3825_v54  ;;  %v3826_v34 = vunpack.i.l.bf16 %v3825_v54 }
 0x3ea   : > { %v1702_v42 = vadd.f32 1e-05, %v1701_v44  ;;  %v1707_v62 = vmul.f32 2.0, %v5354_v60  ;;  %v3034_v29 = vsel %vm5543_vm9, %v3032_v12, %v3827_v50  ;;  %v3033_v2 = vsel %vm5545_vm11, %v3031_v11, %v3826_v34 }
 0x3eb   : > { %v3036_v1 = vsel %vm5544_vm10, %v3034_v29, %v3837_v36  ;;  %v1705_v13 = vmul.f32 %v5354_v60, %v5354_v60  ;;  %v3035_v31 = vsel %vm5547_vm15, %v3033_v2, %v3836_v56  ;;  %v2500_v34 = vmul.f32 %v5057_v4, %v5057_v4 }
 0x3ec   : > { %3878 = vrcp.f32 %v1702_v42  ;;  %v1708_v30 = vmul.f32 %v1707_v62, %v5321_v10  ;;  %v3038_v63 = vsel %vm5546_vm12, %v3036_v1, %v3807_v58  ;;  %v3037_v59 = vsel %vm5548_vm13, %v3035_v31, %v3806_v41 }
 0x3ed   : > { %v3484_v26 = vpack.c.bf16 %v3038_v63, %v3037_v59  ;;  %v1706_v21 = vmul.f32 %v1705_v13, %v5317_v33  ;;  %v1712_v58 = vmul.f32 %v1711_v53, %v1680_v46  ;;  %v2502_v11 = vsel %vm245_vm0, %v2500_v34, 0.0 }
 0x3ee   : > { %v1709_v19 = vmul.f32 %v1708_v30, %v1695_v14  ;;  %v2503_v42 = vsel %vm245_vm0, %v2501_v24, 0.0 }
 0x3ef   : > { %3486 = vmatpush1.bf16.msk.msra.mxu1 %vm4773_vm8, %v3484_v26  ;;  %v2504_v62 = vadd.f32 %v2503_v42, %v2502_v11 }
 0x3f0   : > { %v1710_v52 = vadd.f32 %v1709_v19, %v1706_v21 }
 0x3f1   : > { %2505 = vadd.xlane.f32.xlu0 %v2504_v62 }
 0x3f2   : > { %3454 = vmatmul.mubr.msk.f32.vlgmr.msra.gmra.mrb[2].mxu1 %vm5549_vm2, %v242_v61  ;;  %v1713_v15 = vadd.f32 %v1712_v58, %v1710_v52 }
 0x3f6   : > { %v3879_v43 = vpop.eup %3878 }
 0x3f7   : > { %v1714_v38 = vmul.f32 %v3879_v43, %v3879_v43 }
 0x3f9   : > { %v1715_v9 = vmul.f32 %v1714_v38, %v1713_v15 }
 0x3fb   : > { %v1716_v41 = vmax.f32 %v1715_v9, 0.0 }
 0x3fd   : > { %3880 = vrsqrt.f32 %v1716_v41  ;;  %vm1719_vm8 = vcmp.eq.f32.partialorder %v1716_v41, inf  ;;  %v1722_v51 = vand.u32 2147483648, %v1716_v41  ;;  %vm1721_vm3 = vcmp.eq.f32.partialorder %v1716_v41, 0.0 }
 0x407   : > { %v1768_v17 = vpop.xlane.xlu0 %1767  ;;  %v3881_v33 = vpop.eup %3880 }
 0x408   : > { %v1769_v35 = vrot.slane %v1768_v17, 4  ;;  %v1718_v7 = vmul.f32 %v3881_v33, %v1716_v41 }
 0x40a   : > { %v1770_v23 = vadd.f32 %v1769_v35, %v1768_v17  ;;  %v1720_v47 = vsel %vm1719_vm8, %v1716_v41, %v1718_v7 }
 0x40b   : > { %v1723_v10 = vsel %vm1721_vm3, %v1722_v51, %v1720_v47  ;;  %v1730_v51 = vcombine.high %v5301_v48, %v5301_v48 }
 0x40c   : > { %v1771_v25 = vrot.slane %v1770_v23, 2  ;;  %v1724_v37 = vmax.f32 %v1723_v10, 1e-05 }
 0x40d   : > { %v1733_v47 = vmul.f32 %v1730_v51, %v5354_v60 }
 0x40e   : > { %v1772_v18 = vadd.f32 %v1771_v25, %v1770_v23  ;;  %3882 = vrcp.f32 %v1724_v37  ;;  %vm1725_vm4 = vcmp.gt.f32.partialorder %v1724_v37, 0.999  ;;  %v1732_v25 = vmul.f32 %v5354_v60, %v5301_v48 }
 0x40f   : > { %v1737_v33 = vpop.permute.xlu0 %1736 }
 0x410   : > { %v1773_v46 = vrot.slane %v1772_v18, 1  ;;  %v1739_v23 = vmul.f32 %v1737_v33, %v5290_v5  ;;  %v1740_v7 = vmul.f32 %v1737_v33, %v5293_v22 }
 0x412   : > { %v1774_v14 = vadd.f32 %v1773_v46, %v1772_v18  ;;  %v1741_v10 = vadd.f32 %v1739_v23, %v1732_v25  ;;  %v1742_v18 = vadd.f32 %v1740_v7, %v1733_v47 }
 0x414   : > { %3884 = vrsqrt.f32 %v1774_v14  ;;  %vm1777_vm5 = vcmp.eq.f32.partialorder %v1774_v14, inf  ;;  %v1780_v0 = vand.u32 2147483648, %v1774_v14  ;;  %vm1779_vm9 = vcmp.eq.f32.partialorder %v1774_v14, 0.0 }
 0x418   : > { %v3883_v45 = vpop.eup %3882  ;;  %v2395_v44 = vpop.xlane.xlu1 %2394 }
 0x419   : > { %v1727_v39 = vmul.f32 0.999, %v3883_v45  ;;  %3886 = vrsqrt.f32 %v2395_v44  ;;  %vm2398_vm10 = vcmp.eq.f32.partialorder %v2395_v44, inf  ;;  %v2401_v32 = vand.u32 2147483648, %v2395_v44 }
 0x41a   : > { %vm2400_vm11 = vcmp.eq.f32.partialorder %v2395_v44, 0.0 }
 0x41b   : > { %v1728_v3 = vsel %vm1725_vm4, %v1727_v39, 1.0 }
 0x41c   : > { %v1743_v8 = vmul.f32 %v3879_v43, %v1728_v3  ;;  %v1758_v16 = vmul.f32 %v1728_v3, %v1728_v3 }
 0x41e   : > { %v3885_v6 = vpop.eup %3884  ;;  %v1759_v49 = vmul.f32 %v1758_v16, %v1716_v41  ;;  %1746 = vperm.xlu1 %3844, %v1743_v8  }
 0x41f   : > { %v1776_v27 = vmul.f32 %v3885_v6, %v1774_v14 }
 0x420   : > { %1761 = vst.msk [vmem:[#allocation2] sm:$0xf] %vm934_vm14, %v1759_v49 }
 0x421   : > { %v1778_v40 = vsel %vm1777_vm5, %v1774_v14, %v1776_v27 }
 0x422   : > { %v1781_v57 = vsel %vm1779_vm9, %v1780_v0, %v1778_v40 }
 0x423   : > { %v1782_v54 = vmax.f32 %v1781_v57, 1e-05  ;;  %v3887_v29 = vpop.eup %3886 }
 0x424   : > { %v2397_v1 = vmul.f32 %v3887_v29, %v2395_v44 }
 0x425   : > { %v3446_v50 = vclamps-f32 %v1782_v54, 0.99999 }
 0x426   : > { %v2399_v13 = vsel %vm2398_vm10, %v2395_v44, %v2397_v1 }
 0x427   : > { %v1785_v12 = vadd.f32 1.0, %v3446_v50  ;;  %v1788_v36 = vsub.f32 1.0, %v3446_v50  ;;  %v2402_v19 = vsel %vm2400_vm11, %v2401_v32, %v2399_v13  ;;  %v2423_v50 = vld [vmem:[#allocation2] sm:$0xf] }
 0x428   : > { %v2440_v34 = vsub.f32 1.0, %v2423_v50 }
 0x429   : > { %3888 = vlog2.f32 %v1785_v12 }
 0x42a   : > { %3890 = vlog2.f32 %v1788_v36 }
 0x42b   : > { %3892 = vrcp.f32 %v1782_v54 }
 0x433   : > { %v3889_v56 = vpop.eup %3888 }
 0x434   : > { %v3891_v2 = vpop.eup %3890  ;;  %v1787_v4 = vmul.f32 0.6931472, %v3889_v56 }
 0x435   : > { %v1790_v30 = vmul.f32 0.6931472, %v3891_v2  ;;  %v3893_v31 = vpop.eup %3892 }
 0x437   : > { %v1791_v63 = vsub.f32 %v1787_v4, %v1790_v30 }
 0x439   : > { %v1792_v59 = vmul.f32 0.5, %v1791_v63 }
 0x43b   : > { %v1794_v26 = vmul.f32 %v3893_v31, %v1792_v59 }
 0x43d   : > { %v2403_v21 = vmul.f32 %v2402_v19, %v1794_v26 }
 0x43f   : > { %v2404_v61 = vmax.f32 %v2403_v21, 1e-05 }
 0x441   : > { %v3450_v53 = vclamps-f32 %v2404_v61, 15.0  ;;  %3894 = vrcp.f32 %v2404_v61 }
 0x443   : > { %3896 = vtanh.f32 %v3450_v53 }
 0x44b   : > { %v3895_v52 = vpop.eup %3894 }
 0x44d   : > { %v3897_v58 = vpop.eup %3896 }
 0x44e   : > { %v2409_v43 = vmul.f32 %v3897_v58, %v3895_v52 }
 0x450   : > { %v2410_v15 = vmul.f32 %v2409_v43, %v2403_v21  ;;  %v2416_v45 = vmul.f32 %v2409_v43, %v1794_v26 }
 0x452   : > { %v2411_v38 = vmax.f32 %v2410_v15, 1e-05 }
 0x454   : > { %3898 = vrcp.f32 %v2411_v38  ;;  %vm2412_vm0 = vcmp.gt.f32.partialorder %v2411_v38, 0.999 }
 0x45e   : > { %v3899_v9 = vpop.eup %3898 }
 0x45f   : > { %v2414_v41 = vmul.f32 0.999, %v3899_v9 }
 0x461   : > { %v2415_v17 = vsel %vm2412_vm0, %v2414_v41, 1.0 }
 0x462   : > { %v2420_v35 = vmul.f32 %v2415_v17, %v2410_v15  ;;  %v2417_v6 = vmul.f32 %v2416_v45, %v2415_v17  ;;  %v2452_v17 = vmul.f32 %v2440_v34, %v2440_v34 }
 0x464   : > { %v5393_v5 = vmul.f32 %v2417_v6, %v5154_v20  ;;  %v5396_v22 = vmul.f32 %v2417_v6, %v5156_v28  ;;  %v2421_v30 = vmul.f32 %v2420_v35, %v2420_v35 }
 0x466   : > { %v2426_v48 = vcombine.low %v5393_v5, %v5396_v22  ;;  %v2441_v59 = vmul.f32 %v2423_v50, %v2421_v30  ;;  %v2453_v33 = vmul.f32 %v2452_v17, %v2421_v30 }
 0x47e   : > { %v2506_v24 = vpop.xlane.xlu0 %2505 }
 0x47f   : > { %v2507_v12 = vrot.slane %v2506_v24, 4 }
 0x481   : > { %v2508_v36 = vadd.f32 %v2507_v12, %v2506_v24 }
 0x483   : > { %v2509_v11 = vrot.slane %v2508_v36, 2 }
 0x485   : > { %v2510_v42 = vadd.f32 %v2509_v11, %v2508_v36 }
 0x487   : > { %v2511_v62 = vrot.slane %v2510_v42, 1 }
 0x489   : > { %v2512_v29 = vadd.f32 %v2511_v62, %v2510_v42 }
 0x48b   : > { %3900 = vrsqrt.f32 %v2512_v29  ;;  %vm2515_vm12 = vcmp.eq.f32.partialorder %v2512_v29, inf  ;;  %v2518_v2 = vand.u32 2147483648, %v2512_v29  ;;  %vm2517_vm15 = vcmp.eq.f32.partialorder %v2512_v29, 0.0 }
 0x495   : > { %v3901_v56 = vpop.eup %3900 }
 0x496   : > { %v2514_v1 = vmul.f32 %v3901_v56, %v2512_v29 }
 0x498   : > { %v2516_v4 = vsel %vm2515_vm12, %v2512_v29, %v2514_v1 }
 0x499   : > { %v2519_v32 = vsel %vm2517_vm15, %v2518_v2, %v2516_v4 }
 0x49a   : > { %v2520_v31 = vmax.f32 %v2519_v32, 1e-05 }
 0x49c   : > { %v3451_v61 = vclamps-f32 %v2520_v31, 0.99999 }
 0x49d   : > { %v1747_v37 = vpop.permute.xlu1 %1746 }
 0x49e   : > { %v1749_v46 = vmul.f32 %v1747_v37, %v1741_v10  ;;  %v1750_v14 = vmul.f32 %v1747_v37, %v1742_v18  ;;  %v2523_v15 = vadd.f32 1.0, %v3451_v61  ;;  %v2526_v38 = vsub.f32 1.0, %v3451_v61 }
 0x4a0   : > { %v1753_v39 = vcombine.low %v1749_v46, %v1750_v14 }
 0x4a2   : > { %1757 = vst.msk [vmem:[%s5257_s24] sm:$0xff] %vm5235_vm1, %v1753_v39 }
 0x4a9   : > { %v5401_v60 = vld [vmem:[%s5257_s24] sm:$0xff] }
 0x4aa   : > { %v2428_v0 = vmul.f32 %v2426_v48, %v5401_v60 }
 0x4ac   : > { %v2430_v3 = vcombine.high %v2428_v0, %v2428_v0  ;;  %v2432_v27 = vsel %vm890_vm6, %v2428_v0, 0.0 }
 0x4ae   : > { %v2433_v8 = vsel %vm892_vm7, %v2430_v3, 0.0 }
 0x4af   : > { %v2434_v16 = vadd.f32 %v2433_v8, %v2432_v27 }
 0x4b1   : > { %2435 = vadd.xlane.f32.xlu1 %v2434_v16 }
 0x4c5   : > { %v5406_v40 = vpop.f32.mrb[2].mxu1 }
 0x4c6   : > { %v3127_v20 = vmul.f32 %v5406_v40, %v5406_v40  ;;  %v5410_v28 = vpop.f32.mrb[3].mxu1 }
 0x4c7   : > { %v3128_v49 = vmul.f32 %v5410_v28, %v5410_v28 }
 0x4c8   : > { %v3129_v57 = vsel %vm890_vm6, %v3127_v20, 0.0 }
 0x4c9   : > { %v3130_v54 = vsel %vm892_vm7, %v3128_v49, 0.0 }
 0x4ca   : > { %v3131_v44 = vadd.f32 %v3130_v54, %v3129_v57 }
 0x4cc   : > { %3132 = vadd.xlane.f32.xlu1 %v3131_v44 }
 0x4dd   : > { %2477 = vperm.xlu1 %3844, %v2440_v34  }
 0x53e   : > { %v2436_v63 = vpop.xlane.xlu1 %2435 }
 0x53f   : > { %v2437_v13 = vmul.f32 2.0, %v2436_v63 }
 0x541   : > { %v2438_v19 = vadd.f32 1.0, %v2437_v13 }
 0x543   : > { %v5416_v26 = vadd.f32 %v2438_v19, %v2421_v30  ;;  %v2442_v21 = vadd.f32 %v2441_v59, %v2438_v19 }
 0x545   : > { %v2443_v53 = vadd.f32 1e-05, %v2442_v21  ;;  %v2448_v52 = vmul.f32 2.0, %v5416_v26  ;;  %v2446_v43 = vmul.f32 %v5416_v26, %v5416_v26 }
 0x547   : > { %3902 = vrcp.f32 %v2443_v53  ;;  %v2449_v58 = vmul.f32 %v2448_v52, %v2440_v34  ;;  %v2447_v41 = vmul.f32 %v2446_v43, %v2423_v50  ;;  %v2473_v43 = vmul.f32 %v5416_v26, %v5401_v60 }
 0x548   : > { %3904 = vlog2.f32 %v2523_v15 }
 0x549   : > { %v2450_v9 = vmul.f32 %v2449_v58, %v2436_v63  ;;  %3906 = vlog2.f32 %v2526_v38  ;;  %v2471_v58 = vcombine.high %v5401_v60, %v5401_v60 }
 0x54b   : > { %v2451_v35 = vadd.f32 %v2450_v9, %v2447_v41  ;;  %v2474_v15 = vmul.f32 %v2471_v58, %v5416_v26 }
 0x54d   : > { %v2454_v7 = vadd.f32 %v2453_v33, %v2451_v35 }
 0x551   : > { %v3903_v23 = vpop.eup %3902 }
 0x552   : > { %v2455_v51 = vmul.f32 %v3903_v23, %v3903_v23  ;;  %v3905_v47 = vpop.eup %3904 }
 0x553   : > { %v3907_v18 = vpop.eup %3906  ;;  %v2525_v46 = vmul.f32 0.6931472, %v3905_v47 }
 0x554   : > { %v2456_v25 = vmul.f32 %v2455_v51, %v2454_v7  ;;  %v2528_v14 = vmul.f32 0.6931472, %v3907_v18 }
 0x556   : > { %v2457_v10 = vmax.f32 %v2456_v25, 0.0  ;;  %v2529_v45 = vsub.f32 %v2525_v46, %v2528_v14 }
 0x558   : > { %3908 = vrsqrt.f32 %v2457_v10  ;;  %v2530_v6 = vmul.f32 0.5, %v2529_v45  ;;  %vm2460_vm13 = vcmp.eq.f32.partialorder %v2457_v10, inf  ;;  %v2463_v3 = vand.u32 2147483648, %v2457_v10 }
 0x559   : > { %3910 = vrcp.f32 %v2520_v31  ;;  %v3133_v37 = vpop.xlane.xlu1 %3132  ;;  %vm2462_vm8 = vcmp.eq.f32.partialorder %v2457_v10, 0.0 }
 0x55a   : > { %3912 = vrsqrt.f32 %v3133_v37  ;;  %vm3136_vm2 = vcmp.eq.f32.partialorder %v3133_v37, inf  ;;  %v3139_v8 = vand.u32 2147483648, %v3133_v37  ;;  %vm3138_vm3 = vcmp.eq.f32.partialorder %v3133_v37, 0.0 }
 0x55d   : > { %v2478_v61 = vpop.permute.xlu1 %2477 }
 0x55e   : > { %v2480_v53 = vmul.f32 %v2478_v61, %v5393_v5  ;;  %v2481_v52 = vmul.f32 %v2478_v61, %v5396_v22 }
 0x560   : > { %v2482_v38 = vadd.f32 %v2480_v53, %v2473_v43  ;;  %v2483_v9 = vadd.f32 %v2481_v52, %v2474_v15 }
 0x562   : > { %v3909_v39 = vpop.eup %3908 }
 0x563   : > { %v3911_v48 = vpop.eup %3910  ;;  %v2459_v0 = vmul.f32 %v3909_v39, %v2457_v10 }
 0x564   : > { %v3913_v27 = vpop.eup %3912  ;;  %v2532_v57 = vmul.f32 %v3911_v48, %v2530_v6 }
 0x565   : > { %v2461_v16 = vsel %vm2460_vm13, %v2457_v10, %v2459_v0  ;;  %v3135_v20 = vmul.f32 %v3913_v27, %v3133_v37 }
 0x566   : > { %v2464_v49 = vsel %vm2462_vm8, %v2463_v3, %v2461_v16 }
 0x567   : > { %v2465_v54 = vmax.f32 %v2464_v49, 1e-05  ;;  %v3137_v44 = vsel %vm3136_vm2, %v3133_v37, %v3135_v20 }
 0x568   : > { %v3140_v50 = vsel %vm3138_vm3, %v3139_v8, %v3137_v44 }
 0x569   : > { %3914 = vrcp.f32 %v2465_v54  ;;  %v3141_v34 = vmul.f32 %v3140_v50, %v2532_v57  ;;  %vm2466_vm4 = vcmp.gt.f32.partialorder %v2465_v54, 0.999 }
 0x56b   : > { %v3142_v24 = vmax.f32 %v3141_v34, 1e-05 }
 0x56d   : > { %v3455_v12 = vclamps-f32 %v3142_v24, 15.0  ;;  %3916 = vrcp.f32 %v3142_v24 }
 0x56f   : > { %3918 = vtanh.f32 %v3455_v12 }
 0x573   : > { %v3915_v36 = vpop.eup %3914 }
 0x574   : > { %v2468_v11 = vmul.f32 0.999, %v3915_v36 }
 0x576   : > { %v2469_v42 = vsel %vm2466_vm4, %v2468_v11, 1.0 }
 0x577   : > { %v2484_v62 = vmul.f32 %v3903_v23, %v2469_v42  ;;  %v2497_v29 = vmul.f32 %v2469_v42, %v2469_v42  ;;  %v3917_v56 = vpop.eup %3916 }
 0x579   : > { %v2498_v1 = vmul.f32 %v2497_v29, %v2457_v10  ;;  %2487 = vperm.xlu0 %3843, %v2484_v62   ;;  %v3919_v2 = vpop.eup %3918 }
 0x57a   : > { %v3147_v4 = vmul.f32 %v3919_v2, %v3917_v56 }
 0x57b   : > { %2499 = vst.msk [vmem:[#allocation2] sm:$0xf] %vm934_vm14, %v2498_v1 }
 0x57c   : > { %v3148_v30 = vmul.f32 %v3147_v4, %v3141_v34  ;;  %v3154_v41 = vmul.f32 %v3147_v4, %v2532_v57 }
 0x57e   : > { %v3149_v32 = vmax.f32 %v3148_v30, 1e-05 }
 0x580   : > { %3920 = vrcp.f32 %v3149_v32  ;;  %vm3150_vm5 = vcmp.gt.f32.partialorder %v3149_v32, 0.999 }
 0x582   : > { %v3161_v63 = vld [vmem:[#allocation2] sm:$0xf] }
 0x583   : > { %v3178_v13 = vsub.f32 1.0, %v3161_v63 }
 0x585   : > { %3215 = vperm.xlu0 %3843, %v3178_v13   ;;  %v3190_v16 = vmul.f32 %v3178_v13, %v3178_v13 }
 0x58a   : > { %v3921_v31 = vpop.eup %3920 }
 0x58b   : > { %v3152_v59 = vmul.f32 0.999, %v3921_v31 }
 0x58d   : > { %v3153_v19 = vsel %vm3150_vm5, %v3152_v59, 1.0 }
 0x58e   : > { %v3158_v21 = vmul.f32 %v3153_v19, %v3148_v30  ;;  %v3155_v7 = vmul.f32 %v3154_v41, %v3153_v19 }
 0x590   : > { %v3156_v5 = vmul.f32 %v3155_v7, %v5406_v40  ;;  %v3157_v22 = vmul.f32 %v3155_v7, %v5410_v28  ;;  %v3159_v37 = vmul.f32 %v3158_v21, %v3158_v21 }
 0x592   : > { %v3164_v51 = vcombine.low %v3156_v5, %v3157_v22  ;;  %v3179_v45 = vmul.f32 %v3161_v63, %v3159_v37  ;;  %v3191_v49 = vmul.f32 %v3190_v16, %v3159_v37 }
 0x5f8   : > { %v2488_v17 = vpop.permute.xlu0 %2487 }
 0x5f9   : > { %v2490_v35 = vmul.f32 %v2488_v17, %v2482_v38  ;;  %v2491_v33 = vmul.f32 %v2488_v17, %v2483_v9 }
 0x5fb   : > { %v2494_v23 = vcombine.low %v2490_v35, %v2491_v33  ;;  %v3243_v35 = vld [vmem:[%s5506_s2] sm:$0xf] }
 0x5fc   : > { %v3253_v33 = vmul.f32 196.0, %v3243_v35 }
 0x5fd   : > { %2496 = vst.msk [vmem:[%s5257_s24] sm:$0xff] %vm5235_vm1, %v2494_v23 }
 0x5fe   : > { %v3254_v7 = vmul.f32 %v3253_v33, %v3243_v35 }
 0x604   : > { %v3160_v25 = vld [vmem:[%s5257_s24] sm:$0xff] }
 0x605   : > { %v3166_v60 = vmul.f32 %v3164_v51, %v3160_v25  ;;  %v3209_v32 = vcombine.high %v3160_v25, %v3160_v25 }
 0x607   : > { %v3168_v47 = vcombine.high %v3166_v60, %v3166_v60  ;;  %v3170_v26 = vsel %vm890_vm6, %v3166_v60, 0.0 }
 0x609   : > { %v3171_v10 = vsel %vm892_vm7, %v3168_v47, 0.0 }
 0x60a   : > { %v3172_v18 = vadd.f32 %v3171_v10, %v3170_v26 }
 0x60c   : > { %3173 = vadd.xlane.f32.xlu1 %v3172_v18 }
 0x699   : > { %v3174_v46 = vpop.xlane.xlu1 %3173 }
 0x69a   : > { %v3175_v14 = vmul.f32 2.0, %v3174_v46 }
 0x69c   : > { %v3176_v39 = vadd.f32 1.0, %v3175_v14 }
 0x69e   : > { %v3177_v6 = vadd.f32 %v3176_v39, %v3159_v37  ;;  %v3180_v48 = vadd.f32 %v3179_v45, %v3176_v39 }
 0x6a0   : > { %v3181_v40 = vadd.f32 1e-05, %v3180_v48  ;;  %v3186_v0 = vmul.f32 2.0, %v3177_v6  ;;  %v3184_v3 = vmul.f32 %v3177_v6, %v3177_v6  ;;  %v3212_v31 = vmul.f32 %v3209_v32, %v3177_v6 }
 0x6a2   : > { %3922 = vrcp.f32 %v3181_v40  ;;  %v3187_v28 = vmul.f32 %v3186_v0, %v3178_v13  ;;  %v3185_v8 = vmul.f32 %v3184_v3, %v3161_v63  ;;  %v3216_v63 = vpop.permute.xlu0 %3215  ;;  %v3211_v13 = vmul.f32 %v3177_v6, %v3160_v25 }
 0x6a3   : > { %v3218_v59 = vmul.f32 %v3216_v63, %v3156_v5  ;;  %v3219_v19 = vmul.f32 %v3216_v63, %v3157_v22 }
 0x6a4   : > { %v3188_v27 = vmul.f32 %v3187_v28, %v3174_v46 }
 0x6a5   : > { %v3220_v21 = vadd.f32 %v3218_v59, %v3211_v13  ;;  %v3221_v61 = vadd.f32 %v3219_v19, %v3212_v31 }
 0x6a6   : > { %v3189_v20 = vadd.f32 %v3188_v27, %v3185_v8 }
 0x6a8   : > { %v3192_v54 = vadd.f32 %v3191_v49, %v3189_v20 }
 0x6ac   : > { %v3923_v57 = vpop.eup %3922 }
 0x6ad   : > { %v3193_v44 = vmul.f32 %v3923_v57, %v3923_v57 }
 0x6af   : > { %v3194_v50 = vmul.f32 %v3193_v44, %v3192_v54 }
 0x6b1   : > { %v3195_v34 = vmax.f32 %v3194_v50, 0.0 }
 0x6b3   : > { %3924 = vrsqrt.f32 %v3195_v34  ;;  %vm3198_vm9 = vcmp.eq.f32.partialorder %v3195_v34, inf  ;;  %v3201_v36 = vand.u32 2147483648, %v3195_v34  ;;  %vm3200_vm10 = vcmp.eq.f32.partialorder %v3195_v34, 0.0 }
 0x6bd   : > { %v3925_v24 = vpop.eup %3924 }
 0x6be   : > { %v3197_v12 = vmul.f32 %v3925_v24, %v3195_v34 }
 0x6c0   : > { %v3199_v11 = vsel %vm3198_vm9, %v3195_v34, %v3197_v12 }
 0x6c1   : > { %v3202_v42 = vsel %vm3200_vm10, %v3201_v36, %v3199_v11 }
 0x6c2   : > { %v3203_v62 = vmax.f32 %v3202_v42, 1e-05 }
 0x6c4   : > { %3926 = vrcp.f32 %v3203_v62  ;;  %vm3204_vm11 = vcmp.gt.f32.partialorder %v3203_v62, 0.999 }
 0x6ce   : > { %v3927_v29 = vpop.eup %3926 }
 0x6cf   : > { %v3206_v56 = vmul.f32 0.999, %v3927_v29 }
 0x6d1   : > { %v3207_v1 = vsel %vm3204_vm11, %v3206_v56, 1.0 }
 0x6d2   : > { %v3222_v2 = vmul.f32 %v3923_v57, %v3207_v1  ;;  %v3235_v4 = vmul.f32 %v3207_v1, %v3207_v1 }
 0x6d4   : > { %v3236_v30 = vmul.f32 %v3235_v4, %v3195_v34  ;;  %3225 = vperm.xlu0 %3843, %v3222_v2  }
 0x6d6   : > { %3237 = vst.msk [vmem:[#allocation2] sm:$0xf] %vm934_vm14, %v3236_v30 }
 0x6dd   : > { %v3242_v22 = vld [vmem:[#allocation2] sm:$0xf] }
 0x6de   : > { %v3259_v25 = vmul.f32 %v3254_v7, %v3242_v22  ;;  %v3258_v47 = vsub.f32 1.0, %v3242_v22 }
 0x6e0   : > { %v3295_v14 = vmul.f32 %v3258_v47, %v3243_v35  ;;  %v3270_v6 = vmul.f32 %v3258_v47, %v3258_v47 }
 0x6e2   : > { %v3271_v0 = vmul.f32 %v3270_v6, %v3254_v7 }
 0x753   : > { %v3226_v53 = vpop.permute.xlu0 %3225 }
 0x754   : > { %v3228_v52 = vmul.f32 %v3226_v53, %v3220_v21  ;;  %v3229_v58 = vmul.f32 %v3226_v53, %v3221_v61 }
 0x756   : > { %v3232_v43 = vcombine.low %v3228_v52, %v3229_v58 }
 0x758   : > { %3234 = vst.msk [vmem:[%s5257_s24] sm:$0xff] %vm5235_vm1, %v3232_v43 }
 0x75f   : > { %v3241_v15 = vld [vmem:[%s5257_s24] sm:$0xff] }
 0x760   : > { %v3245_v38 = vcombine.high %v3241_v15, %v3241_v15  ;;  %v3247_v9 = vsel %vm890_vm6, %v3241_v15, 0.0 }
 0x762   : > { %v3248_v41 = vsel %vm892_vm7, %v3245_v38, 0.0 }
 0x763   : > { %v3249_v17 = vadd.f32 %v3248_v41, %v3247_v9 }
 0x765   : > { %3250 = vadd.xlane.f32.xlu0 %v3249_v17 }
 0x7f2   : > { %v3251_v23 = vpop.xlane.xlu0 %3250 }
 0x7f3   : > { %v3252_v5 = vmul.f32 %v3251_v23, %v3243_v35 }
 0x7f5   : > { %v3255_v51 = vmul.f32 2.0, %v3252_v5 }
 0x7f7   : > { %v3256_v60 = vadd.f32 1.0, %v3255_v51 }
 0x7f9   : > { %v3257_v26 = vadd.f32 %v3256_v60, %v3254_v7  ;;  %v3260_v10 = vadd.f32 %v3259_v25, %v3256_v60 }
 0x7fb   : > { %v3261_v18 = vadd.f32 1e-05, %v3260_v10  ;;  %v3266_v37 = vmul.f32 2.0, %v3257_v26  ;;  %3290 = vperm.xlu1 %3844, %v3257_v26   ;;  %v3264_v45 = vmul.f32 %v3257_v26, %v3257_v26 }
 0x7fd   : > { %3928 = vrcp.f32 %v3261_v18  ;;  %v3267_v46 = vmul.f32 %v3266_v37, %v3258_v47  ;;  %v3265_v48 = vmul.f32 %v3264_v45, %v3242_v22 }
 0x7ff   : > { %3298 = vperm.xlu1 %3844, %v3295_v14   ;;  %v3268_v39 = vmul.f32 %v3267_v46, %v3252_v5 }
 0x801   : > { %v3269_v40 = vadd.f32 %v3268_v39, %v3265_v48 }
 0x803   : > { %v3272_v3 = vadd.f32 %v3271_v0, %v3269_v40 }
 0x807   : > { %v3929_v28 = vpop.eup %3928 }
 0x808   : > { %v3273_v27 = vmul.f32 %v3929_v28, %v3929_v28 }
 0x80a   : > { %v3274_v8 = vmul.f32 %v3273_v27, %v3272_v3 }
 0x80c   : > { %v3275_v16 = vmax.f32 %v3274_v8, 0.0 }
 0x80e   : > { %3930 = vrsqrt.f32 %v3275_v16  ;;  %vm3278_vm6 = vcmp.eq.f32.partialorder %v3275_v16, inf  ;;  %v3281_v57 = vand.u32 2147483648, %v3275_v16  ;;  %vm3280_vm7 = vcmp.eq.f32.partialorder %v3275_v16, 0.0 }
 0x818   : > { %v3931_v20 = vpop.eup %3930 }
 0x819   : > { %v3277_v49 = vmul.f32 %v3931_v20, %v3275_v16 }
 0x81b   : > { %v3279_v54 = vsel %vm3278_vm6, %v3275_v16, %v3277_v49 }
 0x81c   : > { %v3282_v44 = vsel %vm3280_vm7, %v3281_v57, %v3279_v54 }
 0x81d   : > { %v3283_v50 = vmax.f32 %v3282_v44, 1e-05 }
 0x81f   : > { %3932 = vrcp.f32 %v3283_v50  ;;  %vm3284_vm14 = vcmp.gt.f32.partialorder %v3283_v50, 0.999 }
 0x829   : > { %v3933_v34 = vpop.eup %3932 }
 0x82a   : > { %v3286_v24 = vmul.f32 0.999, %v3933_v34 }
 0x82c   : > { %v3287_v12 = vsel %vm3284_vm14, %v3286_v24, 1.0 }
 0x82d   : > { %v3303_v36 = vmul.f32 %v3929_v28, %v3287_v12 }
 0x82f   : > { %3306 = vperm.xlu0 %3843, %v3303_v36  }
 0x87a   : > { %v3291_v11 = vpop.permute.xlu1 %3290 }
 0x87b   : > { %v3293_v62 = vmul.f32 %v3291_v11, %v3241_v15  ;;  %v3294_v29 = vmul.f32 %v3291_v11, %v3245_v38 }
 0x87e   : > { %v3299_v42 = vpop.permute.xlu1 %3298 }
 0x87f   : > { %v3301_v56 = vadd.f32 %v3299_v42, %v3293_v62  ;;  %v3302_v1 = vadd.f32 %v3299_v42, %v3294_v29 }
 0x8ae   : > { %v3307_v2 = vpop.permute.xlu0 %3306 }
 0x8af   : > { %v3309_v4 = vmul.f32 %v3307_v2, %v3301_v56  ;;  %v3310_v30 = vmul.f32 %v3307_v2, %v3302_v1 }
 0x8b1   : > { %v3313_v32 = vcombine.low %v3309_v4, %v3310_v30 }
 0x8b3   : > { %3315 = vst.msk [vmem:[%s5257_s24] sm:$0xff] %vm5235_vm1, %v3313_v32 }
 0x8b4   : > { %4011 = shalt.err (!%p4008_p5)
}
 0x8b5   : > { %s4012_s27 = scalar_lea.hbm %s5452_s18, 128  ;;  %s4016_s29 = scalar_lea.hbm %s5507_s3, 256 }
 0x8b6   : > { %p4013_p9 = scmp.ne.s32.totalorder %s5452_s18, %s4012_s27  ;;  %p4017_p3 = scmp.lt.u32.totalorder %s5452_s18, %s5507_s3 }
 0x8b7   : > { %p4018_p7 = scmp.lt.u32.totalorder %s4016_s29, %s4012_s27  ;;  %p4020_p4 = scmp.lt.u32.totalorder %s4012_s27, %s5452_s18 }
 0x8b8   : > { %p4014_p1 = pnand %p4013_p9, %p4228_p10 }
 0x8b9   : > { %p4019_p13 = por %p4018_p7, %p4017_p3 }
 0x8ba   : > { %p4015_p2 = pneg %p4014_p1 }
 0x8bb   : > { %p4021_p6 = por %p4020_p4, %p4019_p13 }
 0x8bd   : > { %p4022_p8 = pnand %p4021_p6, %p4015_p2 }
 0x8bf   : > { %4025 = shalt.err (!%p4022_p8)
}
 0x8c0   : > { %3493 = dma.vmem_to_hbm [thread:$0]  (%p4228_p10), %s5454_s9, 128, %s5452_s18, %s3317_s26  }
 0x8c1 PF: > { %s3343_s6 = sand.u32 1, %s4064_s12   ;;  %p5550_p12 = scmp.ne.s32.totalorder %s5523_s23, 0 }
 0x8c2   : > { %p5551_p11 = scmp.ge.s32.totalorder %s4084_s17, 2  ;;  %s3344_s20 = scalar_lea.sflag [#allocation5], %s3343_s6 }
 0x8c4   : > { %p3504_p0 = pnand %p5551_p11, %p5550_p12 }
 0x8c6   : > { %4059 = dma.done.wait (!%p3504_p0), %s3344_s20, 128  }
 0x8c7   : > { %4061 = vsyncadd (!%p3504_p0), %s3344_s20, 4294967168  ;;  %s20_s17 = sadd.s32 1, %s4084_s17   ;;  %s5552_s12 = smov %s4068_s13 }
 0x8c8   : > { %p17_p5 = scmp.ge.s32.totalorder %s20_s17, 4   ;;  %s5553_s13 = smov %s4072_s14 }
 0x8c9   : > { %s5554_s14 = smov %s4237_s5  ;;  %s5555_s15 = smov %s4080_s16 }
 0x8ca   : > { %s5556_s16 = smov %s5558_s28  ;;  %19 = sbr.rel (!%p17_p5) target bundleno = 7 (0x7), region = 94 }
 0x8d1   :  { %3349 = vsyncpa [#allocation4], 1 }
 0x8d2   :  { %3351 = vsyncpa [#allocation4 + $0x1], 1 }
 0x8d3   :  { %3352 = vsyncpa [#allocation7], 1 }
 0x8d4   :  { %3353 = vsyncpa [#allocation5], 1 }
 0x8d5   :  { %3355 = vsyncpa [#allocation5 + $0x1], 1 }

</bundles_post_ra>
